<compile_context>
chip_gen: v7x
topology: tpu7x:2x2x1
jax: 0.10.0
libtpu: 0.0.40
codegen_flags: <defaults>
</compile_context>

<pallas_src>
import functools

import jax
import jax.numpy as jnp
from jax.experimental import pallas as pl
from jax.experimental.pallas import tpu as pltpu


_FAST_PATH_ROWS = 1024            # below this, XLA fusion beats kernel overhead
_VMEM_LIMIT_BYTES = 48 * 1024 * 1024   # < v7x 64 MiB physical; plenty everywhere


def _round_up(n, m):
    return ((n + m - 1) // m) * m


def phi_potpo_kernel(x_ref, w1_ref, b1_ref, w2_ref, b2_ref, w3_ref, b3_ref, o_ref):
    # bf16 MXU operands (16 rows / vreg => half the vmatmul pushes); f32 accumulate.
    x = x_ref[...].astype(jnp.bfloat16)                               # (TN, 2C)

    # encoder: Linear(2C -> C) + ReLU
    h = jnp.dot(x, w1_ref[...], preferred_element_type=jnp.float32) + b1_ref[...]
    h = jnp.maximum(h, 0.0)                                           # (TN, C) f32

    # meta_learner: Linear(C -> rC) + ReLU
    m = jnp.dot(h.astype(jnp.bfloat16), w2_ref[...],
                preferred_element_type=jnp.float32) + b2_ref[...]
    m = jnp.maximum(m, 0.0)                                           # (TN, rC) f32

    # meta_learner: Linear(rC -> C)
    mw = jnp.dot(m.astype(jnp.bfloat16), w3_ref[...],
                 preferred_element_type=jnp.float32) + b3_ref[...]    # (TN, C) f32

    # elementwise product (f32) then feature-sum on the MXU (ones column)
    # instead of an XLU cross-lane reduce: rebalances onto the underused
    # vector-extended slot now that the main matmuls are bf16.
    prod = (mw * h).astype(jnp.bfloat16)                              # (TN, C)
    ones_col = jnp.ones((prod.shape[1], 1), jnp.bfloat16)
    o_ref[...] = jnp.dot(prod, ones_col,
                         preferred_element_type=jnp.float32)          # (TN, 1)


@functools.partial(jax.jit, static_argnames=("tile_n",))
def phi_potpo(x, params, tile_n=2048):
    """x: (N, 2*C) float32. params: dict of w1,b1,w2,b2,w3,b3 stored as (in, out)."""
    w1, b1 = params["w1"], params["b1"]
    w2, b2 = params["w2"], params["b2"]
    w3, b3 = params["w3"], params["b3"]

    N, F2 = x.shape                      # F2 = 2*C
    C = w1.shape[1]
    rC = w2.shape[1]

    # Small-N fast path: kernel launch + pipeline fixed cost (several us)
    # dominates tiny batches; XLA fuses this just fine.
    if N <= _FAST_PATH_ROWS:
        h = jax.nn.relu(x @ w1 + b1)
        m = jax.nn.relu(h @ w2 + b2)
        mw = m @ w3 + b3
        return jnp.sum(mw * h, axis=-1, keepdims=True)

    # Grid/tile policy: grid first (even, >= 2 so both v7x TensorCores get
    # work via the 'parallel' axis), then the row tile rounded to the sublane
    # constraint.  Padding is < 8*grid rows.
    grid_n = pl.cdiv(N, tile_n)
    grid_n = max(grid_n, 2)
    if grid_n % 2:
        grid_n += 1
    TN = _round_up(pl.cdiv(N, grid_n), 8)
    N_pad = grid_n * TN
    if N_pad != N:
        x = jnp.pad(x, ((0, N_pad - N), (0, 0)))

    # Tiny weights as bf16 MXU operands (resident in VMEM across all steps).
    w1b = w1.astype(jnp.bfloat16)
    w2b = w2.astype(jnp.bfloat16)
    w3b = w3.astype(jnp.bfloat16)

    def resident(shape):
        # Whole small array, same block every grid step -> stays in VMEM.
        return pl.BlockSpec(shape, lambda i: (0,) * len(shape))

    flops = 2 * N_pad * (F2 * C + C * rC + rC * C + C) + 4 * N_pad * C + N_pad * rC
    bytes_accessed = (
        N_pad * F2 * 4 + N_pad * 4                           # x stream + output
        + (F2 * C + C * rC + rC * C) * 2 + (C + rC + C) * 4  # weights/biases (once)
    )

    out = pl.pallas_call(
        phi_potpo_kernel,
        out_shape=jax.ShapeDtypeStruct((N_pad, 1), jnp.float32),
        grid=(grid_n,),
        in_specs=[
            pl.BlockSpec((TN, F2), lambda i: (i, 0)),        # x: streamed per tile
            resident(w1b.shape), resident(b1.shape),
            resident(w2b.shape), resident(b2.shape),
            resident(w3b.shape), resident(b3.shape),
        ],
        out_specs=pl.BlockSpec((TN, 1), lambda i: (i, 0)),
        compiler_params=pltpu.CompilerParams(
            dimension_semantics=("parallel",),               # shard batch across TCs
            vmem_limit_bytes=_VMEM_LIMIT_BYTES,
        ),
        cost_estimate=pl.CostEstimate(
            flops=flops, transcendentals=0, bytes_accessed=bytes_accessed
        ),
    )(x, w1b, b1, w2b, b2, w3b, b3)

    return out[:N]


def init_params(key, in_channels=32, r=2):
    C, rC = in_channels, int(in_channels * r)
    ks = jax.random.split(key, 6)

    # deterministic synthetic init (uniform, scaled like PyTorch's default)
    def u(k, shape, fan_in):
        bound = 1.0 / jnp.sqrt(fan_in)
        return jax.random.uniform(k, shape, jnp.float32, -bound, bound)

    return {
        "w1": u(ks[0], (2 * C, C), 2 * C), "b1": u(ks[1], (1, C), 2 * C),
        "w2": u(ks[2], (C, rC), C),        "b2": u(ks[3], (1, rC), C),
        "w3": u(ks[4], (rC, C), rC),       "b3": u(ks[5], (1, C), rC),
    }


def reference(x, p):
    h = jax.nn.relu(x @ p["w1"] + p["b1"])
    m = jax.nn.relu(h @ p["w2"] + p["b2"])
    mw = m @ p["w3"] + p["b3"]
    return jnp.sum(mw * h, axis=-1, keepdims=True)


if __name__ == "__main__":
    key = jax.random.PRNGKey(0)
    k_x, k_p, k_x2 = jax.random.split(key, 3)

    in_channels, r = 32, 2
    params = init_params(k_p, in_channels=in_channels, r=r)

    # Kernel path: N > fast-path threshold; 4100 also exercises the
    # even-grid bump (3 -> 4 tiles) and the (< 8*grid rows) padding path.
    batch = 4100
    x = jax.random.normal(k_x, (batch, 2 * in_channels), dtype=jnp.float32)
    out = jax.block_until_ready(phi_potpo(x, params))
    ref = reference(x, params)
    assert out.shape == (batch, 1)
    # bf16 MXU operands (matching TPU's default matmul behaviour) => modest tolerance.
    assert jnp.allclose(out, ref, atol=2e-2, rtol=2e-2), float(jnp.max(jnp.abs(out - ref)))

    # Small-N fast path (wrapper-only, no pallas_call) — matches the module too.
    x_small = jax.random.normal(k_x2, (10, 2 * in_channels), dtype=jnp.float32)
    out_small = jax.block_until_ready(phi_potpo(x_small, params))
    assert out_small.shape == (10, 1)
    assert jnp.allclose(out_small, reference(x_small, params), atol=2e-2, rtol=2e-2)

    print("KERNEL_OK")
</pallas_src>

<mosaic_0001>
module attributes {stable_mosaic.version = 11 : i64} {
  func.func @phi_potpo_kernel(%arg0: i32, %arg1: memref<1032x64xf32, #tpu.memory_space<vmem>>, %arg2: memref<64x32xbf16, #tpu.memory_space<vmem>>, %arg3: memref<1x32xf32, #tpu.memory_space<vmem>>, %arg4: memref<32x64xbf16, #tpu.memory_space<vmem>>, %arg5: memref<1x64xf32, #tpu.memory_space<vmem>>, %arg6: memref<64x32xbf16, #tpu.memory_space<vmem>>, %arg7: memref<1x32xf32, #tpu.memory_space<vmem>>, %arg8: memref<1032x1xf32, #tpu.memory_space<vmem>>) attributes {dimension_semantics = [#tpu.dimension_semantics<parallel>], iteration_bounds = array<i64: 4>, scalar_prefetch = 0 : i64, scratch_operands = 0 : i64, tpu.core_type = #tpu.core_type<tc>, window_params = [{transform_indices = @transform_0, window_bounds = array<i64: 1032, 64>}, {pipeline_mode = #tpu.pipeline_mode<synchronous>, transform_indices = @transform_1, window_bounds = array<i64: 64, 32>}, {pipeline_mode = #tpu.pipeline_mode<synchronous>, transform_indices = @transform_2, window_bounds = array<i64: 1, 32>}, {pipeline_mode = #tpu.pipeline_mode<synchronous>, transform_indices = @transform_3, window_bounds = array<i64: 32, 64>}, {pipeline_mode = #tpu.pipeline_mode<synchronous>, transform_indices = @transform_4, window_bounds = array<i64: 1, 64>}, {pipeline_mode = #tpu.pipeline_mode<synchronous>, transform_indices = @transform_5, window_bounds = array<i64: 64, 32>}, {pipeline_mode = #tpu.pipeline_mode<synchronous>, transform_indices = @transform_6, window_bounds = array<i64: 1, 32>}, {transform_indices = @transform_7, window_bounds = array<i64: 1032, 1>}]} {
    %c0 = arith.constant 0 : index
    %c0_0 = arith.constant 0 : index
    %0 = vector.load %arg1[%c0, %c0_0] : memref<1032x64xf32, #tpu.memory_space<vmem>>, vector<1032x64xf32>
    %1 = arith.truncf %0 : vector<1032x64xf32> to vector<1032x64xbf16>
    %c0_1 = arith.constant 0 : index
    %c0_2 = arith.constant 0 : index
    %2 = vector.load %arg2[%c0_1, %c0_2] : memref<64x32xbf16, #tpu.memory_space<vmem>>, vector<64x32xbf16>
    %cst = arith.constant dense<0.000000e+00> : vector<1032x32xf32>
    %3 = tpu.matmul %1, %2, %cst {dimension_numbers = #tpu.dot_dimension_numbers<[1], [0], [0], [1], [0, 0, 1, 1], [], []>} : vector<1032x64xbf16>, vector<64x32xbf16>, vector<1032x32xf32> -> vector<1032x32xf32>
    %c0_3 = arith.constant 0 : index
    %c0_4 = arith.constant 0 : index
    %4 = vector.load %arg3[%c0_3, %c0_4] : memref<1x32xf32, #tpu.memory_space<vmem>>, vector<1x32xf32>
    %5 = vector.broadcast %4 : vector<1x32xf32> to vector<1032x32xf32>
    %6 = arith.addf %3, %5 : vector<1032x32xf32>
    %cst_5 = arith.constant 0.000000e+00 : f32
    %7 = vector.broadcast %cst_5 : f32 to vector<1032x32xf32>
    %8 = arith.maximumf %6, %7 : vector<1032x32xf32>
    %9 = arith.truncf %8 : vector<1032x32xf32> to vector<1032x32xbf16>
    %c0_6 = arith.constant 0 : index
    %c0_7 = arith.constant 0 : index
    %10 = vector.load %arg4[%c0_6, %c0_7] : memref<32x64xbf16, #tpu.memory_space<vmem>>, vector<32x64xbf16>
    %cst_8 = arith.constant dense<0.000000e+00> : vector<1032x64xf32>
    %11 = tpu.matmul %9, %10, %cst_8 {dimension_numbers = #tpu.dot_dimension_numbers<[1], [0], [0], [1], [0, 0, 1, 1], [], []>} : vector<1032x32xbf16>, vector<32x64xbf16>, vector<1032x64xf32> -> vector<1032x64xf32>
    %c0_9 = arith.constant 0 : index
    %c0_10 = arith.constant 0 : index
    %12 = vector.load %arg5[%c0_9, %c0_10] : memref<1x64xf32, #tpu.memory_space<vmem>>, vector<1x64xf32>
    %13 = vector.broadcast %12 : vector<1x64xf32> to vector<1032x64xf32>
    %14 = arith.addf %11, %13 : vector<1032x64xf32>
    %cst_11 = arith.constant 0.000000e+00 : f32
    %15 = vector.broadcast %cst_11 : f32 to vector<1032x64xf32>
    %16 = arith.maximumf %14, %15 : vector<1032x64xf32>
    %17 = arith.truncf %16 : vector<1032x64xf32> to vector<1032x64xbf16>
    %c0_12 = arith.constant 0 : index
    %c0_13 = arith.constant 0 : index
    %18 = vector.load %arg6[%c0_12, %c0_13] : memref<64x32xbf16, #tpu.memory_space<vmem>>, vector<64x32xbf16>
    %cst_14 = arith.constant dense<0.000000e+00> : vector<1032x32xf32>
    %19 = tpu.matmul %17, %18, %cst_14 {dimension_numbers = #tpu.dot_dimension_numbers<[1], [0], [0], [1], [0, 0, 1, 1], [], []>} : vector<1032x64xbf16>, vector<64x32xbf16>, vector<1032x32xf32> -> vector<1032x32xf32>
    %c0_15 = arith.constant 0 : index
    %c0_16 = arith.constant 0 : index
    %20 = vector.load %arg7[%c0_15, %c0_16] : memref<1x32xf32, #tpu.memory_space<vmem>>, vector<1x32xf32>
    %21 = vector.broadcast %20 : vector<1x32xf32> to vector<1032x32xf32>
    %22 = arith.addf %19, %21 : vector<1032x32xf32>
    %23 = arith.mulf %22, %8 : vector<1032x32xf32>
    %24 = arith.truncf %23 : vector<1032x32xf32> to vector<1032x32xbf16>
    %cst_17 = arith.constant 1.000000e+00 : bf16
    %25 = vector.broadcast %cst_17 : bf16 to vector<32x1xbf16>
    %cst_18 = arith.constant dense<0.000000e+00> : vector<1032x1xf32>
    %26 = tpu.matmul %24, %25, %cst_18 {dimension_numbers = #tpu.dot_dimension_numbers<[1], [0], [0], [1], [0, 0, 1, 1], [], []>} : vector<1032x32xbf16>, vector<32x1xbf16>, vector<1032x1xf32> -> vector<1032x1xf32>
    %c0_19 = arith.constant 0 : index
    %c0_20 = arith.constant 0 : index
    %27 = vector.load %arg8[%c0_19, %c0_20] : memref<1032x1xf32, #tpu.memory_space<vmem>>, vector<1032x1xf32>
    tpu.vector_store %arg8[%c0_19, %c0_20], %26 {strides = array<i32>} : memref<1032x1xf32, #tpu.memory_space<vmem>>, vector<1032x1xf32>,
    return
  }
  func.func @transform_0(%arg0: i32) -> (i32, i32) {
    %c0_i32 = arith.constant 0 : i32
    %c0_i32_0 = arith.constant 0 : i32
    return %arg0, %c0_i32 : i32, i32
  }
  func.func @transform_1(%arg0: i32) -> (i32, i32) {
    %c0_i32 = arith.constant 0 : i32
    %c0_i32_0 = arith.constant 0 : i32
    %c0_i32_1 = arith.constant 0 : i32
    return %c0_i32, %c0_i32_0 : i32, i32
  }
  func.func @transform_2(%arg0: i32) -> (i32, i32) {
    %c0_i32 = arith.constant 0 : i32
    %c0_i32_0 = arith.constant 0 : i32
    %c0_i32_1 = arith.constant 0 : i32
    return %c0_i32, %c0_i32_0 : i32, i32
  }
  func.func @transform_3(%arg0: i32) -> (i32, i32) {
    %c0_i32 = arith.constant 0 : i32
    %c0_i32_0 = arith.constant 0 : i32
    %c0_i32_1 = arith.constant 0 : i32
    return %c0_i32, %c0_i32_0 : i32, i32
  }
  func.func @transform_4(%arg0: i32) -> (i32, i32) {
    %c0_i32 = arith.constant 0 : i32
    %c0_i32_0 = arith.constant 0 : i32
    %c0_i32_1 = arith.constant 0 : i32
    return %c0_i32, %c0_i32_0 : i32, i32
  }
  func.func @transform_5(%arg0: i32) -> (i32, i32) {
    %c0_i32 = arith.constant 0 : i32
    %c0_i32_0 = arith.constant 0 : i32
    %c0_i32_1 = arith.constant 0 : i32
    return %c0_i32, %c0_i32_0 : i32, i32
  }
  func.func @transform_6(%arg0: i32) -> (i32, i32) {
    %c0_i32 = arith.constant 0 : i32
    %c0_i32_0 = arith.constant 0 : i32
    %c0_i32_1 = arith.constant 0 : i32
    return %c0_i32, %c0_i32_0 : i32, i32
  }
  func.func @transform_7(%arg0: i32) -> (i32, i32) {
    %c0_i32 = arith.constant 0 : i32
    %c0_i32_0 = arith.constant 0 : i32
    return %arg0, %c0_i32 : i32, i32
  }
}

</mosaic_0001>

<bundles_post_ra>
// kernel: phi_potpo.1
= control target key start
LH: loop header
LB: loop body
LE: loop exit
PB: predicated region body
PF: predicated region fallthrough
CT: control target
= control target key end

     0   :  { %s6033_s24 = smov 0   ;;  %s8782_s0 = inlined_call_operand.vmem [shape: f32[4128,64], index: 0, kind: input, shape index: {}]   ;;  %s8783_s1 = inlined_call_operand.vmem [shape: bf16[64,32], index: 1, kind: input, shape index: {}]   ;;  %s8784_s2 = inlined_call_operand.vmem [shape: f32[1,32], index: 2, kind: input, shape index: {}]   ;;  %s8785_s3 = inlined_call_operand.vmem [shape: bf16[32,64], index: 3, kind: input, shape index: {}]   ;;  %s8786_s4 = inlined_call_operand.vmem [shape: f32[1,64], index: 4, kind: input, shape index: {}]   ;;  %s8787_s5 = inlined_call_operand.vmem [shape: bf16[64,32], index: 5, kind: input, shape index: {}]   ;;  %s8788_s6 = inlined_call_operand.vmem [shape: f32[1,32], index: 6, kind: input, shape index: {}]   ;;  %s8789_s7 = inlined_call_operand.vmem [shape: f32[4128,1], index: 7, kind: output, shape index: {}]  }
   0x1 LB: > { %s4337_s25 = sadd.s32 4294967295, %s5988_s24   ;;  %p4341_p0 = scmp.ge.s32.totalorder %s5988_s24, 1  ;;  %s5988_s24 = sphi %s6033_s24, %s17_s24  }
   0x2   : > { %p238_p1 = scmp.lt.s32.totalorder %s5988_s24, 5 }
   0x4   : > { %p239_p2 = pnand %p4341_p0, %p238_p1 }
   0x6   : > { %242 = sbr.rel (%p239_p2) target bundleno = 1717 (0x6b5), region = 48 }
   0xd   : > { %v5966_v0 = vld [vmem:[%s8783_s1] sm:$0xff]   ;;  %v8853_v1 = vmov 0.0   ;;  %v5967_v2 = vld [vmem:[%s8783_s1 + $0x8] sm:$0xff]   ;;  %vm5991_vm0 = vmmov 0   ;;  %s270_s30 = smul.u32 129, %s4337_s25  ;;  %v5968_v3 = vld [vmem:[%s8783_s1 + $0x10] sm:$0xff]  }
   0xe   : > { %4891 = vmatprep.subr.bf16.mxu0 %v8853_v1  ;;  %5159 = vmatprep.subr.bf16.mxu1 %v8853_v1  ;;  %v5969_v4 = vld [vmem:[%s8783_s1 + $0x18] sm:$0xff]   ;;  %vm517_vm1 = vcmask 523264   ;;  %v5970_v40 = vld [vmem:[%s8785_s3] sm:$0xff]   ;;  %v5971_v42 = vld [vmem:[%s8785_s3 + $0x8] sm:$0xff]   ;;  %vm1482_vm2 = vcmask 261120   ;;  %vm4151_vm3 = vcmask 7168  }
   0xf   : > { %4892 = vmatpush3.bf16.msra.mxu0 %v5966_v0  ;;  %4899 = vmatprep.mubr.msk.bf16.mxu0 %vm5991_vm0, %v8853_v1  ;;  %p271_p3 = scmp.lt.s32.totalorder %s270_s30, 515 }
  0x10   : > { %4893 = vmatprep.subr.bf16.mxu0 %v8853_v1  ;;  %5163 = vmatprep.mubr.msk.bf16.mxu1 %vm5991_vm0, %v8853_v1 }
  0x11   : > { %s9406_s30 = smov (!%p271_p3, %s270_s30), 515  ;;  %5160 = vmatpush3.bf16.msra.mxu1 %v5970_v40 }
  0x12   : > { %s4342_s10 = sshll.u32 %s9406_s30, 3  ;;  %5161 = vmatprep.subr.bf16.mxu1 %v8853_v1 }
  0x13   : > { %4894 = vmatpush3.bf16.msra.mxu0 %v5967_v2  ;;  %s6066_s13 = scalar_lea.vmem %s8782_s0, %s4342_s10  ;;  %s8132_s25 = scalar_lea.vmem %s8789_s7, %s4342_s10 }
  0x14   : > { %4895 = vmatprep.subr.bf16.mxu0 %v8853_v1  ;;  %v284_v5 = vld [vmem:[%s6066_s13] sm:$0xff]  ;;  %v285_v6 = vld [vmem:[%s6066_s13 + $0x8] sm:$0xff]  ;;  %v286_v8 = vld [vmem:[%s6066_s13 + $0x10] sm:$0xff] }
  0x15   : > { %v413_v7 = vpack.c.bf16 %v285_v6, %v284_v5  ;;  %v287_v9 = vld [vmem:[%s6066_s13 + $0x18] sm:$0xff]  ;;  %v288_v11 = vld [vmem:[%s6066_s13 + $0x20] sm:$0xff]  ;;  %v289_v12 = vld [vmem:[%s6066_s13 + $0x28] sm:$0xff]  ;;  %5162 = vmatpush3.bf16.msra.mxu1 %v5971_v42 }
  0x16   : > { %v414_v10 = vpack.c.bf16 %v287_v9, %v286_v8  ;;  %v415_v13 = vpack.c.bf16 %v289_v12, %v288_v11  ;;  %v290_v14 = vld [vmem:[%s6066_s13 + $0x30] sm:$0xff]  ;;  %v291_v15 = vld [vmem:[%s6066_s13 + $0x38] sm:$0xff]  ;;  %v292_v17 = vld [vmem:[%s6066_s13 + $0x40] sm:$0xff]  ;;  %5423 = vmatprep.subr.bf16.mxu1 %v8853_v1 }
  0x17   : > { %4896 = vmatpush3.bf16.msra.mxu0 %v5968_v3  ;;  %v416_v16 = vpack.c.bf16 %v291_v15, %v290_v14  ;;  %v293_v18 = vld [vmem:[%s6066_s13 + $0x48] sm:$0xff]  ;;  %v294_v20 = vld [vmem:[%s6066_s13 + $0x50] sm:$0xff]  ;;  %v295_v21 = vld [vmem:[%s6066_s13 + $0x58] sm:$0xff] }
  0x18   : > { %4897 = vmatprep.subr.bf16.mxu0 %v8853_v1  ;;  %v417_v19 = vpack.c.bf16 %v293_v18, %v292_v17  ;;  %v418_v22 = vpack.c.bf16 %v295_v21, %v294_v20  ;;  %v296_v23 = vld [vmem:[%s6066_s13 + $0x60] sm:$0xff]  ;;  %v297_v24 = vld [vmem:[%s6066_s13 + $0x68] sm:$0xff]  ;;  %v298_v26 = vld [vmem:[%s6066_s13 + $0x70] sm:$0xff] }
  0x19   : > { %v419_v25 = vpack.c.bf16 %v297_v24, %v296_v23  ;;  %v299_v27 = vld [vmem:[%s6066_s13 + $0x78] sm:$0xff]  ;;  %v300_v29 = vld [vmem:[%s6066_s13 + $0x80] sm:$0xff]  ;;  %v301_v30 = vld [vmem:[%s6066_s13 + $0x88] sm:$0xff] }
  0x1a   : > { %v420_v28 = vpack.c.bf16 %v299_v27, %v298_v26  ;;  %v421_v31 = vpack.c.bf16 %v301_v30, %v300_v29  ;;  %v302_v32 = vld [vmem:[%s6066_s13 + $0x90] sm:$0xff]  ;;  %v303_v33 = vld [vmem:[%s6066_s13 + $0x98] sm:$0xff]  ;;  %v304_v35 = vld [vmem:[%s6066_s13 + $0xa0] sm:$0xff] }
  0x1b   : > { %4898 = vmatpush3.bf16.msra.mxu0 %v5969_v4  ;;  %v422_v34 = vpack.c.bf16 %v303_v33, %v302_v32  ;;  %v305_v36 = vld [vmem:[%s6066_s13 + $0xa8] sm:$0xff]  ;;  %v306_v38 = vld [vmem:[%s6066_s13 + $0xb0] sm:$0xff]  ;;  %v307_v39 = vld [vmem:[%s6066_s13 + $0xb8] sm:$0xff] }
  0x1c   : > { %5691 = vmatprep.subr.bf16.mxu0 %v8853_v1  ;;  %v423_v37 = vpack.c.bf16 %v305_v36, %v304_v35  ;;  %v424_v41 = vpack.c.bf16 %v307_v39, %v306_v38  ;;  %v308_v43 = vld [vmem:[%s6066_s13 + $0xc0] sm:$0xff]  ;;  %v309_v44 = vld [vmem:[%s6066_s13 + $0xc8] sm:$0xff]  ;;  %v310_v46 = vld [vmem:[%s6066_s13 + $0xd0] sm:$0xff] }
  0x1d   : > { %v425_v45 = vpack.c.bf16 %v309_v44, %v308_v43  ;;  %v311_v47 = vld [vmem:[%s6066_s13 + $0xd8] sm:$0xff]  ;;  %v312_v49 = vld [vmem:[%s6066_s13 + $0xe0] sm:$0xff]  ;;  %v313_v50 = vld [vmem:[%s6066_s13 + $0xe8] sm:$0xff] }
  0x1e   : > { %4900 = vmatmul.mubr.msk.bf16.vlgmr.msra.gmra.mrb[0].mxu0 %vm517_vm1, %v413_v7  ;;  %v426_v48 = vpack.c.bf16 %v311_v47, %v310_v46  ;;  %v427_v51 = vpack.c.bf16 %v313_v50, %v312_v49  ;;  %v314_v52 = vld [vmem:[%s6066_s13 + $0xf0] sm:$0xff]  ;;  %v315_v53 = vld [vmem:[%s6066_s13 + $0xf8] sm:$0xff]  ;;  %v316_v55 = vld [vmem:[%s6066_s13 + $0x100] sm:$0xff] }
  0x1f   : > { %4903 = vmatprep.mubr.msk.bf16.mxu0 %vm5991_vm0, %v8853_v1  ;;  %v428_v54 = vpack.c.bf16 %v315_v53, %v314_v52  ;;  %v317_v56 = vld [vmem:[%s6066_s13 + $0x108] sm:$0xff]  ;;  %v318_v58 = vld [vmem:[%s6066_s13 + $0x110] sm:$0xff]  ;;  %v319_v59 = vld [vmem:[%s6066_s13 + $0x118] sm:$0xff] }
  0x20   : > { %v429_v57 = vpack.c.bf16 %v317_v56, %v316_v55  ;;  %v430_v60 = vpack.c.bf16 %v319_v59, %v318_v58  ;;  %v320_v61 = vld [vmem:[%s6066_s13 + $0x120] sm:$0xff]  ;;  %v321_v62 = vld [vmem:[%s6066_s13 + $0x128] sm:$0xff]  ;;  %v322_v0 = vld [vmem:[%s6066_s13 + $0x130] sm:$0xff] }
  0x21   : > { %v431_v63 = vpack.c.bf16 %v321_v62, %v320_v61  ;;  %v323_v2 = vld [vmem:[%s6066_s13 + $0x138] sm:$0xff]  ;;  %v324_v4 = vld [vmem:[%s6066_s13 + $0x140] sm:$0xff]  ;;  %v325_v5 = vld [vmem:[%s6066_s13 + $0x148] sm:$0xff] }
  0x22   : > { %v432_v3 = vpack.c.bf16 %v323_v2, %v322_v0  ;;  %v433_v6 = vpack.c.bf16 %v325_v5, %v324_v4  ;;  %v326_v7 = vld [vmem:[%s6066_s13 + $0x150] sm:$0xff]  ;;  %v327_v8 = vld [vmem:[%s6066_s13 + $0x158] sm:$0xff]  ;;  %v329_v11 = vld [vmem:[%s6066_s13 + $0x168] sm:$0xff] }
  0x23   : > { %v434_v9 = vpack.c.bf16 %v327_v8, %v326_v7  ;;  %v331_v14 = vld [vmem:[%s6066_s13 + $0x178] sm:$0xff]  ;;  %v333_v17 = vld [vmem:[%s6066_s13 + $0x188] sm:$0xff]  ;;  %v338_v26 = vld [vmem:[%s6066_s13 + $0x1b0] sm:$0xff] }
  0x24   : > { %v335_v20 = vld [vmem:[%s6066_s13 + $0x198] sm:$0xff]  ;;  %v337_v23 = vld [vmem:[%s6066_s13 + $0x1a8] sm:$0xff]  ;;  %v340_v38 = vld [vmem:[%s6066_s13 + $0x1c0] sm:$0xff] }
  0x25   : > { %v339_v27 = vld [vmem:[%s6066_s13 + $0x1b8] sm:$0xff]  ;;  %v341_v39 = vld [vmem:[%s6066_s13 + $0x1c8] sm:$0xff]  ;;  %v342_v50 = vld [vmem:[%s6066_s13 + $0x1d0] sm:$0xff] }
  0x26   : > { %4904 = vmatmul.mubr.msk.bf16.gmra.mrb[4].mxu0 %vm517_vm1, %v414_v10  ;;  %v328_v10 = vld [vmem:[%s6066_s13 + $0x160] sm:$0xff]  ;;  %v441_v44 = vpack.c.bf16 %v341_v39, %v340_v38  ;;  %v5973_v53 = vld [vmem:[%s8787_s5 + $0x8] sm:$0xff]  }
  0x27   : > { %4907 = vmatprep.mubr.msk.bf16.mxu0 %vm5991_vm0, %v8853_v1  ;;  %v435_v12 = vpack.c.bf16 %v329_v11, %v328_v10  ;;  %v345_v0 = vld [vmem:[%s6066_s13 + $0x1e8] sm:$0xff] }
  0x2e   : > { %4908 = vmatmul.mubr.msk.bf16.gmra.mrb[8].mxu0 %vm517_vm1, %v415_v13  ;;  %v330_v13 = vld [vmem:[%s6066_s13 + $0x170] sm:$0xff] }
  0x2f   : > { %4911 = vmatprep.mubr.msk.bf16.mxu0 %vm5991_vm0, %v8853_v1  ;;  %v436_v15 = vpack.c.bf16 %v331_v14, %v330_v13  ;;  %v347_v13 = vld [vmem:[%s6066_s13 + $0x1f8] sm:$0xff] }
  0x36   : > { %4912 = vmatmul.mubr.msk.bf16.gmra.mrb[12].mxu0 %vm517_vm1, %v416_v16  ;;  %v332_v16 = vld [vmem:[%s6066_s13 + $0x180] sm:$0xff] }
  0x37   : > { %4915 = vmatprep.mubr.msk.bf16.mxu0 %vm5991_vm0, %v8853_v1  ;;  %v437_v18 = vpack.c.bf16 %v333_v17, %v332_v16 }
  0x3e   : > { %4916 = vmatmul.mubr.msk.bf16.gmra.mrb[16].mxu0 %vm517_vm1, %v417_v19  ;;  %v334_v19 = vld [vmem:[%s6066_s13 + $0x190] sm:$0xff] }
  0x3f   : > { %4919 = vmatprep.mubr.msk.bf16.mxu0 %vm5991_vm0, %v8853_v1  ;;  %v438_v21 = vpack.c.bf16 %v335_v20, %v334_v19 }
  0x46   : > { %4920 = vmatmul.mubr.msk.bf16.gmra.mrb[20].mxu0 %vm517_vm1, %v418_v22  ;;  %v336_v22 = vld [vmem:[%s6066_s13 + $0x1a0] sm:$0xff] }
  0x47   : > { %4923 = vmatprep.mubr.msk.bf16.mxu0 %vm5991_vm0, %v8853_v1  ;;  %v439_v24 = vpack.c.bf16 %v337_v23, %v336_v22 }
  0x4e   : > { %4924 = vmatmul.mubr.msk.bf16.gmra.mrb[24].mxu0 %vm517_vm1, %v419_v25  ;;  %v6217_v25 = vld [vmem:[%s8784_s2] ss:$0 sm:$0xff] }
  0x4f   : > { %4927 = vmatprep.mubr.msk.bf16.mxu0 %vm5991_vm0, %v8853_v1 }
  0x56   : > { %4928 = vmatmul.mubr.msk.bf16.gmra.mrb[28].mxu0 %vm517_vm1, %v420_v28 }
  0x57   : > { %4931 = vmatprep.mubr.msk.bf16.mxu0 %vm5991_vm0, %v8853_v1 }
  0x5e   : > { %4932 = vmatmul.mubr.msk.bf16.gmra.mrb[32].mxu0 %vm517_vm1, %v421_v31  ;;  %v440_v31 = vpack.c.bf16 %v339_v27, %v338_v26  ;;  %v349_v26 = vld [vmem:[%s6066_s13 + $0x208] sm:$0xff] }
  0x5f   : > { %4935 = vmatprep.mubr.msk.bf16.mxu0 %vm5991_vm0, %v8853_v1 }
  0x66   : > { %4936 = vmatmul.mubr.msk.bf16.gmra.mrb[36].mxu0 %vm517_vm1, %v422_v34 }
  0x67   : > { %4939 = vmatprep.mubr.msk.bf16.mxu0 %vm5991_vm0, %v8853_v1 }
  0x6e   : > { %4940 = vmatmul.mubr.msk.bf16.gmra.mrb[40].mxu0 %vm517_vm1, %v423_v37  ;;  %v5972_v37 = vld [vmem:[%s8787_s5] sm:$0xff]  }
  0x6f   : > { %4943 = vmatprep.mubr.msk.bf16.mxu0 %vm5991_vm0, %v8853_v1 }
  0x76   : > { %4944 = vmatmul.mubr.msk.bf16.gmra.mrb[44].mxu0 %vm517_vm1, %v424_v41 }
  0x77   : > { %4947 = vmatprep.mubr.msk.bf16.mxu0 %vm5991_vm0, %v8853_v1 }
  0x7e   : > { %4948 = vmatmul.mubr.msk.bf16.gmra.mrb[48].mxu0 %vm517_vm1, %v425_v45 }
  0x7f   : > { %4951 = vmatprep.mubr.msk.bf16.mxu0 %vm5991_vm0, %v8853_v1 }
  0x86   : > { %4952 = vmatmul.mubr.msk.bf16.gmra.mrb[52].mxu0 %vm517_vm1, %v426_v48 }
  0x87   : > { %4955 = vmatprep.mubr.msk.bf16.mxu0 %vm5991_vm0, %v8853_v1 }
  0x8e   : > { %4956 = vmatmul.mubr.msk.bf16.gmra.mrb[56].mxu0 %vm517_vm1, %v427_v51  ;;  %v343_v51 = vld [vmem:[%s6066_s13 + $0x1d8] sm:$0xff] }
  0x8f   : > { %4959 = vmatprep.mubr.msk.bf16.mxu0 %vm5991_vm0, %v8853_v1 }
  0x96   : > { %4960 = vmatmul.mubr.msk.bf16.gmra.mrb[60].mxu0 %vm517_vm1, %v428_v54 }
  0x97   : > { %4963 = vmatprep.mubr.msk.bf16.mxu0 %vm5991_vm0, %v8853_v1 }
  0x9e   : > { %4964 = vmatmul.mubr.msk.bf16.gmra.mrb[64].mxu0 %vm517_vm1, %v429_v57  ;;  %v442_v57 = vpack.c.bf16 %v343_v51, %v342_v50 }
  0x9f   : > { %4967 = vmatprep.mubr.msk.bf16.mxu0 %vm5991_vm0, %v8853_v1 }
  0xa6   : > { %4968 = vmatmul.mubr.msk.bf16.gmra.mrb[68].mxu0 %vm517_vm1, %v430_v60 }
  0xa7   : > { %4971 = vmatprep.mubr.msk.bf16.mxu0 %vm5991_vm0, %v8853_v1 }
  0xae   : > { %4972 = vmatmul.mubr.msk.bf16.gmra.mrb[72].mxu0 %vm517_vm1, %v431_v63  ;;  %v344_v63 = vld [vmem:[%s6066_s13 + $0x1e0] sm:$0xff] }
  0xaf   : > { %4975 = vmatprep.mubr.msk.bf16.mxu0 %vm5991_vm0, %v8853_v1 }
  0xb6   : > { %4976 = vmatmul.mubr.msk.bf16.gmra.mrb[76].mxu0 %vm517_vm1, %v432_v3 }
  0xb7   : > { %4979 = vmatprep.mubr.msk.bf16.mxu0 %vm5991_vm0, %v8853_v1 }
  0xbe   : > { %4980 = vmatmul.mubr.msk.bf16.gmra.mrb[80].mxu0 %vm517_vm1, %v433_v6  ;;  %v443_v6 = vpack.c.bf16 %v345_v0, %v344_v63 }
  0xbf   : > { %4983 = vmatprep.mubr.msk.bf16.mxu0 %vm5991_vm0, %v8853_v1 }
  0xc6   : > { %4984 = vmatmul.mubr.msk.bf16.gmra.mrb[84].mxu0 %vm517_vm1, %v434_v9 }
  0xc7   : > { %4987 = vmatprep.mubr.msk.bf16.mxu0 %vm5991_vm0, %v8853_v1 }
  0xce   : > { %4988 = vmatmul.mubr.msk.bf16.gmra.mrb[88].mxu0 %vm517_vm1, %v435_v12  ;;  %v346_v12 = vld [vmem:[%s6066_s13 + $0x1f0] sm:$0xff] }
  0xcf   : > { %4991 = vmatprep.mubr.msk.bf16.mxu0 %vm5991_vm0, %v8853_v1 }
  0xd6   : > { %4992 = vmatmul.mubr.msk.bf16.gmra.mrb[92].mxu0 %vm517_vm1, %v436_v15 }
  0xd7   : > { %4995 = vmatprep.mubr.msk.bf16.mxu0 %vm5991_vm0, %v8853_v1 }
  0xde   : > { %4996 = vmatmul.mubr.msk.bf16.gmra.mrb[96].mxu0 %vm517_vm1, %v437_v18  ;;  %v444_v18 = vpack.c.bf16 %v347_v13, %v346_v12 }
  0xdf   : > { %4999 = vmatprep.mubr.msk.bf16.mxu0 %vm5991_vm0, %v8853_v1 }
  0xe6   : > { %5000 = vmatmul.mubr.msk.bf16.gmra.mrb[100].mxu0 %vm517_vm1, %v438_v21 }
  0xe7   : > { %5003 = vmatprep.mubr.msk.bf16.mxu0 %vm5991_vm0, %v8853_v1 }
  0xee   : > { %5004 = vmatmul.mubr.msk.bf16.gmra.mrb[104].mxu0 %vm517_vm1, %v439_v24  ;;  %v348_v24 = vld [vmem:[%s6066_s13 + $0x200] sm:$0xff] }
  0xef   : > { %5007 = vmatprep.mubr.msk.bf16.mxu0 %vm5991_vm0, %v8853_v1 }
  0xf1   : > { %v747_v28 = vpop.f32.mrb[0].mxu0 }
  0xf2   : > { %v6224_v29 = vadd.f32 %v6217_v25, %v747_v28  ;;  %v4901_v30 = vpop.f32.mrb[1].mxu0 }
  0xf3   : > { %v750_v32 = vpop.f32.mrb[2].mxu0 }
  0xf4   : > { %v6227_v33 = vadd.f32 %v6217_v25, %v750_v32  ;;  %v4902_v34 = vpop.f32.mrb[3].mxu0  ;;  %v8837_v35 = vmax.f32 %v6224_v29, 0.0  ;;  %v445_v32 = vpack.c.bf16 %v349_v26, %v348_v24 }
  0xf6   : > { %v8834_v36 = vmax.f32 %v6227_v33, 0.0  ;;  %5008 = vmatmul.mubr.msk.bf16.gmra.mrb[108].mxu0 %vm517_vm1, %v440_v31 }
  0xf7   : > { %5011 = vmatprep.mubr.msk.bf16.mxu0 %vm5991_vm0, %v8853_v1 }
  0xf8   : > { %v1394_v40 = vpack.c.bf16 %v8834_v36, %v8837_v35 }
  0xf9   : > { %v755_v41 = vpop.f32.mrb[4].mxu0 }
  0xfa   : > { %v6244_v42 = vadd.f32 %v6217_v25, %v755_v41  ;;  %v4905_v43 = vpop.f32.mrb[5].mxu0  ;;  %5164 = vmatmul.mubr.msk.bf16.vlgmr.msra.gmra.mrb[0].mxu1 %vm1482_vm2, %v1394_v40  ;;  %v350_v41 = vld [vmem:[%s6066_s13 + $0x210] sm:$0xff] }
  0xfb   : > { %5424 = vmatpush3.bf16.msra.mxu1 %v5972_v37  ;;  %v758_v45 = vpop.f32.mrb[6].mxu0  ;;  %5167 = vmatprep.mubr.msk.bf16.mxu1 %vm5991_vm0, %v8853_v1  ;;  %v351_v43 = vld [vmem:[%s6066_s13 + $0x218] sm:$0xff] }
  0xfc   : > { %v6250_v46 = vadd.f32 %v6217_v25, %v758_v45  ;;  %v4906_v47 = vpop.f32.mrb[7].mxu0  ;;  %5425 = vmatprep.subr.bf16.mxu1 %v8853_v1  ;;  %v8833_v48 = vmax.f32 %v6244_v42, 0.0  ;;  %v446_v51 = vpack.c.bf16 %v351_v43, %v350_v41 }
  0xfe   : > { %v8830_v49 = vmax.f32 %v6250_v46, 0.0  ;;  %5012 = vmatmul.mubr.msk.bf16.gmra.mrb[112].mxu0 %vm517_vm1, %v441_v44 }
  0xff   : > { %5015 = vmatprep.mubr.msk.bf16.mxu0 %vm5991_vm0, %v8853_v1  ;;  %5426 = vmatpush3.bf16.msra.mxu1 %v5973_v53 }
 0x100   : > { %v1395_v52 = vpack.c.bf16 %v8830_v49, %v8833_v48  ;;  %5427 = vmatprep.subr.bf16.mxu1 %v8853_v1 }
 0x101   : > { %v763_v54 = vpop.f32.mrb[8].mxu0 }
 0x102   : > { %v6268_v55 = vadd.f32 %v6217_v25, %v763_v54  ;;  %v4909_v56 = vpop.f32.mrb[9].mxu0  ;;  %5168 = vmatmul.mubr.msk.bf16.gmra.mrb[4].mxu1 %vm1482_vm2, %v1395_v52 }
 0x103   : > { %v766_v58 = vpop.f32.mrb[10].mxu0  ;;  %5171 = vmatprep.mubr.msk.bf16.mxu1 %vm5991_vm0, %v8853_v1 }
 0x104   : > { %v6274_v59 = vadd.f32 %v6217_v25, %v766_v58  ;;  %v4910_v60 = vpop.f32.mrb[11].mxu0  ;;  %v8829_v61 = vmax.f32 %v6268_v55, 0.0  ;;  %v352_v58 = vld [vmem:[%s6066_s13 + $0x220] sm:$0xff] }
 0x105   : > { %v353_v60 = vld [vmem:[%s6066_s13 + $0x228] sm:$0xff] }
 0x106   : > { %v8826_v62 = vmax.f32 %v6274_v59, 0.0  ;;  %5016 = vmatmul.mubr.msk.bf16.gmra.mrb[116].mxu0 %vm517_vm1, %v442_v57 }
 0x107   : > { %5019 = vmatprep.mubr.msk.bf16.mxu0 %vm5991_vm0, %v8853_v1 }
 0x108   : > { %v1396_v2 = vpack.c.bf16 %v8826_v62, %v8829_v61 }
 0x109   : > { %v771_v3 = vpop.f32.mrb[12].mxu0 }
 0x10a   : > { %v6289_v4 = vadd.f32 %v6217_v25, %v771_v3  ;;  %v4913_v5 = vpop.f32.mrb[13].mxu0  ;;  %5172 = vmatmul.mubr.msk.bf16.gmra.mrb[8].mxu1 %vm1482_vm2, %v1396_v2 }
 0x10b   : > { %v774_v7 = vpop.f32.mrb[14].mxu0  ;;  %5175 = vmatprep.mubr.msk.bf16.mxu1 %vm5991_vm0, %v8853_v1  ;;  %v447_v5 = vpack.c.bf16 %v353_v60, %v352_v58 }
 0x10c   : > { %v6295_v8 = vadd.f32 %v6217_v25, %v774_v7  ;;  %v4914_v9 = vpop.f32.mrb[15].mxu0  ;;  %v8825_v10 = vmax.f32 %v6289_v4, 0.0 }
 0x10e   : > { %v8822_v11 = vmax.f32 %v6295_v8, 0.0  ;;  %5020 = vmatmul.mubr.msk.bf16.gmra.mrb[120].mxu0 %vm517_vm1, %v443_v6 }
 0x10f   : > { %5023 = vmatprep.mubr.msk.bf16.mxu0 %vm5991_vm0, %v8853_v1 }
 0x110   : > { %v1397_v14 = vpack.c.bf16 %v8822_v11, %v8825_v10 }
 0x111   : > { %v779_v15 = vpop.f32.mrb[16].mxu0 }
 0x112   : > { %v6309_v16 = vadd.f32 %v6217_v25, %v779_v15  ;;  %v4917_v17 = vpop.f32.mrb[17].mxu0  ;;  %5176 = vmatmul.mubr.msk.bf16.gmra.mrb[12].mxu1 %vm1482_vm2, %v1397_v14  ;;  %v354_v14 = vld [vmem:[%s6066_s13 + $0x230] sm:$0xff]  ;;  %v355_v15 = vld [vmem:[%s6066_s13 + $0x238] sm:$0xff] }
 0x113   : > { %v782_v19 = vpop.f32.mrb[18].mxu0  ;;  %5179 = vmatprep.mubr.msk.bf16.mxu1 %vm5991_vm0, %v8853_v1  ;;  %v448_v24 = vpack.c.bf16 %v355_v15, %v354_v14 }
 0x114   : > { %v6315_v20 = vadd.f32 %v6217_v25, %v782_v19  ;;  %v4918_v21 = vpop.f32.mrb[19].mxu0  ;;  %v8821_v22 = vmax.f32 %v6309_v16, 0.0 }
 0x116   : > { %v8818_v23 = vmax.f32 %v6315_v20, 0.0  ;;  %5024 = vmatmul.mubr.msk.bf16.gmra.mrb[124].mxu0 %vm517_vm1, %v444_v18 }
 0x117   : > { %5027 = vmatprep.mubr.msk.bf16.mxu0 %vm5991_vm0, %v8853_v1 }
 0x118   : > { %v1398_v27 = vpack.c.bf16 %v8818_v23, %v8821_v22 }
 0x119   : > { %v787_v28 = vpop.f32.mrb[20].mxu0 }
 0x11a   : > { %v6329_v30 = vadd.f32 %v6217_v25, %v787_v28  ;;  %v4921_v31 = vpop.f32.mrb[21].mxu0  ;;  %5180 = vmatmul.mubr.msk.bf16.gmra.mrb[16].mxu1 %vm1482_vm2, %v1398_v27 }
 0x11b   : > { %v790_v34 = vpop.f32.mrb[22].mxu0  ;;  %5183 = vmatprep.mubr.msk.bf16.mxu1 %vm5991_vm0, %v8853_v1 }
 0x11c   : > { %v6335_v37 = vadd.f32 %v6217_v25, %v790_v34  ;;  %v4922_v38 = vpop.f32.mrb[23].mxu0  ;;  %v8817_v39 = vmax.f32 %v6329_v30, 0.0  ;;  %v356_v34 = vld [vmem:[%s6066_s13 + $0x240] sm:$0xff] }
 0x11d   : > { %v357_v38 = vld [vmem:[%s6066_s13 + $0x248] sm:$0xff] }
 0x11e   : > { %v8814_v40 = vmax.f32 %v6335_v37, 0.0  ;;  %5028 = vmatmul.mubr.msk.bf16.gmra.mrb[128].mxu0 %vm517_vm1, %v445_v32 }
 0x11f   : > { %5031 = vmatprep.mubr.msk.bf16.mxu0 %vm5991_vm0, %v8853_v1 }
 0x120   : > { %v1399_v44 = vpack.c.bf16 %v8814_v40, %v8817_v39 }
 0x121   : > { %v795_v45 = vpop.f32.mrb[24].mxu0 }
 0x122   : > { %v6349_v47 = vadd.f32 %v6217_v25, %v795_v45  ;;  %v4925_v50 = vpop.f32.mrb[25].mxu0  ;;  %5184 = vmatmul.mubr.msk.bf16.gmra.mrb[20].mxu1 %vm1482_vm2, %v1399_v44 }
 0x123   : > { %v798_v52 = vpop.f32.mrb[26].mxu0  ;;  %5187 = vmatprep.mubr.msk.bf16.mxu1 %vm5991_vm0, %v8853_v1  ;;  %v449_v50 = vpack.c.bf16 %v357_v38, %v356_v34 }
 0x124   : > { %9036 = vst [vmem:[#allocation2_spill] sm:$0xff] %v6349_v47  ;;  %v6355_v53 = vadd.f32 %v6217_v25, %v798_v52  ;;  %v4926_v54 = vpop.f32.mrb[27].mxu0  ;;  %v8813_v56 = vmax.f32 %v6349_v47, 0.0 }
 0x126   : > { %9037 = vst [vmem:[#allocation3_spill] sm:$0xff] %v6355_v53  ;;  %v8812_v57 = vmax.f32 %v6355_v53, 0.0  ;;  %5032 = vmatmul.mubr.msk.bf16.gmra.mrb[132].mxu0 %vm517_vm1, %v446_v51 }
 0x127   : > { %5035 = vmatprep.mubr.msk.bf16.mxu0 %vm5991_vm0, %v8853_v1 }
 0x128   : > { %v1400_v63 = vpack.c.bf16 %v8812_v57, %v8813_v56 }
 0x129   : > { %v803_v0 = vpop.f32.mrb[28].mxu0 }
 0x12a   : > { %v6369_v2 = vadd.f32 %v6217_v25, %v803_v0  ;;  %v4929_v3 = vpop.f32.mrb[29].mxu0  ;;  %5188 = vmatmul.mubr.msk.bf16.gmra.mrb[24].mxu1 %vm1482_vm2, %v1400_v63  ;;  %v358_v63 = vld [vmem:[%s6066_s13 + $0x250] sm:$0xff]  ;;  %v359_v0 = vld [vmem:[%s6066_s13 + $0x258] sm:$0xff] }
 0x12b   : > { %v806_v6 = vpop.f32.mrb[30].mxu0  ;;  %5191 = vmatprep.mubr.msk.bf16.mxu1 %vm5991_vm0, %v8853_v1  ;;  %v450_v14 = vpack.c.bf16 %v359_v0, %v358_v63 }
 0x12c   : > { %9038 = vst [vmem:[#allocation4_spill] sm:$0xff] %v6369_v2  ;;  %v6375_v7 = vadd.f32 %v6217_v25, %v806_v6  ;;  %v4930_v9 = vpop.f32.mrb[31].mxu0  ;;  %v8811_v12 = vmax.f32 %v6369_v2, 0.0 }
 0x12e   : > { %9039 = vst [vmem:[#allocation5_spill] sm:$0xff] %v6375_v7  ;;  %v8806_v13 = vmax.f32 %v6375_v7, 0.0  ;;  %5036 = vmatmul.mubr.msk.bf16.gmra.mrb[136].mxu0 %vm517_vm1, %v447_v5 }
 0x12f   : > { %5039 = vmatprep.mubr.msk.bf16.mxu0 %vm5991_vm0, %v8853_v1 }
 0x130   : > { %v1401_v17 = vpack.c.bf16 %v8806_v13, %v8811_v12 }
 0x131   : > { %v811_v18 = vpop.f32.mrb[32].mxu0 }
 0x132   : > { %v6389_v19 = vadd.f32 %v6217_v25, %v811_v18  ;;  %v4933_v21 = vpop.f32.mrb[33].mxu0  ;;  %5192 = vmatmul.mubr.msk.bf16.gmra.mrb[28].mxu1 %vm1482_vm2, %v1401_v17 }
 0x133   : > { %v814_v26 = vpop.f32.mrb[34].mxu0  ;;  %5195 = vmatprep.mubr.msk.bf16.mxu1 %vm5991_vm0, %v8853_v1 }
 0x134   : > { %9040 = vst [vmem:[#allocation6_spill] sm:$0xff] %v6389_v19  ;;  %v6395_v27 = vadd.f32 %v6217_v25, %v814_v26  ;;  %v4934_v28 = vpop.f32.mrb[35].mxu0  ;;  %v8805_v31 = vmax.f32 %v6389_v19, 0.0  ;;  %v360_v26 = vld [vmem:[%s6066_s13 + $0x260] sm:$0xff] }
 0x135   : > { %v361_v28 = vld [vmem:[%s6066_s13 + $0x268] sm:$0xff] }
 0x136   : > { %9041 = vst [vmem:[#allocation7_spill] sm:$0xff] %v6395_v27  ;;  %v8802_v32 = vmax.f32 %v6395_v27, 0.0  ;;  %5040 = vmatmul.mubr.msk.bf16.gmra.mrb[140].mxu0 %vm517_vm1, %v448_v24 }
 0x137   : > { %5043 = vmatprep.mubr.msk.bf16.mxu0 %vm5991_vm0, %v8853_v1 }
 0x138   : > { %v1402_v41 = vpack.c.bf16 %v8802_v32, %v8805_v31 }
 0x139   : > { %v819_v43 = vpop.f32.mrb[36].mxu0 }
 0x13a   : > { %v6409_v44 = vadd.f32 %v6217_v25, %v819_v43  ;;  %v4937_v45 = vpop.f32.mrb[37].mxu0  ;;  %5196 = vmatmul.mubr.msk.bf16.gmra.mrb[32].mxu1 %vm1482_vm2, %v1402_v41 }
 0x13b   : > { %v822_v51 = vpop.f32.mrb[38].mxu0  ;;  %5199 = vmatprep.mubr.msk.bf16.mxu1 %vm5991_vm0, %v8853_v1  ;;  %v451_v45 = vpack.c.bf16 %v361_v28, %v360_v26 }
 0x13c   : > { %9042 = vst [vmem:[#allocation8_spill] sm:$0xff] %v6409_v44  ;;  %v6415_v52 = vadd.f32 %v6217_v25, %v822_v51  ;;  %v4938_v54 = vpop.f32.mrb[39].mxu0  ;;  %v8801_v58 = vmax.f32 %v6409_v44, 0.0 }
 0x13e   : > { %9043 = vst [vmem:[#allocation9_spill] sm:$0xff] %v6415_v52  ;;  %v8798_v60 = vmax.f32 %v6415_v52, 0.0  ;;  %5044 = vmatmul.mubr.msk.bf16.gmra.mrb[144].mxu0 %vm517_vm1, %v449_v50 }
 0x13f   : > { %5047 = vmatprep.mubr.msk.bf16.mxu0 %vm5991_vm0, %v8853_v1 }
 0x140   : > { %v1403_v3 = vpack.c.bf16 %v8798_v60, %v8801_v58 }
 0x141   : > { %v827_v5 = vpop.f32.mrb[40].mxu0 }
 0x142   : > { %v6429_v6 = vadd.f32 %v6217_v25, %v827_v5  ;;  %v4941_v9 = vpop.f32.mrb[41].mxu0  ;;  %5200 = vmatmul.mubr.msk.bf16.gmra.mrb[36].mxu1 %vm1482_vm2, %v1403_v3  ;;  %v362_v3 = vld [vmem:[%s6066_s13 + $0x270] sm:$0xff]  ;;  %v363_v5 = vld [vmem:[%s6066_s13 + $0x278] sm:$0xff] }
 0x143   : > { %v830_v15 = vpop.f32.mrb[42].mxu0  ;;  %5203 = vmatprep.mubr.msk.bf16.mxu1 %vm5991_vm0, %v8853_v1  ;;  %v452_v26 = vpack.c.bf16 %v363_v5, %v362_v3 }
 0x144   : > { %9044 = vst [vmem:[#allocation10_spill] sm:$0xff] %v6429_v6  ;;  %v6435_v17 = vadd.f32 %v6217_v25, %v830_v15  ;;  %v4942_v18 = vpop.f32.mrb[43].mxu0  ;;  %v8797_v21 = vmax.f32 %v6429_v6, 0.0 }
 0x146   : > { %9045 = vst [vmem:[#allocation11_spill] sm:$0xff] %v6435_v17  ;;  %v8794_v24 = vmax.f32 %v6435_v17, 0.0  ;;  %5048 = vmatmul.mubr.msk.bf16.gmra.mrb[148].mxu0 %vm517_vm1, %v450_v14 }
 0x147   : > { %5051 = vmatprep.mubr.msk.bf16.mxu0 %vm5991_vm0, %v8853_v1 }
 0x148   : > { %v1404_v34 = vpack.c.bf16 %v8794_v24, %v8797_v21 }
 0x149   : > { %v835_v38 = vpop.f32.mrb[44].mxu0 }
 0x14a   : > { %v6449_v41 = vadd.f32 %v6217_v25, %v835_v38  ;;  %v4945_v43 = vpop.f32.mrb[45].mxu0  ;;  %5204 = vmatmul.mubr.msk.bf16.gmra.mrb[40].mxu1 %vm1482_vm2, %v1404_v34 }
 0x14b   : > { %v838_v50 = vpop.f32.mrb[46].mxu0  ;;  %5207 = vmatprep.mubr.msk.bf16.mxu1 %vm5991_vm0, %v8853_v1 }
 0x14c   : > { %9046 = vst [vmem:[#allocation12_spill] sm:$0xff] %v6449_v41  ;;  %v6455_v51 = vadd.f32 %v6217_v25, %v838_v50  ;;  %v4946_v54 = vpop.f32.mrb[47].mxu0  ;;  %v8793_v63 = vmax.f32 %v6449_v41, 0.0  ;;  %v364_v50 = vld [vmem:[%s6066_s13 + $0x280] sm:$0xff] }
 0x14d   : > { %v365_v54 = vld [vmem:[%s6066_s13 + $0x288] sm:$0xff] }
 0x14e   : > { %9047 = vst [vmem:[#allocation13_spill] sm:$0xff] %v6455_v51  ;;  %v8792_v0 = vmax.f32 %v6455_v51, 0.0  ;;  %5052 = vmatmul.mubr.msk.bf16.gmra.mrb[152].mxu0 %vm517_vm1, %v451_v45 }
 0x14f   : > { %5055 = vmatprep.mubr.msk.bf16.mxu0 %vm5991_vm0, %v8853_v1 }
 0x150   : > { %v1405_v9 = vpack.c.bf16 %v8792_v0, %v8793_v63 }
 0x151   : > { %v843_v14 = vpop.f32.mrb[48].mxu0 }
 0x152   : > { %v6469_v15 = vadd.f32 %v6217_v25, %v843_v14  ;;  %v4949_v18 = vpop.f32.mrb[49].mxu0  ;;  %5208 = vmatmul.mubr.msk.bf16.gmra.mrb[44].mxu1 %vm1482_vm2, %v1405_v9  ;;  %v5992_v9 = vmov 1065369472  }
 0x153   : > { %v846_v28 = vpop.f32.mrb[50].mxu0  ;;  %5211 = vmatprep.mubr.msk.bf16.mxu1 %vm5991_vm0, %v8853_v1  ;;  %5692 = vmatpush3.bf16.msra.mxu0 %v5992_v9 }
 0x154   : > { %9048 = vst [vmem:[#allocation14_spill] sm:$0xff] %v6469_v15  ;;  %v6475_v34 = vadd.f32 %v6217_v25, %v846_v28  ;;  %v4950_v38 = vpop.f32.mrb[51].mxu0  ;;  %v8791_v43 = vmax.f32 %v6469_v15, 0.0  ;;  %5693 = vmatprep.subr.bf16.mxu0 %v8853_v1 }
 0x156   : > { %9049 = vst [vmem:[#allocation15_spill] sm:$0xff] %v6475_v34  ;;  %v8790_v45 = vmax.f32 %v6475_v34, 0.0  ;;  %5056 = vmatmul.mubr.msk.bf16.gmra.mrb[156].mxu0 %vm517_vm1, %v452_v26  ;;  %v453_v26 = vpack.c.bf16 %v365_v54, %v364_v50  ;;  %v366_v50 = vld [vmem:[%s6066_s13 + $0x290] sm:$0xff]  ;;  %v367_v54 = vld [vmem:[%s6066_s13 + $0x298] sm:$0xff] }
 0x157   : > { %5059 = vmatprep.mubr.msk.bf16.mxu0 %vm5991_vm0, %v8853_v1  ;;  %5694 = vmatpush3.bf16.msra.mxu0 %v5992_v9 }
 0x158   : > { %v1406_v3 = vpack.c.bf16 %v8790_v45, %v8791_v43 }
 0x159   : > { %v851_v5 = vpop.f32.mrb[52].mxu0 }
 0x15a   : > { %v6489_v14 = vadd.f32 %v6217_v25, %v851_v5  ;;  %v4953_v18 = vpop.f32.mrb[53].mxu0  ;;  %5212 = vmatmul.mubr.msk.bf16.gmra.mrb[48].mxu1 %vm1482_vm2, %v1406_v3 }
 0x15b   : > { %v854_v28 = vpop.f32.mrb[54].mxu0  ;;  %5215 = vmatprep.mubr.msk.bf16.mxu1 %vm5991_vm0, %v8853_v1 }
 0x15c   : > { %9050 = vst [vmem:[#allocation16_spill] sm:$0xff] %v6489_v14  ;;  %v6496_v38 = vadd.f32 %v6217_v25, %v854_v28  ;;  %v4954_v45 = vpop.f32.mrb[55].mxu0  ;;  %v8796_v43 = vmax.f32 %v6489_v14, 0.0 }
 0x15e   : > { %9051 = vst [vmem:[#allocation17_spill] sm:$0xff] %v6496_v38  ;;  %v8795_v5 = vmax.f32 %v6496_v38, 0.0  ;;  %5060 = vmatmul.mubr.msk.bf16.gmra.mrb[160].mxu0 %vm517_vm1, %v453_v26  ;;  %v454_v26 = vpack.c.bf16 %v367_v54, %v366_v50  ;;  %v369_v50 = vld [vmem:[%s6066_s13 + $0x2a8] sm:$0xff] }
 0x15f   : > { %5063 = vmatprep.mubr.msk.bf16.mxu0 %vm5991_vm0, %v8853_v1 }
 0x160   : > { %v1407_v3 = vpack.c.bf16 %v8795_v5, %v8796_v43 }
 0x161   : > { %v859_v45 = vpop.f32.mrb[56].mxu0 }
 0x162   : > { %v6510_v9 = vadd.f32 %v6217_v25, %v859_v45  ;;  %v4957_v18 = vpop.f32.mrb[57].mxu0  ;;  %5216 = vmatmul.mubr.msk.bf16.gmra.mrb[52].mxu1 %vm1482_vm2, %v1407_v3  ;;  %v368_v45 = vld [vmem:[%s6066_s13 + $0x2a0] sm:$0xff] }
 0x163   : > { %v862_v28 = vpop.f32.mrb[58].mxu0  ;;  %5219 = vmatprep.mubr.msk.bf16.mxu1 %vm5991_vm0, %v8853_v1 }
 0x164   : > { %9052 = vst [vmem:[#allocation18_spill] sm:$0xff] %v6510_v9  ;;  %v6516_v0 = vadd.f32 %v6217_v25, %v862_v28  ;;  %v4958_v63 = vpop.f32.mrb[59].mxu0  ;;  %v8800_v24 = vmax.f32 %v6510_v9, 0.0 }
 0x166   : > { %9053 = vst [vmem:[#allocation19_spill] sm:$0xff] %v6516_v0  ;;  %v8799_v5 = vmax.f32 %v6516_v0, 0.0  ;;  %5064 = vmatmul.mubr.msk.bf16.gmra.mrb[164].mxu0 %vm517_vm1, %v454_v26  ;;  %v455_v26 = vpack.c.bf16 %v369_v50, %v368_v45  ;;  %v371_v45 = vld [vmem:[%s6066_s13 + $0x2b8] sm:$0xff] }
 0x167   : > { %5067 = vmatprep.mubr.msk.bf16.mxu0 %vm5991_vm0, %v8853_v1 }
 0x168   : > { %v1408_v54 = vpack.c.bf16 %v8799_v5, %v8800_v24 }
 0x169   : > { %v867_v3 = vpop.f32.mrb[60].mxu0 }
 0x16a   : > { %v6530_v63 = vadd.f32 %v6217_v25, %v867_v3  ;;  %v4961_v18 = vpop.f32.mrb[61].mxu0  ;;  %5220 = vmatmul.mubr.msk.bf16.gmra.mrb[56].mxu1 %vm1482_vm2, %v1408_v54  ;;  %v370_v3 = vld [vmem:[%s6066_s13 + $0x2b0] sm:$0xff] }
 0x16b   : > { %v870_v28 = vpop.f32.mrb[62].mxu0  ;;  %5223 = vmatprep.mubr.msk.bf16.mxu1 %vm5991_vm0, %v8853_v1 }
 0x16c   : > { %9054 = vst [vmem:[#allocation20_spill] sm:$0xff] %v6530_v63  ;;  %v6536_v43 = vadd.f32 %v6217_v25, %v870_v28  ;;  %v4962_v21 = vpop.f32.mrb[63].mxu0  ;;  %v8804_v60 = vmax.f32 %v6530_v63, 0.0 }
 0x16e   : > { %9055 = vst [vmem:[#allocation21_spill] sm:$0xff] %v6536_v43  ;;  %v8803_v5 = vmax.f32 %v6536_v43, 0.0  ;;  %5068 = vmatmul.mubr.msk.bf16.gmra.mrb[168].mxu0 %vm517_vm1, %v455_v26  ;;  %v456_v26 = vpack.c.bf16 %v371_v45, %v370_v3  ;;  %v373_v3 = vld [vmem:[%s6066_s13 + $0x2c8] sm:$0xff] }
 0x16f   : > { %5071 = vmatprep.mubr.msk.bf16.mxu0 %vm5991_vm0, %v8853_v1 }
 0x170   : > { %v1409_v50 = vpack.c.bf16 %v8803_v5, %v8804_v60 }
 0x171   : > { %v875_v54 = vpop.f32.mrb[64].mxu0 }
 0x172   : > { %v6550_v21 = vadd.f32 %v6217_v25, %v875_v54  ;;  %v4965_v18 = vpop.f32.mrb[65].mxu0  ;;  %5224 = vmatmul.mubr.msk.bf16.gmra.mrb[60].mxu1 %vm1482_vm2, %v1409_v50  ;;  %v372_v54 = vld [vmem:[%s6066_s13 + $0x2c0] sm:$0xff] }
 0x173   : > { %v878_v28 = vpop.f32.mrb[66].mxu0  ;;  %5227 = vmatprep.mubr.msk.bf16.mxu1 %vm5991_vm0, %v8853_v1 }
 0x174   : > { %9056 = vst [vmem:[#allocation22_spill] sm:$0xff] %v6550_v21  ;;  %v6556_v24 = vadd.f32 %v6217_v25, %v878_v28  ;;  %v4966_v58 = vpop.f32.mrb[67].mxu0  ;;  %v8808_v32 = vmax.f32 %v6550_v21, 0.0 }
 0x176   : > { %9057 = vst [vmem:[#allocation23_spill] sm:$0xff] %v6556_v24  ;;  %v8807_v5 = vmax.f32 %v6556_v24, 0.0  ;;  %5072 = vmatmul.mubr.msk.bf16.gmra.mrb[172].mxu0 %vm517_vm1, %v456_v26  ;;  %v457_v26 = vpack.c.bf16 %v373_v3, %v372_v54 }
 0x177   : > { %5075 = vmatprep.mubr.msk.bf16.mxu0 %vm5991_vm0, %v8853_v1 }
 0x178   : > { %v1410_v45 = vpack.c.bf16 %v8807_v5, %v8808_v32 }
 0x179   : > { %v883_v50 = vpop.f32.mrb[68].mxu0 }
 0x17a   : > { %v6570_v58 = vadd.f32 %v6217_v25, %v883_v50  ;;  %v4969_v18 = vpop.f32.mrb[69].mxu0  ;;  %5228 = vmatmul.mubr.msk.bf16.gmra.mrb[64].mxu1 %vm1482_vm2, %v1410_v45  ;;  %v374_v50 = vld [vmem:[%s6066_s13 + $0x2d0] sm:$0xff]  ;;  %v375_v45 = vld [vmem:[%s6066_s13 + $0x2d8] sm:$0xff] }
 0x17b   : > { %v886_v28 = vpop.f32.mrb[70].mxu0  ;;  %5231 = vmatprep.mubr.msk.bf16.mxu1 %vm5991_vm0, %v8853_v1 }
 0x17c   : > { %9058 = vst [vmem:[#allocation24_spill] sm:$0xff] %v6570_v58  ;;  %v6576_v60 = vadd.f32 %v6217_v25, %v886_v28  ;;  %v4970_v31 = vpop.f32.mrb[71].mxu0  ;;  %v8810_v13 = vmax.f32 %v6570_v58, 0.0  ;;  %v458_v28 = vpack.c.bf16 %v375_v45, %v374_v50  ;;  %v376_v50 = vld [vmem:[%s6066_s13 + $0x2e0] sm:$0xff]  ;;  %v377_v45 = vld [vmem:[%s6066_s13 + $0x2e8] sm:$0xff] }
 0x17d   : > { %v5974_v31 = vld [vmem:[%s8787_s5 + $0x10] sm:$0xff]  }
 0x17e   : > { %9059 = vst [vmem:[#allocation25_spill] sm:$0xff] %v6576_v60  ;;  %v8809_v5 = vmax.f32 %v6576_v60, 0.0  ;;  %5076 = vmatmul.mubr.msk.bf16.gmra.mrb[176].mxu0 %vm517_vm1, %v457_v26  ;;  %5428 = vmatpush3.bf16.msra.mxu1 %v5974_v31 }
 0x17f   : > { %5079 = vmatprep.mubr.msk.bf16.mxu0 %vm5991_vm0, %v8853_v1  ;;  %5429 = vmatprep.subr.bf16.mxu1 %v8853_v1 }
 0x180   : > { %v1411_v54 = vpack.c.bf16 %v8809_v5, %v8810_v13 }
 0x181   : > { %v891_v3 = vpop.f32.mrb[72].mxu0 }
 0x182   : > { %v6593_v18 = vadd.f32 %v6217_v25, %v891_v3  ;;  %v4973_v26 = vpop.f32.mrb[73].mxu0  ;;  %5232 = vmatmul.mubr.msk.bf16.gmra.mrb[68].mxu1 %vm1482_vm2, %v1411_v54 }
 0x183   : > { %v894_v32 = vpop.f32.mrb[74].mxu0  ;;  %5235 = vmatprep.mubr.msk.bf16.mxu1 %vm5991_vm0, %v8853_v1  ;;  %v459_v26 = vpack.c.bf16 %v377_v45, %v376_v50  ;;  %v379_v50 = vld [vmem:[%s6066_s13 + $0x2f8] sm:$0xff] }
 0x184   : > { %9060 = vst [vmem:[#allocation26_spill] sm:$0xff] %v6593_v18  ;;  %v6599_v5 = vadd.f32 %v6217_v25, %v894_v32  ;;  %v4974_v13 = vpop.f32.mrb[75].mxu0  ;;  %v8816_v12 = vmax.f32 %v6593_v18, 0.0 }
 0x186   : > { %9061 = vst [vmem:[#allocation27_spill] sm:$0xff] %v6599_v5  ;;  %v8815_v3 = vmax.f32 %v6599_v5, 0.0  ;;  %5080 = vmatmul.mubr.msk.bf16.gmra.mrb[180].mxu0 %vm517_vm1, %v458_v28 }
 0x187   : > { %5083 = vmatprep.mubr.msk.bf16.mxu0 %vm5991_vm0, %v8853_v1 }
 0x188   : > { %v1412_v13 = vpack.c.bf16 %v8815_v3, %v8816_v12 }
 0x189   : > { %v899_v32 = vpop.f32.mrb[76].mxu0 }
 0x18a   : > { %v6614_v54 = vadd.f32 %v6217_v25, %v899_v32  ;;  %v4977_v31 = vpop.f32.mrb[77].mxu0  ;;  %5236 = vmatmul.mubr.msk.bf16.gmra.mrb[72].mxu1 %vm1482_vm2, %v1412_v13  ;;  %v378_v32 = vld [vmem:[%s6066_s13 + $0x2f0] sm:$0xff] }
 0x18b   : > { %v902_v28 = vpop.f32.mrb[78].mxu0  ;;  %5239 = vmatprep.mubr.msk.bf16.mxu1 %vm5991_vm0, %v8853_v1 }
 0x18c   : > { %9062 = vst [vmem:[#allocation28_spill] sm:$0xff] %v6614_v54  ;;  %v6620_v57 = vadd.f32 %v6217_v25, %v902_v28  ;;  %v4978_v56 = vpop.f32.mrb[79].mxu0  ;;  %v8820_v40 = vmax.f32 %v6614_v54, 0.0 }
 0x18e   : > { %9063 = vst [vmem:[#allocation29_spill] sm:$0xff] %v6620_v57  ;;  %v8819_v3 = vmax.f32 %v6620_v57, 0.0  ;;  %5084 = vmatmul.mubr.msk.bf16.gmra.mrb[184].mxu0 %vm517_vm1, %v459_v26  ;;  %v460_v26 = vpack.c.bf16 %v379_v50, %v378_v32  ;;  %v381_v32 = vld [vmem:[%s6066_s13 + $0x308] sm:$0xff] }
 0x18f   : > { %5087 = vmatprep.mubr.msk.bf16.mxu0 %vm5991_vm0, %v8853_v1 }
 0x190   : > { %v1413_v45 = vpack.c.bf16 %v8819_v3, %v8820_v40 }
 0x191   : > { %v907_v13 = vpop.f32.mrb[80].mxu0 }
 0x192   : > { %v6634_v56 = vadd.f32 %v6217_v25, %v907_v13  ;;  %v4981_v31 = vpop.f32.mrb[81].mxu0  ;;  %5240 = vmatmul.mubr.msk.bf16.gmra.mrb[76].mxu1 %vm1482_vm2, %v1413_v45  ;;  %v380_v13 = vld [vmem:[%s6066_s13 + $0x300] sm:$0xff] }
 0x193   : > { %v910_v28 = vpop.f32.mrb[82].mxu0  ;;  %5243 = vmatprep.mubr.msk.bf16.mxu1 %vm5991_vm0, %v8853_v1 }
 0x194   : > { %9064 = vst [vmem:[#allocation30_spill] sm:$0xff] %v6634_v56  ;;  %v6640_v12 = vadd.f32 %v6217_v25, %v910_v28  ;;  %v4982_v39 = vpop.f32.mrb[83].mxu0  ;;  %v8824_v23 = vmax.f32 %v6634_v56, 0.0 }
 0x196   : > { %9065 = vst [vmem:[#allocation31_spill] sm:$0xff] %v6640_v12  ;;  %v8823_v3 = vmax.f32 %v6640_v12, 0.0  ;;  %5088 = vmatmul.mubr.msk.bf16.gmra.mrb[188].mxu0 %vm517_vm1, %v460_v26  ;;  %v461_v26 = vpack.c.bf16 %v381_v32, %v380_v13  ;;  %v383_v13 = vld [vmem:[%s6066_s13 + $0x318] sm:$0xff] }
 0x197   : > { %5091 = vmatprep.mubr.msk.bf16.mxu0 %vm5991_vm0, %v8853_v1 }
 0x198   : > { %v1414_v50 = vpack.c.bf16 %v8823_v3, %v8824_v23 }
 0x199   : > { %v915_v45 = vpop.f32.mrb[84].mxu0 }
 0x19a   : > { %v6654_v39 = vadd.f32 %v6217_v25, %v915_v45  ;;  %v4985_v31 = vpop.f32.mrb[85].mxu0  ;;  %5244 = vmatmul.mubr.msk.bf16.gmra.mrb[80].mxu1 %vm1482_vm2, %v1414_v50  ;;  %v382_v45 = vld [vmem:[%s6066_s13 + $0x310] sm:$0xff] }
 0x19b   : > { %v918_v28 = vpop.f32.mrb[86].mxu0  ;;  %5247 = vmatprep.mubr.msk.bf16.mxu1 %vm5991_vm0, %v8853_v1 }
 0x19c   : > { %9066 = vst [vmem:[#allocation32_spill] sm:$0xff] %v6654_v39  ;;  %v6660_v40 = vadd.f32 %v6217_v25, %v918_v28  ;;  %v4986_v22 = vpop.f32.mrb[87].mxu0  ;;  %v8828_v11 = vmax.f32 %v6654_v39, 0.0 }
 0x19e   : > { %9067 = vst [vmem:[#allocation33_spill] sm:$0xff] %v6660_v40  ;;  %v8827_v3 = vmax.f32 %v6660_v40, 0.0  ;;  %5092 = vmatmul.mubr.msk.bf16.gmra.mrb[192].mxu0 %vm517_vm1, %v461_v26  ;;  %v462_v26 = vpack.c.bf16 %v383_v13, %v382_v45  ;;  %v385_v45 = vld [vmem:[%s6066_s13 + $0x328] sm:$0xff] }
 0x19f   : > { %5095 = vmatprep.mubr.msk.bf16.mxu0 %vm5991_vm0, %v8853_v1 }
 0x1a0   : > { %v1415_v32 = vpack.c.bf16 %v8827_v3, %v8828_v11 }
 0x1a1   : > { %v923_v50 = vpop.f32.mrb[88].mxu0 }
 0x1a2   : > { %v6674_v22 = vadd.f32 %v6217_v25, %v923_v50  ;;  %v4989_v31 = vpop.f32.mrb[89].mxu0  ;;  %5248 = vmatmul.mubr.msk.bf16.gmra.mrb[84].mxu1 %vm1482_vm2, %v1415_v32  ;;  %v384_v50 = vld [vmem:[%s6066_s13 + $0x320] sm:$0xff] }
 0x1a3   : > { %v926_v28 = vpop.f32.mrb[90].mxu0  ;;  %5251 = vmatprep.mubr.msk.bf16.mxu1 %vm5991_vm0, %v8853_v1 }
 0x1a4   : > { %9068 = vst [vmem:[#allocation34_spill] sm:$0xff] %v6674_v22  ;;  %v6680_v23 = vadd.f32 %v6217_v25, %v926_v28  ;;  %v4990_v10 = vpop.f32.mrb[91].mxu0  ;;  %v8832_v62 = vmax.f32 %v6674_v22, 0.0 }
 0x1a6   : > { %9069 = vst [vmem:[#allocation35_spill] sm:$0xff] %v6680_v23  ;;  %v8831_v3 = vmax.f32 %v6680_v23, 0.0  ;;  %5096 = vmatmul.mubr.msk.bf16.gmra.mrb[196].mxu0 %vm517_vm1, %v462_v26  ;;  %v463_v26 = vpack.c.bf16 %v385_v45, %v384_v50  ;;  %v387_v50 = vld [vmem:[%s6066_s13 + $0x338] sm:$0xff] }
 0x1a7   : > { %5099 = vmatprep.mubr.msk.bf16.mxu0 %vm5991_vm0, %v8853_v1 }
 0x1a8   : > { %v1416_v13 = vpack.c.bf16 %v8831_v3, %v8832_v62 }
 0x1a9   : > { %v931_v32 = vpop.f32.mrb[92].mxu0 }
 0x1aa   : > { %v6694_v10 = vadd.f32 %v6217_v25, %v931_v32  ;;  %v4993_v31 = vpop.f32.mrb[93].mxu0  ;;  %5252 = vmatmul.mubr.msk.bf16.gmra.mrb[88].mxu1 %vm1482_vm2, %v1416_v13  ;;  %v386_v32 = vld [vmem:[%s6066_s13 + $0x330] sm:$0xff] }
 0x1ab   : > { %v934_v28 = vpop.f32.mrb[94].mxu0  ;;  %5255 = vmatprep.mubr.msk.bf16.mxu1 %vm5991_vm0, %v8853_v1 }
 0x1ac   : > { %9070 = vst [vmem:[#allocation36_spill] sm:$0xff] %v6694_v10  ;;  %v6700_v11 = vadd.f32 %v6217_v25, %v934_v28  ;;  %v4994_v61 = vpop.f32.mrb[95].mxu0  ;;  %v8836_v49 = vmax.f32 %v6694_v10, 0.0 }
 0x1ae   : > { %9071 = vst [vmem:[#allocation37_spill] sm:$0xff] %v6700_v11  ;;  %v8835_v3 = vmax.f32 %v6700_v11, 0.0  ;;  %5100 = vmatmul.mubr.msk.bf16.gmra.mrb[200].mxu0 %vm517_vm1, %v463_v26  ;;  %v464_v26 = vpack.c.bf16 %v387_v50, %v386_v32  ;;  %v389_v32 = vld [vmem:[%s6066_s13 + $0x348] sm:$0xff] }
 0x1af   : > { %5103 = vmatprep.mubr.msk.bf16.mxu0 %vm5991_vm0, %v8853_v1 }
 0x1b0   : > { %v1417_v45 = vpack.c.bf16 %v8835_v3, %v8836_v49 }
 0x1b1   : > { %v939_v13 = vpop.f32.mrb[96].mxu0 }
 0x1b2   : > { %v6714_v61 = vadd.f32 %v6217_v25, %v939_v13  ;;  %v4997_v31 = vpop.f32.mrb[97].mxu0  ;;  %5256 = vmatmul.mubr.msk.bf16.gmra.mrb[92].mxu1 %vm1482_vm2, %v1417_v45  ;;  %v388_v13 = vld [vmem:[%s6066_s13 + $0x340] sm:$0xff] }
 0x1b3   : > { %v942_v28 = vpop.f32.mrb[98].mxu0  ;;  %5259 = vmatprep.mubr.msk.bf16.mxu1 %vm5991_vm0, %v8853_v1 }
 0x1b4   : > { %9072 = vst [vmem:[#allocation38_spill] sm:$0xff] %v6714_v61  ;;  %v6720_v62 = vadd.f32 %v6217_v25, %v942_v28  ;;  %v4998_v48 = vpop.f32.mrb[99].mxu0  ;;  %v8840_v36 = vmax.f32 %v6714_v61, 0.0  ;;  %v395_v61 = vld [vmem:[%s6066_s13 + $0x378] sm:$0xff] }
 0x1b6   : > { %9073 = vst [vmem:[#allocation39_spill] sm:$0xff] %v6720_v62  ;;  %v8839_v3 = vmax.f32 %v6720_v62, 0.0  ;;  %5104 = vmatmul.mubr.msk.bf16.gmra.mrb[204].mxu0 %vm517_vm1, %v464_v26  ;;  %v465_v26 = vpack.c.bf16 %v389_v32, %v388_v13  ;;  %v391_v13 = vld [vmem:[%s6066_s13 + $0x358] sm:$0xff] }
 0x1b7   : > { %5107 = vmatprep.mubr.msk.bf16.mxu0 %vm5991_vm0, %v8853_v1 }
 0x1b8   : > { %v1418_v50 = vpack.c.bf16 %v8839_v3, %v8840_v36 }
 0x1b9   : > { %v947_v45 = vpop.f32.mrb[100].mxu0 }
 0x1ba   : > { %v6734_v48 = vadd.f32 %v6217_v25, %v947_v45  ;;  %v5001_v31 = vpop.f32.mrb[101].mxu0  ;;  %5260 = vmatmul.mubr.msk.bf16.gmra.mrb[96].mxu1 %vm1482_vm2, %v1418_v50  ;;  %v390_v45 = vld [vmem:[%s6066_s13 + $0x350] sm:$0xff] }
 0x1bb   : > { %v950_v28 = vpop.f32.mrb[102].mxu0  ;;  %5263 = vmatprep.mubr.msk.bf16.mxu1 %vm5991_vm0, %v8853_v1 }
 0x1bc   : > { %9074 = vst [vmem:[#allocation40_spill] sm:$0xff] %v6734_v48  ;;  %v6740_v49 = vadd.f32 %v6217_v25, %v950_v28  ;;  %v5002_v35 = vpop.f32.mrb[103].mxu0  ;;  %v8844_v62 = vmax.f32 %v6734_v48, 0.0 }
 0x1be   : > { %9075 = vst [vmem:[#allocation41_spill] sm:$0xff] %v6740_v49  ;;  %v8843_v3 = vmax.f32 %v6740_v49, 0.0  ;;  %5108 = vmatmul.mubr.msk.bf16.gmra.mrb[208].mxu0 %vm517_vm1, %v465_v26  ;;  %v466_v26 = vpack.c.bf16 %v391_v13, %v390_v45 }
 0x1bf   : > { %5111 = vmatprep.mubr.msk.bf16.mxu0 %vm5991_vm0, %v8853_v1 }
 0x1c0   : > { %v1419_v32 = vpack.c.bf16 %v8843_v3, %v8844_v62  ;;  %v6780_v62 = vld [vmem:[%s8786_s4] ss:$0 sm:$0xff] }
 0x1c1   : > { %v955_v50 = vpop.f32.mrb[104].mxu0 }
 0x1c2   : > { %v6754_v35 = vadd.f32 %v6217_v25, %v955_v50  ;;  %v5005_v31 = vpop.f32.mrb[105].mxu0  ;;  %5264 = vmatmul.mubr.msk.bf16.gmra.mrb[100].mxu1 %vm1482_vm2, %v1419_v32  ;;  %v392_v50 = vld [vmem:[%s6066_s13 + $0x360] sm:$0xff]  ;;  %v393_v32 = vld [vmem:[%s6066_s13 + $0x368] sm:$0xff] }
 0x1c3   : > { %v958_v28 = vpop.f32.mrb[106].mxu0  ;;  %5267 = vmatprep.mubr.msk.bf16.mxu1 %vm5991_vm0, %v8853_v1 }
 0x1c4   : > { %9076 = vst [vmem:[#allocation42_spill] sm:$0xff] %v6754_v35  ;;  %v6760_v36 = vadd.f32 %v6217_v25, %v958_v28  ;;  %v5006_v48 = vpop.f32.mrb[107].mxu0  ;;  %v8846_v49 = vmax.f32 %v6754_v35, 0.0  ;;  %v394_v35 = vld [vmem:[%s6066_s13 + $0x370] sm:$0xff] }
 0x1c6   : > { %9077 = vst [vmem:[#allocation43_spill] sm:$0xff] %v6760_v36  ;;  %v8845_v3 = vmax.f32 %v6760_v36, 0.0  ;;  %5112 = vmatmul.mubr.msk.bf16.gmra.mrb[212].mxu0 %vm517_vm1, %v466_v26  ;;  %v467_v26 = vpack.c.bf16 %v393_v32, %v392_v50 }
 0x1c7   : > { %5115 = vmatprep.mubr.msk.bf16.mxu0 %vm5991_vm0, %v8853_v1 }
 0x1c8   : > { %v1420_v45 = vpack.c.bf16 %v8845_v3, %v8846_v49 }
 0x1c9   : > { %v963_v13 = vpop.f32.mrb[108].mxu0 }
 0x1ca   : > { %v6774_v31 = vadd.f32 %v6217_v25, %v963_v13  ;;  %v5009_v48 = vpop.f32.mrb[109].mxu0  ;;  %5268 = vmatmul.mubr.msk.bf16.gmra.mrb[104].mxu1 %vm1482_vm2, %v1420_v45 }
 0x1cb   : > { %v966_v28 = vpop.f32.mrb[110].mxu0  ;;  %5271 = vmatprep.mubr.msk.bf16.mxu1 %vm5991_vm0, %v8853_v1 }
 0x1cc   : > { %9078 = vst [vmem:[#allocation44_spill] sm:$0xff] %v6774_v31  ;;  %v6785_v3 = vadd.f32 %v6217_v25, %v966_v28  ;;  %v5010_v13 = vpop.f32.mrb[111].mxu0  ;;  %v8858_v48 = vmax.f32 %v6774_v31, 0.0  ;;  %v9081_v31 = vmov 0.0  }
 0x1cd   : > { %v1712_v49 = vpop.f32.mrb[0].mxu1 }
 0x1ce   : > { %9079 = vst [vmem:[#allocation45_spill] sm:$0xff] %v6785_v3  ;;  %v8857_v45 = vmax.f32 %v6785_v3, 0.0  ;;  %v1713_v50 = vadd.f32 %v6780_v62, %v1712_v49  ;;  %5116 = vmatmul.mubr.msk.bf16.gmra.mrb[216].mxu0 %vm517_vm1, %v467_v26  ;;  %v5165_v32 = vpop.f32.mrb[1].mxu1 }
 0x1cf   : > { %v1715_v36 = vpop.f32.mrb[2].mxu1  ;;  %5119 = vmatprep.mubr.msk.bf16.mxu0 %vm5991_vm0, %v8853_v1  ;;  %v468_v1 = vpack.c.bf16 %v395_v61, %v394_v35 }
 0x1d0   : > { %v1421_v28 = vpack.c.bf16 %v8857_v45, %v8858_v48  ;;  %v1716_v13 = vadd.f32 %v6780_v62, %v1715_v36  ;;  %v5166_v11 = vpop.f32.mrb[3].mxu1  ;;  %v2230_v23 = vmax.f32 %v1713_v50, 0.0 }
 0x1d1   : > { %v971_v10 = vpop.f32.mrb[112].mxu0 }
 0x1d2   : > { %v2231_v49 = vmax.f32 %v1716_v13, 0.0  ;;  %v6801_v26 = vadd.f32 %v6217_v25, %v971_v10  ;;  %v5013_v32 = vpop.f32.mrb[113].mxu0  ;;  %5272 = vmatmul.mubr.msk.bf16.gmra.mrb[108].mxu1 %vm1482_vm2, %v1421_v28  ;;  %v397_v28 = vld [vmem:[%s6066_s13 + $0x388] sm:$0xff] }
 0x1d3   : > { %v974_v22 = vpop.f32.mrb[114].mxu0  ;;  %5275 = vmatprep.mubr.msk.bf16.mxu1 %vm5991_vm0, %v9081_v31 }
 0x1d4   : > { %9080 = vst [vmem:[#allocation46_spill] sm:$0xff] %v6801_v26  ;;  %v6806_v45 = vpack.c.bf16 %v2231_v49, %v2230_v23  ;;  %v6809_v36 = vadd.f32 %v6217_v25, %v974_v22  ;;  %v5014_v11 = vpop.f32.mrb[115].mxu0  ;;  %v8863_v10 = vmax.f32 %v6801_v26, 0.0  ;;  %v396_v23 = vld [vmem:[%s6066_s13 + $0x380] sm:$0xff] }
 0x1d5   : > { %v1720_v50 = vpop.f32.mrb[4].mxu1  ;;  %v469_v40 = vpack.c.bf16 %v397_v28, %v396_v23 }
 0x1d6   : > { %9082 = vst [vmem:[#allocation47_spill] sm:$0xff] %v6809_v36  ;;  %v8862_v13 = vmax.f32 %v6809_v36, 0.0  ;;  %v1721_v32 = vadd.f32 %v6780_v62, %v1720_v50  ;;  %5120 = vmatmul.mubr.msk.bf16.gmra.mrb[220].mxu0 %vm517_vm1, %v468_v1  ;;  %v5169_v61 = vpop.f32.mrb[5].mxu1 }
 0x1d7   : > { %v1723_v35 = vpop.f32.mrb[6].mxu1  ;;  %5123 = vmatprep.mubr.msk.bf16.mxu0 %vm5991_vm0, %v9081_v31 }
 0x1d8   : > { %v1422_v22 = vpack.c.bf16 %v8862_v13, %v8863_v10  ;;  %v1724_v49 = vadd.f32 %v6780_v62, %v1723_v35  ;;  %v5170_v11 = vpop.f32.mrb[7].mxu1  ;;  %v2232_v3 = vmax.f32 %v1721_v32, 0.0 }
 0x1d9   : > { %v979_v48 = vpop.f32.mrb[116].mxu0 }
 0x1da   : > { %v2233_v50 = vmax.f32 %v1724_v49, 0.0  ;;  %v6825_v1 = vadd.f32 %v6217_v25, %v979_v48  ;;  %v5017_v61 = vpop.f32.mrb[117].mxu0  ;;  %5276 = vmatmul.mubr.msk.bf16.gmra.mrb[112].mxu1 %vm1482_vm2, %v1422_v22  ;;  %v399_v22 = vld [vmem:[%s6066_s13 + $0x398] sm:$0xff] }
 0x1db   : > { %v982_v39 = vpop.f32.mrb[118].mxu0  ;;  %5279 = vmatprep.mubr.msk.bf16.mxu1 %vm5991_vm0, %v9081_v31 }
 0x1dc   : > { %9083 = vst [vmem:[#allocation48_spill] sm:$0xff] %v6825_v1  ;;  %v6830_v13 = vpack.c.bf16 %v2233_v50, %v2232_v3  ;;  %v6833_v35 = vadd.f32 %v6217_v25, %v982_v39  ;;  %v5018_v32 = vpop.f32.mrb[119].mxu0  ;;  %v8866_v48 = vmax.f32 %v6825_v1, 0.0  ;;  %v398_v3 = vld [vmem:[%s6066_s13 + $0x390] sm:$0xff] }
 0x1dd   : > { %v1728_v49 = vpop.f32.mrb[8].mxu1 }
 0x1de   : > { %9084 = vst [vmem:[#allocation49_spill] sm:$0xff] %v6833_v35  ;;  %v8865_v11 = vmax.f32 %v6833_v35, 0.0  ;;  %v1729_v61 = vadd.f32 %v6780_v62, %v1728_v49  ;;  %5124 = vmatmul.mubr.msk.bf16.gmra.mrb[224].mxu0 %vm517_vm1, %v469_v40  ;;  %v5173_v23 = vpop.f32.mrb[9].mxu1  ;;  %v6851_v40 = vld [vmem:[%s8784_s2] ss:$0 sm:$0xff] }
 0x1df   : > { %v1731_v28 = vpop.f32.mrb[10].mxu1  ;;  %5127 = vmatprep.mubr.msk.bf16.mxu0 %vm5991_vm0, %v9081_v31 }
 0x1e0   : > { %v1423_v25 = vpack.c.bf16 %v8865_v11, %v8866_v48  ;;  %v1732_v39 = vadd.f32 %v6780_v62, %v1731_v28  ;;  %v5174_v50 = vpop.f32.mrb[11].mxu1  ;;  %v2234_v10 = vmax.f32 %v1729_v61, 0.0  ;;  %v470_v11 = vpack.c.bf16 %v399_v22, %v398_v3 }
 0x1e1   : > { %v987_v32 = vpop.f32.mrb[120].mxu0 }
 0x1e2   : > { %v2235_v49 = vmax.f32 %v1732_v39, 0.0  ;;  %v6854_v23 = vadd.f32 %v6851_v40, %v987_v32  ;;  %v5021_v36 = vpop.f32.mrb[121].mxu0  ;;  %5280 = vmatmul.mubr.msk.bf16.gmra.mrb[116].mxu1 %vm1482_vm2, %v1423_v25  ;;  %v401_v25 = vld [vmem:[%s6066_s13 + $0x3a8] sm:$0xff] }
 0x1e3   : > { %v990_v48 = vpop.f32.mrb[122].mxu0  ;;  %5283 = vmatprep.mubr.msk.bf16.mxu1 %vm5991_vm0, %v9081_v31 }
 0x1e4   : > { %9085 = vst [vmem:[#allocation50_spill] sm:$0xff] %v6854_v23  ;;  %v6859_v61 = vpack.c.bf16 %v2235_v49, %v2234_v10  ;;  %v6862_v28 = vadd.f32 %v6851_v40, %v990_v48  ;;  %v5022_v39 = vpop.f32.mrb[123].mxu0  ;;  %v8873_v32 = vmax.f32 %v6854_v23, 0.0  ;;  %v400_v10 = vld [vmem:[%s6066_s13 + $0x3a0] sm:$0xff] }
 0x1e5   : > { %v1736_v50 = vpop.f32.mrb[12].mxu1  ;;  %v471_v12 = vpack.c.bf16 %v401_v25, %v400_v10 }
 0x1e6   : > { %9086 = vst [vmem:[#allocation51_spill] sm:$0xff] %v6862_v28  ;;  %v8872_v36 = vmax.f32 %v6862_v28, 0.0  ;;  %v1737_v35 = vadd.f32 %v6780_v62, %v1736_v50  ;;  %5128 = vmatmul.mubr.msk.bf16.gmra.mrb[228].mxu0 %vm517_vm1, %v470_v11  ;;  %v5177_v3 = vpop.f32.mrb[13].mxu1 }
 0x1e7   : > { %v1739_v22 = vpop.f32.mrb[14].mxu1  ;;  %5131 = vmatprep.mubr.msk.bf16.mxu0 %vm5991_vm0, %v9081_v31 }
 0x1e8   : > { %v1424_v48 = vpack.c.bf16 %v8872_v36, %v8873_v32  ;;  %v1740_v49 = vadd.f32 %v6780_v62, %v1739_v22  ;;  %v5178_v39 = vpop.f32.mrb[15].mxu1  ;;  %v2236_v26 = vmax.f32 %v1737_v35, 0.0 }
 0x1e9   : > { %v995_v1 = vpop.f32.mrb[124].mxu0 }
 0x1ea   : > { %v2237_v50 = vmax.f32 %v1740_v49, 0.0  ;;  %v6878_v11 = vadd.f32 %v6851_v40, %v995_v1  ;;  %v5025_v3 = vpop.f32.mrb[125].mxu0  ;;  %5284 = vmatmul.mubr.msk.bf16.gmra.mrb[120].mxu1 %vm1482_vm2, %v1424_v48  ;;  %v403_v48 = vld [vmem:[%s6066_s13 + $0x3b8] sm:$0xff] }
 0x1eb   : > { %v998_v56 = vpop.f32.mrb[126].mxu0  ;;  %5287 = vmatprep.mubr.msk.bf16.mxu1 %vm5991_vm0, %v9081_v31 }
 0x1ec   : > { %9087 = vst [vmem:[#allocation52_spill] sm:$0xff] %v6878_v11  ;;  %v6883_v36 = vpack.c.bf16 %v2237_v50, %v2236_v26  ;;  %v6886_v22 = vadd.f32 %v6851_v40, %v998_v56  ;;  %v5026_v35 = vpop.f32.mrb[127].mxu0  ;;  %v8878_v1 = vmax.f32 %v6878_v11, 0.0  ;;  %v402_v26 = vld [vmem:[%s6066_s13 + $0x3b0] sm:$0xff] }
 0x1ed   : > { %v1744_v49 = vpop.f32.mrb[16].mxu1  ;;  %v472_v23 = vpack.c.bf16 %v403_v48, %v402_v26 }
 0x1ee   : > { %9088 = vst [vmem:[#allocation53_spill] sm:$0xff] %v6886_v22  ;;  %v8877_v39 = vmax.f32 %v6886_v22, 0.0  ;;  %v1745_v3 = vadd.f32 %v6780_v62, %v1744_v49  ;;  %5132 = vmatmul.mubr.msk.bf16.gmra.mrb[232].mxu0 %vm517_vm1, %v471_v12  ;;  %v5181_v10 = vpop.f32.mrb[17].mxu1 }
 0x1ef   : > { %v1747_v25 = vpop.f32.mrb[18].mxu1  ;;  %5135 = vmatprep.mubr.msk.bf16.mxu0 %vm5991_vm0, %v9081_v31 }
 0x1f0   : > { %v1425_v56 = vpack.c.bf16 %v8877_v39, %v8878_v1  ;;  %v1748_v50 = vadd.f32 %v6780_v62, %v1747_v25  ;;  %v5182_v35 = vpop.f32.mrb[19].mxu1  ;;  %v2238_v28 = vmax.f32 %v1745_v3, 0.0 }
 0x1f1   : > { %v1003_v32 = vpop.f32.mrb[128].mxu0 }
 0x1f2   : > { %v2239_v49 = vmax.f32 %v1748_v50, 0.0  ;;  %v6902_v12 = vadd.f32 %v6851_v40, %v1003_v32  ;;  %v5029_v10 = vpop.f32.mrb[129].mxu0  ;;  %5288 = vmatmul.mubr.msk.bf16.gmra.mrb[124].mxu1 %vm1482_vm2, %v1425_v56  ;;  %v405_v56 = vld [vmem:[%s6066_s13 + $0x3c8] sm:$0xff] }
 0x1f3   : > { %v1006_v57 = vpop.f32.mrb[130].mxu0  ;;  %5291 = vmatprep.mubr.msk.bf16.mxu1 %vm5991_vm0, %v9081_v31 }
 0x1f4   : > { %9089 = vst [vmem:[#allocation54_spill] sm:$0xff] %v6902_v12  ;;  %v6907_v39 = vpack.c.bf16 %v2239_v49, %v2238_v28  ;;  %v6910_v25 = vadd.f32 %v6851_v40, %v1006_v57  ;;  %v5030_v3 = vpop.f32.mrb[131].mxu0  ;;  %v8883_v32 = vmax.f32 %v6902_v12, 0.0  ;;  %v404_v28 = vld [vmem:[%s6066_s13 + $0x3c0] sm:$0xff] }
 0x1f5   : > { %v1752_v50 = vpop.f32.mrb[20].mxu1  ;;  %v473_v11 = vpack.c.bf16 %v405_v56, %v404_v28 }
 0x1f6   : > { %9090 = vst [vmem:[#allocation55_spill] sm:$0xff] %v6910_v25  ;;  %v8882_v35 = vmax.f32 %v6910_v25, 0.0  ;;  %v1753_v10 = vadd.f32 %v6780_v62, %v1752_v50  ;;  %5136 = vmatmul.mubr.msk.bf16.gmra.mrb[236].mxu0 %vm517_vm1, %v472_v23  ;;  %v5185_v26 = vpop.f32.mrb[21].mxu1 }
 0x1f7   : > { %v1755_v48 = vpop.f32.mrb[22].mxu1  ;;  %5139 = vmatprep.mubr.msk.bf16.mxu0 %vm5991_vm0, %v9081_v31 }
 0x1f8   : > { %v1426_v57 = vpack.c.bf16 %v8882_v35, %v8883_v32  ;;  %v1756_v49 = vadd.f32 %v6780_v62, %v1755_v48  ;;  %v5186_v3 = vpop.f32.mrb[23].mxu1  ;;  %v2240_v22 = vmax.f32 %v1753_v10, 0.0 }
 0x1f9   : > { %v1011_v1 = vpop.f32.mrb[132].mxu0 }
 0x1fa   : > { %v2241_v50 = vmax.f32 %v1756_v49, 0.0  ;;  %v6926_v23 = vadd.f32 %v6851_v40, %v1011_v1  ;;  %v5033_v26 = vpop.f32.mrb[133].mxu0  ;;  %5292 = vmatmul.mubr.msk.bf16.gmra.mrb[128].mxu1 %vm1482_vm2, %v1426_v57  ;;  %v407_v57 = vld [vmem:[%s6066_s13 + $0x3d8] sm:$0xff] }
 0x1fb   : > { %v1014_v54 = vpop.f32.mrb[134].mxu0  ;;  %5295 = vmatprep.mubr.msk.bf16.mxu1 %vm5991_vm0, %v9081_v31 }
 0x1fc   : > { %9091 = vst [vmem:[#allocation56_spill] sm:$0xff] %v6926_v23  ;;  %v6931_v35 = vpack.c.bf16 %v2241_v50, %v2240_v22  ;;  %v6934_v48 = vadd.f32 %v6851_v40, %v1014_v54  ;;  %v5034_v10 = vpop.f32.mrb[135].mxu0  ;;  %v8888_v1 = vmax.f32 %v6926_v23, 0.0  ;;  %v406_v22 = vld [vmem:[%s6066_s13 + $0x3d0] sm:$0xff] }
 0x1fd   : > { %v1760_v49 = vpop.f32.mrb[24].mxu1  ;;  %v474_v12 = vpack.c.bf16 %v407_v57, %v406_v22 }
 0x1fe   : > { %9092 = vst [vmem:[#allocation57_spill] sm:$0xff] %v6934_v48  ;;  %v8887_v3 = vmax.f32 %v6934_v48, 0.0  ;;  %v1761_v26 = vadd.f32 %v6780_v62, %v1760_v49  ;;  %5140 = vmatmul.mubr.msk.bf16.gmra.mrb[240].mxu0 %vm517_vm1, %v473_v11  ;;  %v5189_v28 = vpop.f32.mrb[25].mxu1 }
 0x1ff   : > { %v1763_v56 = vpop.f32.mrb[26].mxu1  ;;  %5143 = vmatprep.mubr.msk.bf16.mxu0 %vm5991_vm0, %v9081_v31 }
 0x200   : > { %v1427_v54 = vpack.c.bf16 %v8887_v3, %v8888_v1  ;;  %v1764_v50 = vadd.f32 %v6780_v62, %v1763_v56  ;;  %v5190_v10 = vpop.f32.mrb[27].mxu1  ;;  %v2242_v25 = vmax.f32 %v1761_v26, 0.0 }
 0x201   : > { %v1019_v32 = vpop.f32.mrb[136].mxu0 }
 0x202   : > { %v2243_v49 = vmax.f32 %v1764_v50, 0.0  ;;  %v6950_v11 = vadd.f32 %v6851_v40, %v1019_v32  ;;  %v5037_v28 = vpop.f32.mrb[137].mxu0  ;;  %5296 = vmatmul.mubr.msk.bf16.gmra.mrb[132].mxu1 %vm1482_vm2, %v1427_v54  ;;  %v5975_v32 = vld [vmem:[%s8787_s5 + $0x18] sm:$0xff]  }
 0x203   : > { %v1022_v5 = vpop.f32.mrb[138].mxu0  ;;  %5299 = vmatprep.mubr.msk.bf16.mxu1 %vm5991_vm0, %v9081_v31  ;;  %5430 = vmatpush3.bf16.msra.mxu1 %v5975_v32 }
 0x204   : > { %9093 = vst [vmem:[#allocation58_spill] sm:$0xff] %v6950_v11  ;;  %v6955_v3 = vpack.c.bf16 %v2243_v49, %v2242_v25  ;;  %v6958_v56 = vadd.f32 %v6851_v40, %v1022_v5  ;;  %v5038_v26 = vpop.f32.mrb[139].mxu0  ;;  %v8893_v54 = vmax.f32 %v6950_v11, 0.0  ;;  %v408_v5 = vld [vmem:[%s6066_s13 + $0x3e0] sm:$0xff]  ;;  %v409_v49 = vld [vmem:[%s6066_s13 + $0x3e8] sm:$0xff] }
 0x205   : > { %v1768_v50 = vpop.f32.mrb[28].mxu1 }
 0x206   : > { %9094 = vst [vmem:[#allocation59_spill] sm:$0xff] %v6958_v56  ;;  %v8892_v22 = vmax.f32 %v6958_v56, 0.0  ;;  %v1769_v57 = vadd.f32 %v6780_v62, %v1768_v50  ;;  %5144 = vmatmul.mubr.msk.bf16.gmra.mrb[244].mxu0 %vm517_vm1, %v474_v12  ;;  %v5193_v10 = vpop.f32.mrb[29].mxu1 }
 0x207   : > { %v1771_v25 = vpop.f32.mrb[30].mxu1  ;;  %5147 = vmatprep.mubr.msk.bf16.mxu0 %vm5991_vm0, %v9081_v31  ;;  %v475_v10 = vpack.c.bf16 %v409_v49, %v408_v5 }
 0x208   : > { %v1428_v28 = vpack.c.bf16 %v8892_v22, %v8893_v54  ;;  %v1772_v26 = vadd.f32 %v6780_v62, %v1771_v25  ;;  %v5194_v1 = vpop.f32.mrb[31].mxu1  ;;  %v2244_v50 = vmax.f32 %v1769_v57, 0.0 }
 0x209   : > { %v1027_v48 = vpop.f32.mrb[140].mxu0 }
 0x20a   : > { %v2245_v23 = vmax.f32 %v1772_v26, 0.0  ;;  %v6977_v12 = vadd.f32 %v6851_v40, %v1027_v48  ;;  %v5041_v32 = vpop.f32.mrb[141].mxu0  ;;  %5300 = vmatmul.mubr.msk.bf16.gmra.mrb[136].mxu1 %vm1482_vm2, %v1428_v28  ;;  %v411_v28 = vld [vmem:[%s6066_s13 + $0x3f8] sm:$0xff] }
 0x20b   : > { %v1030_v18 = vpop.f32.mrb[142].mxu0  ;;  %5303 = vmatprep.mubr.msk.bf16.mxu1 %vm5991_vm0, %v9081_v31 }
 0x20c   : > { %9095 = vst [vmem:[#allocation60_spill] sm:$0xff] %v6977_v12  ;;  %v6982_v22 = vpack.c.bf16 %v2245_v23, %v2244_v50  ;;  %v6985_v1 = vadd.f32 %v6851_v40, %v1030_v18  ;;  %v5042_v57 = vpop.f32.mrb[143].mxu0  ;;  %v8899_v48 = vmax.f32 %v6977_v12, 0.0  ;;  %v410_v23 = vld [vmem:[%s6066_s13 + $0x3f0] sm:$0xff] }
 0x20d   : > { %v1776_v25 = vpop.f32.mrb[32].mxu1  ;;  %v476_v11 = vpack.c.bf16 %v411_v28, %v410_v23 }
 0x20e   : > { %9096 = vst [vmem:[#allocation61_spill] sm:$0xff] %v6985_v1  ;;  %v8898_v26 = vmax.f32 %v6985_v1, 0.0  ;;  %v1777_v32 = vadd.f32 %v6780_v62, %v1776_v25  ;;  %5148 = vmatmul.mubr.msk.bf16.gmra.mrb[248].mxu0 %vm517_vm1, %v475_v10  ;;  %v5197_v5 = vpop.f32.mrb[33].mxu1 }
 0x20f   : > { %v1779_v49 = vpop.f32.mrb[34].mxu1  ;;  %5151 = vmatprep.mubr.msk.bf16.mxu0 %vm5991_vm0, %v9081_v31 }
 0x210   : > { %v1429_v18 = vpack.c.bf16 %v8898_v26, %v8899_v48  ;;  %v1780_v50 = vadd.f32 %v6780_v62, %v1779_v49  ;;  %v5198_v57 = vpop.f32.mrb[35].mxu1  ;;  %v2246_v56 = vmax.f32 %v1777_v32, 0.0 }
 0x211   : > { %v1035_v54 = vpop.f32.mrb[144].mxu0 }
 0x212   : > { %v2247_v25 = vmax.f32 %v1780_v50, 0.0  ;;  %v7001_v10 = vadd.f32 %v6851_v40, %v1035_v54  ;;  %v5045_v5 = vpop.f32.mrb[145].mxu0  ;;  %5304 = vmatmul.mubr.msk.bf16.gmra.mrb[140].mxu1 %vm1482_vm2, %v1429_v18 }
 0x213   : > { %v1038_v60 = vpop.f32.mrb[146].mxu0  ;;  %5307 = vmatprep.mubr.msk.bf16.mxu1 %vm5991_vm0, %v9081_v31 }
 0x214   : > { %9097 = vst [vmem:[#allocation62_spill] sm:$0xff] %v7001_v10  ;;  %v7006_v1 = vpack.c.bf16 %v2247_v25, %v2246_v56  ;;  %v7009_v49 = vadd.f32 %v6851_v40, %v1038_v60  ;;  %v5046_v57 = vpop.f32.mrb[147].mxu0  ;;  %v8903_v50 = vmax.f32 %v7001_v10, 0.0  ;;  %v412_v56 = vld [vmem:[%s6066_s13 + $0x400] sm:$0xff] }
 0x215   : > { %v1784_v32 = vpop.f32.mrb[36].mxu1 }
 0x216   : > { %9098 = vst [vmem:[#allocation63_spill] sm:$0xff] %v7009_v49  ;;  %v8902_v54 = vmax.f32 %v7009_v49, 0.0  ;;  %v1785_v5 = vadd.f32 %v6780_v62, %v1784_v32  ;;  %5152 = vmatmul.mubr.msk.bf16.gmra.mrb[252].mxu0 %vm517_vm1, %v476_v11  ;;  %v5201_v23 = vpop.f32.mrb[37].mxu1 }
 0x217   : > { %v1787_v28 = vpop.f32.mrb[38].mxu1  ;;  %5155 = vmatprep.mubr.msk.bf16.mxu0 %vm5991_vm0, %v9081_v31  ;;  %v477_v23 = vpack.c.bf16 %v412_v56, %v412_v56 }
 0x218   : > { %v1430_v60 = vpack.c.bf16 %v8902_v54, %v8903_v50  ;;  %v1788_v18 = vadd.f32 %v6780_v62, %v1787_v28  ;;  %v5202_v25 = vpop.f32.mrb[39].mxu1  ;;  %v2248_v26 = vmax.f32 %v1785_v5, 0.0 }
 0x219   : > { %v1043_v57 = vpop.f32.mrb[148].mxu0 }
 0x21a   : > { %v2249_v48 = vmax.f32 %v1788_v18, 0.0  ;;  %v7024_v32 = vadd.f32 %v6851_v40, %v1043_v57  ;;  %v5049_v11 = vpop.f32.mrb[149].mxu0  ;;  %5308 = vmatmul.mubr.msk.bf16.gmra.mrb[144].mxu1 %vm1482_vm2, %v1430_v60 }
 0x21b   : > { %v1046_v12 = vpop.f32.mrb[150].mxu0  ;;  %5311 = vmatprep.mubr.msk.bf16.mxu1 %vm5991_vm0, %v9081_v31 }
 0x21c   : > { %9099 = vst [vmem:[#allocation64_spill] sm:$0xff] %v7024_v32  ;;  %v7029_v10 = vpack.c.bf16 %v2249_v48, %v2248_v26  ;;  %v7032_v54 = vadd.f32 %v6851_v40, %v1046_v12  ;;  %v5050_v28 = vpop.f32.mrb[151].mxu0  ;;  %v8906_v5 = vmax.f32 %v7024_v32, 0.0 }
 0x21d   : > { %v1792_v25 = vpop.f32.mrb[40].mxu1 }
 0x21e   : > { %9100 = vst [vmem:[#allocation65_spill] sm:$0xff] %v7032_v54  ;;  %v8905_v18 = vmax.f32 %v7032_v54, 0.0  ;;  %v1793_v57 = vadd.f32 %v6780_v62, %v1792_v25  ;;  %5156 = vmatmul.mubr.msk.bf16.gmra.mrb[0].mxu0 %vm517_vm1, %v477_v23  ;;  %v5205_v56 = vpop.f32.mrb[41].mxu1 }
 0x21f   : > { %v1795_v60 = vpop.f32.mrb[42].mxu1  ;;  %5695 = vmatprep.mubr.msk.bf16.mxu0 %vm5991_vm0, %v9081_v31 }
 0x220   : > { %v1431_v12 = vpack.c.bf16 %v8905_v18, %v8906_v5  ;;  %v1796_v48 = vadd.f32 %v6780_v62, %v1795_v60  ;;  %v5206_v26 = vpop.f32.mrb[43].mxu1  ;;  %v2250_v28 = vmax.f32 %v1793_v57, 0.0 }
 0x221   : > { %v1051_v11 = vpop.f32.mrb[152].mxu0 }
 0x222   : > { %v2251_v50 = vmax.f32 %v1796_v48, 0.0  ;;  %v7046_v25 = vadd.f32 %v6851_v40, %v1051_v11  ;;  %v5053_v23 = vpop.f32.mrb[153].mxu0  ;;  %5312 = vmatmul.mubr.msk.bf16.gmra.mrb[148].mxu1 %vm1482_vm2, %v1431_v12 }
 0x223   : > { %v1054_v56 = vpop.f32.mrb[154].mxu0  ;;  %5315 = vmatprep.mubr.msk.bf16.mxu1 %vm5991_vm0, %v9081_v31 }
 0x224   : > { %9101 = vst [vmem:[#allocation66_spill] sm:$0xff] %v7046_v25  ;;  %v7051_v32 = vpack.c.bf16 %v2251_v50, %v2250_v28  ;;  %v7054_v18 = vadd.f32 %v6851_v40, %v1054_v56  ;;  %v5054_v60 = vpop.f32.mrb[155].mxu0  ;;  %v8911_v57 = vmax.f32 %v7046_v25, 0.0 }
 0x225   : > { %v1800_v26 = vpop.f32.mrb[44].mxu1 }
 0x226   : > { %9102 = vst [vmem:[#allocation67_spill] sm:$0xff] %v7054_v18  ;;  %v8910_v48 = vmax.f32 %v7054_v18, 0.0  ;;  %v1801_v11 = vadd.f32 %v6780_v62, %v1800_v26  ;;  %v5209_v23 = vpop.f32.mrb[45].mxu1 }
 0x227   : > { %v1803_v5 = vpop.f32.mrb[46].mxu1 }
 0x228   : > { %v1432_v12 = vpack.c.bf16 %v8910_v48, %v8911_v57  ;;  %v1804_v50 = vadd.f32 %v6780_v62, %v1803_v5  ;;  %v5210_v28 = vpop.f32.mrb[47].mxu1  ;;  %v2252_v54 = vmax.f32 %v1801_v11, 0.0 }
 0x229   : > { %v1059_v56 = vpop.f32.mrb[156].mxu0 }
 0x22a   : > { %v2253_v60 = vmax.f32 %v1804_v50, 0.0  ;;  %v7065_v49 = vadd.f32 %v6851_v40, %v1059_v56  ;;  %v5057_v58 = vpop.f32.mrb[157].mxu0  ;;  %5316 = vmatmul.mubr.msk.bf16.gmra.mrb[152].mxu1 %vm1482_vm2, %v1432_v12 }
 0x22b   : > { %v1062_v26 = vpop.f32.mrb[158].mxu0  ;;  %5319 = vmatprep.mubr.msk.bf16.mxu1 %vm5991_vm0, %v9081_v31 }
 0x22c   : > { %9103 = vst [vmem:[#allocation68_spill] sm:$0xff] %v7065_v49  ;;  %v7070_v23 = vpack.c.bf16 %v2253_v60, %v2252_v54  ;;  %v7073_v48 = vadd.f32 %v6851_v40, %v1062_v26  ;;  %v5058_v5 = vpop.f32.mrb[159].mxu0  ;;  %v8916_v11 = vmax.f32 %v7065_v49, 0.0 }
 0x22d   : > { %v1808_v28 = vpop.f32.mrb[48].mxu1 }
 0x22e   : > { %9104 = vst [vmem:[#allocation69_spill] sm:$0xff] %v7073_v48  ;;  %v8915_v50 = vmax.f32 %v7073_v48, 0.0  ;;  %v1809_v56 = vadd.f32 %v6780_v62, %v1808_v28  ;;  %v5213_v58 = vpop.f32.mrb[49].mxu1 }
 0x22f   : > { %v1811_v57 = vpop.f32.mrb[50].mxu1 }
 0x230   : > { %v1433_v12 = vpack.c.bf16 %v8915_v50, %v8916_v11  ;;  %v1812_v54 = vadd.f32 %v6780_v62, %v1811_v57  ;;  %v5214_v60 = vpop.f32.mrb[51].mxu1  ;;  %v2254_v18 = vmax.f32 %v1809_v56, 0.0 }
 0x231   : > { %v1067_v26 = vpop.f32.mrb[160].mxu0 }
 0x232   : > { %v2255_v5 = vmax.f32 %v1812_v54, 0.0  ;;  %v7084_v25 = vadd.f32 %v6851_v40, %v1067_v26  ;;  %v5061_v24 = vpop.f32.mrb[161].mxu0  ;;  %5320 = vmatmul.mubr.msk.bf16.gmra.mrb[156].mxu1 %vm1482_vm2, %v1433_v12 }
 0x233   : > { %v1070_v28 = vpop.f32.mrb[162].mxu0  ;;  %5323 = vmatprep.mubr.msk.bf16.mxu1 %vm5991_vm0, %v9081_v31 }
 0x234   : > { %9105 = vst [vmem:[#allocation70_spill] sm:$0xff] %v7084_v25  ;;  %v7089_v58 = vpack.c.bf16 %v2255_v5, %v2254_v18  ;;  %v7092_v50 = vadd.f32 %v6851_v40, %v1070_v28  ;;  %v5062_v57 = vpop.f32.mrb[163].mxu0  ;;  %v8921_v56 = vmax.f32 %v7084_v25, 0.0 }
 0x235   : > { %v1816_v60 = vpop.f32.mrb[52].mxu1 }
 0x236   : > { %9106 = vst [vmem:[#allocation71_spill] sm:$0xff] %v7092_v50  ;;  %v8920_v54 = vmax.f32 %v7092_v50, 0.0  ;;  %v1817_v26 = vadd.f32 %v6780_v62, %v1816_v60  ;;  %v5217_v24 = vpop.f32.mrb[53].mxu1 }
 0x237   : > { %v1819_v11 = vpop.f32.mrb[54].mxu1 }
 0x238   : > { %v1434_v12 = vpack.c.bf16 %v8920_v54, %v8921_v56  ;;  %v1820_v18 = vadd.f32 %v6780_v62, %v1819_v11  ;;  %v5218_v5 = vpop.f32.mrb[55].mxu1  ;;  %v2256_v48 = vmax.f32 %v1817_v26, 0.0 }
 0x239   : > { %v1075_v28 = vpop.f32.mrb[164].mxu0 }
 0x23a   : > { %v2257_v57 = vmax.f32 %v1820_v18, 0.0  ;;  %v7103_v49 = vadd.f32 %v6851_v40, %v1075_v28  ;;  %v5065_v21 = vpop.f32.mrb[165].mxu0  ;;  %5324 = vmatmul.mubr.msk.bf16.gmra.mrb[160].mxu1 %vm1482_vm2, %v1434_v12 }
 0x23b   : > { %v1078_v60 = vpop.f32.mrb[166].mxu0  ;;  %5327 = vmatprep.mubr.msk.bf16.mxu1 %vm5991_vm0, %v9081_v31 }
 0x23c   : > { %9107 = vst [vmem:[#allocation72_spill] sm:$0xff] %v7103_v49  ;;  %v7108_v24 = vpack.c.bf16 %v2257_v57, %v2256_v48  ;;  %v7111_v54 = vadd.f32 %v6851_v40, %v1078_v60  ;;  %v5066_v11 = vpop.f32.mrb[167].mxu0  ;;  %v8926_v26 = vmax.f32 %v7103_v49, 0.0 }
 0x23d   : > { %v1824_v5 = vpop.f32.mrb[56].mxu1 }
 0x23e   : > { %9108 = vst [vmem:[#allocation73_spill] sm:$0xff] %v7111_v54  ;;  %v8925_v18 = vmax.f32 %v7111_v54, 0.0  ;;  %v1825_v28 = vadd.f32 %v6780_v62, %v1824_v5  ;;  %v5221_v21 = vpop.f32.mrb[57].mxu1 }
 0x23f   : > { %v1827_v56 = vpop.f32.mrb[58].mxu1 }
 0x240   : > { %v1435_v12 = vpack.c.bf16 %v8925_v18, %v8926_v26  ;;  %v1828_v48 = vadd.f32 %v6780_v62, %v1827_v56  ;;  %v5222_v57 = vpop.f32.mrb[59].mxu1  ;;  %v2258_v50 = vmax.f32 %v1825_v28, 0.0 }
 0x241   : > { %v1083_v60 = vpop.f32.mrb[168].mxu0 }
 0x242   : > { %v2259_v11 = vmax.f32 %v1828_v48, 0.0  ;;  %v7122_v25 = vadd.f32 %v6851_v40, %v1083_v60  ;;  %v5069_v43 = vpop.f32.mrb[169].mxu0  ;;  %5328 = vmatmul.mubr.msk.bf16.gmra.mrb[164].mxu1 %vm1482_vm2, %v1435_v12 }
 0x243   : > { %v1086_v5 = vpop.f32.mrb[170].mxu0  ;;  %5331 = vmatprep.mubr.msk.bf16.mxu1 %vm5991_vm0, %v9081_v31 }
 0x244   : > { %9109 = vst [vmem:[#allocation74_spill] sm:$0xff] %v7122_v25  ;;  %v7127_v21 = vpack.c.bf16 %v2259_v11, %v2258_v50  ;;  %v7130_v18 = vadd.f32 %v6851_v40, %v1086_v5  ;;  %v5070_v56 = vpop.f32.mrb[171].mxu0  ;;  %v8931_v28 = vmax.f32 %v7122_v25, 0.0 }
 0x245   : > { %v1832_v57 = vpop.f32.mrb[60].mxu1 }
 0x246   : > { %9110 = vst [vmem:[#allocation75_spill] sm:$0xff] %v7130_v18  ;;  %v8930_v48 = vmax.f32 %v7130_v18, 0.0  ;;  %v1833_v60 = vadd.f32 %v6780_v62, %v1832_v57  ;;  %v5225_v43 = vpop.f32.mrb[61].mxu1 }
 0x247   : > { %v1835_v26 = vpop.f32.mrb[62].mxu1 }
 0x248   : > { %v1436_v12 = vpack.c.bf16 %v8930_v48, %v8931_v28  ;;  %v1836_v50 = vadd.f32 %v6780_v62, %v1835_v26  ;;  %v5226_v11 = vpop.f32.mrb[63].mxu1  ;;  %v2260_v54 = vmax.f32 %v1833_v60, 0.0 }
 0x249   : > { %v1091_v5 = vpop.f32.mrb[172].mxu0 }
 0x24a   : > { %v2261_v56 = vmax.f32 %v1836_v50, 0.0  ;;  %v7141_v49 = vadd.f32 %v6851_v40, %v1091_v5  ;;  %v5073_v63 = vpop.f32.mrb[173].mxu0  ;;  %5332 = vmatmul.mubr.msk.bf16.gmra.mrb[168].mxu1 %vm1482_vm2, %v1436_v12 }
 0x24b   : > { %v1094_v57 = vpop.f32.mrb[174].mxu0  ;;  %5335 = vmatprep.mubr.msk.bf16.mxu1 %vm5991_vm0, %v9081_v31 }
 0x24c   : > { %9111 = vst [vmem:[#allocation76_spill] sm:$0xff] %v7141_v49  ;;  %v7146_v43 = vpack.c.bf16 %v2261_v56, %v2260_v54  ;;  %v7149_v48 = vadd.f32 %v6851_v40, %v1094_v57  ;;  %v5074_v26 = vpop.f32.mrb[175].mxu0  ;;  %v8936_v60 = vmax.f32 %v7141_v49, 0.0 }
 0x24d   : > { %v1840_v11 = vpop.f32.mrb[64].mxu1 }
 0x24e   : > { %9112 = vst [vmem:[#allocation77_spill] sm:$0xff] %v7149_v48  ;;  %v8935_v50 = vmax.f32 %v7149_v48, 0.0  ;;  %v1841_v5 = vadd.f32 %v6780_v62, %v1840_v11  ;;  %v5229_v63 = vpop.f32.mrb[65].mxu1 }
 0x24f   : > { %v1843_v28 = vpop.f32.mrb[66].mxu1 }
 0x250   : > { %v1437_v12 = vpack.c.bf16 %v8935_v50, %v8936_v60  ;;  %v1844_v54 = vadd.f32 %v6780_v62, %v1843_v28  ;;  %v5230_v56 = vpop.f32.mrb[67].mxu1  ;;  %v2262_v18 = vmax.f32 %v1841_v5, 0.0 }
 0x251   : > { %v1099_v57 = vpop.f32.mrb[176].mxu0 }
 0x252   : > { %v2263_v26 = vmax.f32 %v1844_v54, 0.0  ;;  %v7160_v25 = vadd.f32 %v6851_v40, %v1099_v57  ;;  %v5077_v0 = vpop.f32.mrb[177].mxu0  ;;  %5336 = vmatmul.mubr.msk.bf16.gmra.mrb[172].mxu1 %vm1482_vm2, %v1437_v12 }
 0x253   : > { %v1102_v11 = vpop.f32.mrb[178].mxu0  ;;  %5339 = vmatprep.mubr.msk.bf16.mxu1 %vm5991_vm0, %v9081_v31 }
 0x254   : > { %9113 = vst [vmem:[#allocation78_spill] sm:$0xff] %v7160_v25  ;;  %v7165_v63 = vpack.c.bf16 %v2263_v26, %v2262_v18  ;;  %v7168_v50 = vadd.f32 %v6851_v40, %v1102_v11  ;;  %v5078_v28 = vpop.f32.mrb[179].mxu0  ;;  %v8941_v5 = vmax.f32 %v7160_v25, 0.0 }
 0x255   : > { %v1848_v56 = vpop.f32.mrb[68].mxu1 }
 0x256   : > { %9114 = vst [vmem:[#allocation79_spill] sm:$0xff] %v7168_v50  ;;  %v8940_v54 = vmax.f32 %v7168_v50, 0.0  ;;  %v1849_v57 = vadd.f32 %v6780_v62, %v1848_v56  ;;  %v5233_v0 = vpop.f32.mrb[69].mxu1 }
 0x257   : > { %v1851_v60 = vpop.f32.mrb[70].mxu1 }
 0x258   : > { %v1438_v12 = vpack.c.bf16 %v8940_v54, %v8941_v5  ;;  %v1852_v18 = vadd.f32 %v6780_v62, %v1851_v60  ;;  %v5234_v26 = vpop.f32.mrb[71].mxu1  ;;  %v2264_v48 = vmax.f32 %v1849_v57, 0.0 }
 0x259   : > { %v1107_v11 = vpop.f32.mrb[180].mxu0 }
 0x25a   : > { %v2265_v28 = vmax.f32 %v1852_v18, 0.0  ;;  %v7179_v49 = vadd.f32 %v6851_v40, %v1107_v11  ;;  %v5081_v9 = vpop.f32.mrb[181].mxu0  ;;  %5340 = vmatmul.mubr.msk.bf16.gmra.mrb[176].mxu1 %vm1482_vm2, %v1438_v12 }
 0x25b   : > { %v1110_v56 = vpop.f32.mrb[182].mxu0  ;;  %5343 = vmatprep.mubr.msk.bf16.mxu1 %vm5991_vm0, %v9081_v31 }
 0x25c   : > { %9115 = vst [vmem:[#allocation80_spill] sm:$0xff] %v7179_v49  ;;  %v7184_v0 = vpack.c.bf16 %v2265_v28, %v2264_v48  ;;  %v7187_v54 = vadd.f32 %v6851_v40, %v1110_v56  ;;  %v5082_v60 = vpop.f32.mrb[183].mxu0  ;;  %v8946_v57 = vmax.f32 %v7179_v49, 0.0 }
 0x25d   : > { %v1856_v26 = vpop.f32.mrb[72].mxu1 }
 0x25e   : > { %9116 = vst [vmem:[#allocation81_spill] sm:$0xff] %v7187_v54  ;;  %v8945_v18 = vmax.f32 %v7187_v54, 0.0  ;;  %v1857_v11 = vadd.f32 %v6780_v62, %v1856_v26  ;;  %v5237_v9 = vpop.f32.mrb[73].mxu1 }
 0x25f   : > { %v1859_v5 = vpop.f32.mrb[74].mxu1 }
 0x260   : > { %v1439_v12 = vpack.c.bf16 %v8945_v18, %v8946_v57  ;;  %v1860_v48 = vadd.f32 %v6780_v62, %v1859_v5  ;;  %v5238_v28 = vpop.f32.mrb[75].mxu1  ;;  %v2266_v50 = vmax.f32 %v1857_v11, 0.0 }
 0x261   : > { %v1115_v56 = vpop.f32.mrb[184].mxu0 }
 0x262   : > { %v2267_v60 = vmax.f32 %v1860_v48, 0.0  ;;  %v7198_v25 = vadd.f32 %v6851_v40, %v1115_v56  ;;  %v5085_v38 = vpop.f32.mrb[185].mxu0  ;;  %5344 = vmatmul.mubr.msk.bf16.gmra.mrb[180].mxu1 %vm1482_vm2, %v1439_v12 }
 0x263   : > { %v1118_v26 = vpop.f32.mrb[186].mxu0  ;;  %5347 = vmatprep.mubr.msk.bf16.mxu1 %vm5991_vm0, %v9081_v31 }
 0x264   : > { %9117 = vst [vmem:[#allocation82_spill] sm:$0xff] %v7198_v25  ;;  %v7203_v9 = vpack.c.bf16 %v2267_v60, %v2266_v50  ;;  %v7206_v18 = vadd.f32 %v6851_v40, %v1118_v26  ;;  %v5086_v5 = vpop.f32.mrb[187].mxu0  ;;  %v8951_v11 = vmax.f32 %v7198_v25, 0.0 }
 0x265   : > { %v1864_v28 = vpop.f32.mrb[76].mxu1 }
 0x266   : > { %9118 = vst [vmem:[#allocation83_spill] sm:$0xff] %v7206_v18  ;;  %v8950_v48 = vmax.f32 %v7206_v18, 0.0  ;;  %v1865_v56 = vadd.f32 %v6780_v62, %v1864_v28  ;;  %v5241_v38 = vpop.f32.mrb[77].mxu1 }
 0x267   : > { %v1867_v57 = vpop.f32.mrb[78].mxu1 }
 0x268   : > { %v1440_v12 = vpack.c.bf16 %v8950_v48, %v8951_v11  ;;  %v1868_v50 = vadd.f32 %v6780_v62, %v1867_v57  ;;  %v5242_v60 = vpop.f32.mrb[79].mxu1  ;;  %v2268_v54 = vmax.f32 %v1865_v56, 0.0 }
 0x269   : > { %v1123_v26 = vpop.f32.mrb[188].mxu0 }
 0x26a   : > { %v2269_v5 = vmax.f32 %v1868_v50, 0.0  ;;  %v7217_v49 = vadd.f32 %v6851_v40, %v1123_v26  ;;  %v5089_v14 = vpop.f32.mrb[189].mxu0  ;;  %5348 = vmatmul.mubr.msk.bf16.gmra.mrb[184].mxu1 %vm1482_vm2, %v1440_v12 }
 0x26b   : > { %v1126_v28 = vpop.f32.mrb[190].mxu0  ;;  %5351 = vmatprep.mubr.msk.bf16.mxu1 %vm5991_vm0, %v9081_v31 }
 0x26c   : > { %9119 = vst [vmem:[#allocation84_spill] sm:$0xff] %v7217_v49  ;;  %v7222_v38 = vpack.c.bf16 %v2269_v5, %v2268_v54  ;;  %v7225_v48 = vadd.f32 %v6851_v40, %v1126_v28  ;;  %v5090_v57 = vpop.f32.mrb[191].mxu0  ;;  %v8956_v56 = vmax.f32 %v7217_v49, 0.0 }
 0x26d   : > { %v1872_v60 = vpop.f32.mrb[80].mxu1 }
 0x26e   : > { %9120 = vst [vmem:[#allocation85_spill] sm:$0xff] %v7225_v48  ;;  %v8955_v50 = vmax.f32 %v7225_v48, 0.0  ;;  %v1873_v26 = vadd.f32 %v6780_v62, %v1872_v60  ;;  %v5245_v14 = vpop.f32.mrb[81].mxu1 }
 0x26f   : > { %v1875_v11 = vpop.f32.mrb[82].mxu1 }
 0x270   : > { %v1441_v12 = vpack.c.bf16 %v8955_v50, %v8956_v56  ;;  %v1876_v54 = vadd.f32 %v6780_v62, %v1875_v11  ;;  %v5246_v5 = vpop.f32.mrb[83].mxu1  ;;  %v2270_v18 = vmax.f32 %v1873_v26, 0.0 }
 0x271   : > { %v1131_v28 = vpop.f32.mrb[192].mxu0 }
 0x272   : > { %v2271_v57 = vmax.f32 %v1876_v54, 0.0  ;;  %v7236_v25 = vadd.f32 %v6851_v40, %v1131_v28  ;;  %v5093_v34 = vpop.f32.mrb[193].mxu0  ;;  %5352 = vmatmul.mubr.msk.bf16.gmra.mrb[188].mxu1 %vm1482_vm2, %v1441_v12 }
 0x273   : > { %v1134_v60 = vpop.f32.mrb[194].mxu0  ;;  %5355 = vmatprep.mubr.msk.bf16.mxu1 %vm5991_vm0, %v9081_v31 }
 0x274   : > { %9121 = vst [vmem:[#allocation86_spill] sm:$0xff] %v7236_v25  ;;  %v7241_v14 = vpack.c.bf16 %v2271_v57, %v2270_v18  ;;  %v7244_v50 = vadd.f32 %v6851_v40, %v1134_v60  ;;  %v5094_v11 = vpop.f32.mrb[195].mxu0  ;;  %v8961_v26 = vmax.f32 %v7236_v25, 0.0 }
 0x275   : > { %v1880_v5 = vpop.f32.mrb[84].mxu1 }
 0x276   : > { %9122 = vst [vmem:[#allocation87_spill] sm:$0xff] %v7244_v50  ;;  %v8960_v54 = vmax.f32 %v7244_v50, 0.0  ;;  %v1881_v28 = vadd.f32 %v6780_v62, %v1880_v5  ;;  %v5249_v34 = vpop.f32.mrb[85].mxu1 }
 0x277   : > { %v1883_v56 = vpop.f32.mrb[86].mxu1 }
 0x278   : > { %v1442_v12 = vpack.c.bf16 %v8960_v54, %v8961_v26  ;;  %v1884_v18 = vadd.f32 %v6780_v62, %v1883_v56  ;;  %v5250_v57 = vpop.f32.mrb[87].mxu1  ;;  %v2272_v48 = vmax.f32 %v1881_v28, 0.0 }
 0x279   : > { %v1139_v60 = vpop.f32.mrb[196].mxu0 }
 0x27a   : > { %v2273_v11 = vmax.f32 %v1884_v18, 0.0  ;;  %v7255_v49 = vadd.f32 %v6851_v40, %v1139_v60  ;;  %v5097_v15 = vpop.f32.mrb[197].mxu0  ;;  %5356 = vmatmul.mubr.msk.bf16.gmra.mrb[192].mxu1 %vm1482_vm2, %v1442_v12 }
 0x27b   : > { %v1142_v5 = vpop.f32.mrb[198].mxu0  ;;  %5359 = vmatprep.mubr.msk.bf16.mxu1 %vm5991_vm0, %v9081_v31 }
 0x27c   : > { %9123 = vst [vmem:[#allocation88_spill] sm:$0xff] %v7255_v49  ;;  %v7260_v34 = vpack.c.bf16 %v2273_v11, %v2272_v48  ;;  %v7263_v54 = vadd.f32 %v6851_v40, %v1142_v5  ;;  %v5098_v56 = vpop.f32.mrb[199].mxu0  ;;  %v8966_v28 = vmax.f32 %v7255_v49, 0.0 }
 0x27d   : > { %v1888_v57 = vpop.f32.mrb[88].mxu1 }
 0x27e   : > { %9124 = vst [vmem:[#allocation89_spill] sm:$0xff] %v7263_v54  ;;  %v8965_v18 = vmax.f32 %v7263_v54, 0.0  ;;  %v1889_v60 = vadd.f32 %v6780_v62, %v1888_v57  ;;  %v5253_v15 = vpop.f32.mrb[89].mxu1 }
 0x27f   : > { %v1891_v26 = vpop.f32.mrb[90].mxu1 }
 0x280   : > { %v1443_v12 = vpack.c.bf16 %v8965_v18, %v8966_v28  ;;  %v1892_v48 = vadd.f32 %v6780_v62, %v1891_v26  ;;  %v5254_v11 = vpop.f32.mrb[91].mxu1  ;;  %v2274_v50 = vmax.f32 %v1889_v60, 0.0 }
 0x281   : > { %v1147_v5 = vpop.f32.mrb[200].mxu0 }
 0x282   : > { %v2275_v56 = vmax.f32 %v1892_v48, 0.0  ;;  %v7274_v25 = vadd.f32 %v6851_v40, %v1147_v5  ;;  %v5101_v51 = vpop.f32.mrb[201].mxu0  ;;  %5360 = vmatmul.mubr.msk.bf16.gmra.mrb[196].mxu1 %vm1482_vm2, %v1443_v12 }
 0x283   : > { %v1150_v57 = vpop.f32.mrb[202].mxu0  ;;  %5363 = vmatprep.mubr.msk.bf16.mxu1 %vm5991_vm0, %v9081_v31  ;;  %v7289_v51 = vld [vmem:[%s8786_s4] ss:$0 sm:$0xff] }
 0x284   : > { %9125 = vst [vmem:[#allocation90_spill] sm:$0xff] %v7274_v25  ;;  %v7279_v15 = vpack.c.bf16 %v2275_v56, %v2274_v50  ;;  %v7282_v18 = vadd.f32 %v6851_v40, %v1150_v57  ;;  %v5102_v62 = vpop.f32.mrb[203].mxu0  ;;  %v8971_v60 = vmax.f32 %v7274_v25, 0.0 }
 0x285   : > { %v1896_v26 = vpop.f32.mrb[92].mxu1 }
 0x286   : > { %9126 = vst [vmem:[#allocation91_spill] sm:$0xff] %v7282_v18  ;;  %v8970_v48 = vmax.f32 %v7282_v18, 0.0  ;;  %v1897_v12 = vadd.f32 %v7289_v51, %v1896_v26  ;;  %v5257_v11 = vpop.f32.mrb[93].mxu1 }
 0x287   : > { %v1899_v5 = vpop.f32.mrb[94].mxu1 }
 0x288   : > { %v1444_v50 = vpack.c.bf16 %v8970_v48, %v8971_v60  ;;  %v1900_v56 = vadd.f32 %v7289_v51, %v1899_v5  ;;  %v5258_v57 = vpop.f32.mrb[95].mxu1  ;;  %v2276_v28 = vmax.f32 %v1897_v12, 0.0 }
 0x289   : > { %v1155_v62 = vpop.f32.mrb[204].mxu0 }
 0x28a   : > { %v2277_v54 = vmax.f32 %v1900_v56, 0.0  ;;  %v7298_v49 = vadd.f32 %v6851_v40, %v1155_v62  ;;  %v5105_v41 = vpop.f32.mrb[205].mxu0  ;;  %5364 = vmatmul.mubr.msk.bf16.gmra.mrb[200].mxu1 %vm1482_vm2, %v1444_v50 }
 0x28b   : > { %v1158_v26 = vpop.f32.mrb[206].mxu0  ;;  %5367 = vmatprep.mubr.msk.bf16.mxu1 %vm5991_vm0, %v9081_v31 }
 0x28c   : > { %9127 = vst [vmem:[#allocation92_spill] sm:$0xff] %v7298_v49  ;;  %v7303_v11 = vpack.c.bf16 %v2277_v54, %v2276_v28  ;;  %v7306_v48 = vadd.f32 %v6851_v40, %v1158_v26  ;;  %v5106_v5 = vpop.f32.mrb[207].mxu0  ;;  %v8976_v12 = vmax.f32 %v7298_v49, 0.0 }
 0x28d   : > { %v1904_v57 = vpop.f32.mrb[96].mxu1 }
 0x28e   : > { %9128 = vst [vmem:[#allocation93_spill] sm:$0xff] %v7306_v48  ;;  %v8975_v56 = vmax.f32 %v7306_v48, 0.0  ;;  %v1905_v62 = vadd.f32 %v7289_v51, %v1904_v57  ;;  %v5261_v41 = vpop.f32.mrb[97].mxu1 }
 0x28f   : > { %v1907_v60 = vpop.f32.mrb[98].mxu1 }
 0x290   : > { %v1445_v50 = vpack.c.bf16 %v8975_v56, %v8976_v12  ;;  %v1908_v54 = vadd.f32 %v7289_v51, %v1907_v60  ;;  %v5262_v28 = vpop.f32.mrb[99].mxu1  ;;  %v2278_v18 = vmax.f32 %v1905_v62, 0.0 }
 0x291   : > { %v1163_v26 = vpop.f32.mrb[208].mxu0 }
 0x292   : > { %v2279_v5 = vmax.f32 %v1908_v54, 0.0  ;;  %v7317_v25 = vadd.f32 %v6851_v40, %v1163_v26  ;;  %v5109_v17 = vpop.f32.mrb[209].mxu0  ;;  %5368 = vmatmul.mubr.msk.bf16.gmra.mrb[204].mxu1 %vm1482_vm2, %v1445_v50 }
 0x293   : > { %v1166_v57 = vpop.f32.mrb[210].mxu0  ;;  %5371 = vmatprep.mubr.msk.bf16.mxu1 %vm5991_vm0, %v9081_v31 }
 0x294   : > { %9129 = vst [vmem:[#allocation94_spill] sm:$0xff] %v7317_v25  ;;  %v7322_v41 = vpack.c.bf16 %v2279_v5, %v2278_v18  ;;  %v7325_v56 = vadd.f32 %v6851_v40, %v1166_v57  ;;  %v5110_v60 = vpop.f32.mrb[211].mxu0  ;;  %v8981_v62 = vmax.f32 %v7317_v25, 0.0 }
 0x295   : > { %v1912_v28 = vpop.f32.mrb[100].mxu1 }
 0x296   : > { %9130 = vst [vmem:[#allocation95_spill] sm:$0xff] %v7325_v56  ;;  %v8980_v54 = vmax.f32 %v7325_v56, 0.0  ;;  %v1913_v26 = vadd.f32 %v7289_v51, %v1912_v28  ;;  %v5265_v17 = vpop.f32.mrb[101].mxu1  ;;  %v7357_v56 = vld [vmem:[%s8784_s2] ss:$0 sm:$0xff] }
 0x297   : > { %v1915_v12 = vpop.f32.mrb[102].mxu1 }
 0x298   : > { %v1446_v50 = vpack.c.bf16 %v8980_v54, %v8981_v62  ;;  %v1916_v18 = vadd.f32 %v7289_v51, %v1915_v12  ;;  %v5266_v5 = vpop.f32.mrb[103].mxu1  ;;  %v2280_v48 = vmax.f32 %v1913_v26, 0.0 }
 0x299   : > { %v1171_v57 = vpop.f32.mrb[212].mxu0 }
 0x29a   : > { %v2281_v60 = vmax.f32 %v1916_v18, 0.0  ;;  %v7336_v49 = vadd.f32 %v6851_v40, %v1171_v57  ;;  %v5113_v6 = vpop.f32.mrb[213].mxu0  ;;  %5372 = vmatmul.mubr.msk.bf16.gmra.mrb[208].mxu1 %vm1482_vm2, %v1446_v50 }
 0x29b   : > { %v1174_v28 = vpop.f32.mrb[214].mxu0  ;;  %5375 = vmatprep.mubr.msk.bf16.mxu1 %vm5991_vm0, %v9081_v31 }
 0x29c   : > { %9131 = vst [vmem:[#allocation96_spill] sm:$0xff] %v7336_v49  ;;  %v7341_v17 = vpack.c.bf16 %v2281_v60, %v2280_v48  ;;  %v7344_v54 = vadd.f32 %v6851_v40, %v1174_v28  ;;  %v5114_v12 = vpop.f32.mrb[215].mxu0  ;;  %v8985_v26 = vmax.f32 %v7336_v49, 0.0 }
 0x29d   : > { %v1920_v5 = vpop.f32.mrb[104].mxu1 }
 0x29e   : > { %9132 = vst [vmem:[#allocation97_spill] sm:$0xff] %v7344_v54  ;;  %v8984_v18 = vmax.f32 %v7344_v54, 0.0  ;;  %v1921_v57 = vadd.f32 %v7289_v51, %v1920_v5  ;;  %v5269_v6 = vpop.f32.mrb[105].mxu1 }
 0x29f   : > { %v1923_v62 = vpop.f32.mrb[106].mxu1 }
 0x2a0   : > { %v1447_v50 = vpack.c.bf16 %v8984_v18, %v8985_v26  ;;  %v1924_v48 = vadd.f32 %v7289_v51, %v1923_v62  ;;  %v5270_v60 = vpop.f32.mrb[107].mxu1  ;;  %v2282_v28 = vmax.f32 %v1921_v57, 0.0 }
 0x2a1   : > { %v1179_v40 = vpop.f32.mrb[216].mxu0 }
 0x2a2   : > { %v2283_v12 = vmax.f32 %v1924_v48, 0.0  ;;  %v7360_v5 = vadd.f32 %v7357_v56, %v1179_v40  ;;  %v5117_v6 = vpop.f32.mrb[217].mxu0  ;;  %5376 = vmatmul.mubr.msk.bf16.gmra.mrb[212].mxu1 %vm1482_vm2, %v1447_v50 }
 0x2a3   : > { %v1182_v49 = vpop.f32.mrb[218].mxu0  ;;  %5379 = vmatprep.mubr.msk.bf16.mxu1 %vm5991_vm0, %v9081_v31 }
 0x2a4   : > { %9133 = vst [vmem:[#allocation98_spill] sm:$0xff] %v7360_v5  ;;  %v7365_v62 = vpack.c.bf16 %v2283_v12, %v2282_v28  ;;  %v7368_v57 = vadd.f32 %v7357_v56, %v1182_v49  ;;  %v5118_v48 = vpop.f32.mrb[219].mxu0  ;;  %v8991_v18 = vmax.f32 %v7360_v5, 0.0 }
 0x2a5   : > { %v1928_v60 = vpop.f32.mrb[108].mxu1 }
 0x2a6   : > { %9134 = vst [vmem:[#allocation99_spill] sm:$0xff] %v7368_v57  ;;  %v8990_v26 = vmax.f32 %v7368_v57, 0.0  ;;  %v1929_v40 = vadd.f32 %v7289_v51, %v1928_v60  ;;  %v5273_v6 = vpop.f32.mrb[109].mxu1 }
 0x2a7   : > { %v1931_v54 = vpop.f32.mrb[110].mxu1 }
 0x2a8   : > { %v1448_v50 = vpack.c.bf16 %v8990_v26, %v8991_v18  ;;  %v1932_v28 = vadd.f32 %v7289_v51, %v1931_v54  ;;  %v5274_v12 = vpop.f32.mrb[111].mxu1  ;;  %v2284_v25 = vmax.f32 %v1929_v40, 0.0 }
 0x2a9   : > { %v1187_v49 = vpop.f32.mrb[220].mxu0 }
 0x2aa   : > { %v2285_v48 = vmax.f32 %v1932_v28, 0.0  ;;  %v7379_v52 = vadd.f32 %v7357_v56, %v1187_v49  ;;  %v5121_v44 = vpop.f32.mrb[221].mxu0  ;;  %5380 = vmatmul.mubr.msk.bf16.gmra.mrb[216].mxu1 %vm1482_vm2, %v1448_v50 }
 0x2ab   : > { %v1190_v60 = vpop.f32.mrb[222].mxu0  ;;  %5383 = vmatprep.mubr.msk.bf16.mxu1 %vm5991_vm0, %v9081_v31 }
 0x2ac   : > { %9135 = vst [vmem:[#allocation100_spill] sm:$0xff] %v7379_v52  ;;  %v7384_v6 = vpack.c.bf16 %v2285_v48, %v2284_v25  ;;  %v7387_v26 = vadd.f32 %v7357_v56, %v1190_v60  ;;  %v5122_v54 = vpop.f32.mrb[223].mxu0  ;;  %v8996_v40 = vmax.f32 %v7379_v52, 0.0 }
 0x2ad   : > { %v1936_v12 = vpop.f32.mrb[112].mxu1 }
 0x2ae   : > { %9136 = vst [vmem:[#allocation101_spill] sm:$0xff] %v7387_v26  ;;  %v8995_v28 = vmax.f32 %v7387_v26, 0.0  ;;  %v1937_v49 = vadd.f32 %v7289_v51, %v1936_v12  ;;  %v5277_v44 = vpop.f32.mrb[113].mxu1 }
 0x2af   : > { %v1939_v18 = vpop.f32.mrb[114].mxu1 }
 0x2b0   : > { %v1449_v50 = vpack.c.bf16 %v8995_v28, %v8996_v40  ;;  %v1940_v25 = vadd.f32 %v7289_v51, %v1939_v18  ;;  %v5278_v48 = vpop.f32.mrb[115].mxu1  ;;  %v2286_v57 = vmax.f32 %v1937_v49, 0.0 }
 0x2b1   : > { %v1195_v60 = vpop.f32.mrb[224].mxu0 }
 0x2b2   : > { %v2287_v54 = vmax.f32 %v1940_v25, 0.0  ;;  %v7398_v5 = vadd.f32 %v7357_v56, %v1195_v60  ;;  %v5125_v27 = vpop.f32.mrb[225].mxu0  ;;  %5384 = vmatmul.mubr.msk.bf16.gmra.mrb[220].mxu1 %vm1482_vm2, %v1449_v50 }
 0x2b3   : > { %v1198_v12 = vpop.f32.mrb[226].mxu0  ;;  %5387 = vmatprep.mubr.msk.bf16.mxu1 %vm5991_vm0, %v9081_v31 }
 0x2b4   : > { %9137 = vst [vmem:[#allocation102_spill] sm:$0xff] %v7398_v5  ;;  %v7403_v44 = vpack.c.bf16 %v2287_v54, %v2286_v57  ;;  %v7406_v28 = vadd.f32 %v7357_v56, %v1198_v12  ;;  %v5126_v18 = vpop.f32.mrb[227].mxu0  ;;  %v9001_v49 = vmax.f32 %v7398_v5, 0.0 }
 0x2b5   : > { %v1944_v48 = vpop.f32.mrb[116].mxu1 }
 0x2b6   : > { %9138 = vst [vmem:[#allocation103_spill] sm:$0xff] %v7406_v28  ;;  %v9000_v25 = vmax.f32 %v7406_v28, 0.0  ;;  %v1945_v60 = vadd.f32 %v7289_v51, %v1944_v48  ;;  %v5281_v27 = vpop.f32.mrb[117].mxu1 }
 0x2b7   : > { %v1947_v40 = vpop.f32.mrb[118].mxu1 }
 0x2b8   : > { %v1450_v50 = vpack.c.bf16 %v9000_v25, %v9001_v49  ;;  %v1948_v57 = vadd.f32 %v7289_v51, %v1947_v40  ;;  %v5282_v54 = vpop.f32.mrb[119].mxu1  ;;  %v2288_v26 = vmax.f32 %v1945_v60, 0.0 }
 0x2b9   : > { %v1203_v12 = vpop.f32.mrb[228].mxu0 }
 0x2ba   : > { %v2289_v18 = vmax.f32 %v1948_v57, 0.0  ;;  %v7417_v52 = vadd.f32 %v7357_v56, %v1203_v12  ;;  %v5129_v19 = vpop.f32.mrb[229].mxu0  ;;  %5388 = vmatmul.mubr.msk.bf16.gmra.mrb[224].mxu1 %vm1482_vm2, %v1450_v50 }
 0x2bb   : > { %v1206_v48 = vpop.f32.mrb[230].mxu0  ;;  %5391 = vmatprep.mubr.msk.bf16.mxu1 %vm5991_vm0, %v9081_v31 }
 0x2bc   : > { %9139 = vst [vmem:[#allocation104_spill] sm:$0xff] %v7417_v52  ;;  %v7422_v27 = vpack.c.bf16 %v2289_v18, %v2288_v26  ;;  %v7425_v25 = vadd.f32 %v7357_v56, %v1206_v48  ;;  %v5130_v40 = vpop.f32.mrb[231].mxu0  ;;  %v9006_v60 = vmax.f32 %v7417_v52, 0.0 }
 0x2bd   : > { %v1952_v54 = vpop.f32.mrb[120].mxu1 }
 0x2be   : > { %9140 = vst [vmem:[#allocation105_spill] sm:$0xff] %v7425_v25  ;;  %v9005_v57 = vmax.f32 %v7425_v25, 0.0  ;;  %v1953_v12 = vadd.f32 %v7289_v51, %v1952_v54  ;;  %v5285_v19 = vpop.f32.mrb[121].mxu1 }
 0x2bf   : > { %v1955_v49 = vpop.f32.mrb[122].mxu1 }
 0x2c0   : > { %v1451_v50 = vpack.c.bf16 %v9005_v57, %v9006_v60  ;;  %v1956_v26 = vadd.f32 %v7289_v51, %v1955_v49  ;;  %v5286_v18 = vpop.f32.mrb[123].mxu1  ;;  %v2290_v28 = vmax.f32 %v1953_v12, 0.0 }
 0x2c1   : > { %v1211_v48 = vpop.f32.mrb[232].mxu0 }
 0x2c2   : > { %v2291_v40 = vmax.f32 %v1956_v26, 0.0  ;;  %v7436_v5 = vadd.f32 %v7357_v56, %v1211_v48  ;;  %v5133_v7 = vpop.f32.mrb[233].mxu0  ;;  %5392 = vmatmul.mubr.msk.bf16.gmra.mrb[228].mxu1 %vm1482_vm2, %v1451_v50 }
 0x2c3   : > { %v1214_v54 = vpop.f32.mrb[234].mxu0  ;;  %5395 = vmatprep.mubr.msk.bf16.mxu1 %vm5991_vm0, %v9081_v31 }
 0x2c4   : > { %9141 = vst [vmem:[#allocation106_spill] sm:$0xff] %v7436_v5  ;;  %v7441_v19 = vpack.c.bf16 %v2291_v40, %v2290_v28  ;;  %v7444_v57 = vadd.f32 %v7357_v56, %v1214_v54  ;;  %v5134_v49 = vpop.f32.mrb[235].mxu0  ;;  %v9011_v12 = vmax.f32 %v7436_v5, 0.0 }
 0x2c5   : > { %v1960_v18 = vpop.f32.mrb[124].mxu1 }
 0x2c6   : > { %9142 = vst [vmem:[#allocation107_spill] sm:$0xff] %v7444_v57  ;;  %v9010_v26 = vmax.f32 %v7444_v57, 0.0  ;;  %v1961_v48 = vadd.f32 %v7289_v51, %v1960_v18  ;;  %v5289_v7 = vpop.f32.mrb[125].mxu1 }
 0x2c7   : > { %v1963_v60 = vpop.f32.mrb[126].mxu1 }
 0x2c8   : > { %v1452_v50 = vpack.c.bf16 %v9010_v26, %v9011_v12  ;;  %v1964_v28 = vadd.f32 %v7289_v51, %v1963_v60  ;;  %v5290_v40 = vpop.f32.mrb[127].mxu1  ;;  %v2292_v25 = vmax.f32 %v1961_v48, 0.0 }
 0x2c9   : > { %v1219_v54 = vpop.f32.mrb[236].mxu0 }
 0x2ca   : > { %v2293_v49 = vmax.f32 %v1964_v28, 0.0  ;;  %v7455_v52 = vadd.f32 %v7357_v56, %v1219_v54  ;;  %v5137_v2 = vpop.f32.mrb[237].mxu0  ;;  %5396 = vmatmul.mubr.msk.bf16.gmra.mrb[232].mxu1 %vm1482_vm2, %v1452_v50 }
 0x2cb   : > { %v1222_v18 = vpop.f32.mrb[238].mxu0  ;;  %5399 = vmatprep.mubr.msk.bf16.mxu1 %vm5991_vm0, %v9081_v31 }
 0x2cc   : > { %9143 = vst [vmem:[#allocation108_spill] sm:$0xff] %v7455_v52  ;;  %v7460_v7 = vpack.c.bf16 %v2293_v49, %v2292_v25  ;;  %v7463_v26 = vadd.f32 %v7357_v56, %v1222_v18  ;;  %v5138_v60 = vpop.f32.mrb[239].mxu0  ;;  %v9016_v48 = vmax.f32 %v7455_v52, 0.0 }
 0x2cd   : > { %v1968_v40 = vpop.f32.mrb[128].mxu1 }
 0x2ce   : > { %9144 = vst [vmem:[#allocation109_spill] sm:$0xff] %v7463_v26  ;;  %v9015_v28 = vmax.f32 %v7463_v26, 0.0  ;;  %v1969_v54 = vadd.f32 %v7289_v51, %v1968_v40  ;;  %v5293_v2 = vpop.f32.mrb[129].mxu1 }
 0x2cf   : > { %v1971_v12 = vpop.f32.mrb[130].mxu1 }
 0x2d0   : > { %v1453_v50 = vpack.c.bf16 %v9015_v28, %v9016_v48  ;;  %v1972_v25 = vadd.f32 %v7289_v51, %v1971_v12  ;;  %v5294_v49 = vpop.f32.mrb[131].mxu1  ;;  %v2294_v57 = vmax.f32 %v1969_v54, 0.0 }
 0x2d1   : > { %v1227_v18 = vpop.f32.mrb[240].mxu0 }
 0x2d2   : > { %v2295_v60 = vmax.f32 %v1972_v25, 0.0  ;;  %v7474_v5 = vadd.f32 %v7357_v56, %v1227_v18  ;;  %v5141_v53 = vpop.f32.mrb[241].mxu0  ;;  %5400 = vmatmul.mubr.msk.bf16.gmra.mrb[236].mxu1 %vm1482_vm2, %v1453_v50 }
 0x2d3   : > { %v1230_v40 = vpop.f32.mrb[242].mxu0  ;;  %5403 = vmatprep.mubr.msk.bf16.mxu1 %vm5991_vm0, %v9081_v31 }
 0x2d4   : > { %9145 = vst [vmem:[#allocation110_spill] sm:$0xff] %v7474_v5  ;;  %v7479_v2 = vpack.c.bf16 %v2295_v60, %v2294_v57  ;;  %v7482_v28 = vadd.f32 %v7357_v56, %v1230_v40  ;;  %v5142_v12 = vpop.f32.mrb[243].mxu0  ;;  %v9021_v54 = vmax.f32 %v7474_v5, 0.0 }
 0x2d5   : > { %v1976_v49 = vpop.f32.mrb[132].mxu1 }
 0x2d6   : > { %9146 = vst [vmem:[#allocation111_spill] sm:$0xff] %v7479_v2  ;;  %9147 = vst [vmem:[#allocation112_spill] sm:$0xff] %v7482_v28  ;;  %v9020_v25 = vmax.f32 %v7482_v28, 0.0  ;;  %v1977_v18 = vadd.f32 %v7289_v51, %v1976_v49  ;;  %v5297_v53 = vpop.f32.mrb[133].mxu1 }
 0x2d7   : > { %v1979_v48 = vpop.f32.mrb[134].mxu1 }
 0x2d8   : > { %v1454_v50 = vpack.c.bf16 %v9020_v25, %v9021_v54  ;;  %v1980_v57 = vadd.f32 %v7289_v51, %v1979_v48  ;;  %v5298_v60 = vpop.f32.mrb[135].mxu1  ;;  %v2296_v26 = vmax.f32 %v1977_v18, 0.0 }
 0x2d9   : > { %v1235_v40 = vpop.f32.mrb[244].mxu0 }
 0x2da   : > { %v2297_v12 = vmax.f32 %v1980_v57, 0.0  ;;  %v7493_v52 = vadd.f32 %v7357_v56, %v1235_v40  ;;  %v5145_v47 = vpop.f32.mrb[245].mxu0  ;;  %5404 = vmatmul.mubr.msk.bf16.gmra.mrb[240].mxu1 %vm1482_vm2, %v1454_v50 }
 0x2db   : > { %v1238_v49 = vpop.f32.mrb[246].mxu0  ;;  %5407 = vmatprep.mubr.msk.bf16.mxu1 %vm5991_vm0, %v9081_v31 }
 0x2dc   : > { %9148 = vst [vmem:[#allocation113_spill] sm:$0xff] %v7493_v52  ;;  %v7498_v53 = vpack.c.bf16 %v2297_v12, %v2296_v26  ;;  %v7501_v25 = vadd.f32 %v7357_v56, %v1238_v49  ;;  %v5146_v48 = vpop.f32.mrb[247].mxu0  ;;  %v9025_v18 = vmax.f32 %v7493_v52, 0.0 }
 0x2dd   : > { %v1984_v60 = vpop.f32.mrb[136].mxu1 }
 0x2de   : > { %9149 = vst [vmem:[#allocation114_spill] sm:$0xff] %v7498_v53  ;;  %9150 = vst [vmem:[#allocation115_spill] sm:$0xff] %v7501_v25  ;;  %v9024_v57 = vmax.f32 %v7501_v25, 0.0  ;;  %v1985_v40 = vadd.f32 %v7289_v51, %v1984_v60  ;;  %v5301_v47 = vpop.f32.mrb[137].mxu1 }
 0x2df   : > { %v1987_v54 = vpop.f32.mrb[138].mxu1 }
 0x2e0   : > { %v1455_v50 = vpack.c.bf16 %v9024_v57, %v9025_v18  ;;  %v1988_v26 = vadd.f32 %v7289_v51, %v1987_v54  ;;  %v5302_v12 = vpop.f32.mrb[139].mxu1  ;;  %v2298_v28 = vmax.f32 %v1985_v40, 0.0 }
 0x2e1   : > { %v1243_v49 = vpop.f32.mrb[248].mxu0 }
 0x2e2   : > { %v2299_v48 = vmax.f32 %v1988_v26, 0.0  ;;  %v7512_v5 = vadd.f32 %v7357_v56, %v1243_v49  ;;  %v5149_v53 = vpop.f32.mrb[249].mxu0  ;;  %5408 = vmatmul.mubr.msk.bf16.gmra.mrb[244].mxu1 %vm1482_vm2, %v1455_v50 }
 0x2e3   : > { %v1246_v60 = vpop.f32.mrb[250].mxu0  ;;  %5411 = vmatprep.mubr.msk.bf16.mxu1 %vm5991_vm0, %v9081_v31 }
 0x2e4   : > { %9151 = vst [vmem:[#allocation116_spill] sm:$0xff] %v7512_v5  ;;  %v7517_v47 = vpack.c.bf16 %v2299_v48, %v2298_v28  ;;  %v7520_v57 = vadd.f32 %v7357_v56, %v1246_v60  ;;  %v5150_v54 = vpop.f32.mrb[251].mxu0  ;;  %v9029_v40 = vmax.f32 %v7512_v5, 0.0 }
 0x2e5   : > { %v1992_v12 = vpop.f32.mrb[140].mxu1 }
 0x2e6   : > { %9152 = vst [vmem:[#allocation117_spill] sm:$0xff] %v7517_v47  ;;  %9153 = vst [vmem:[#allocation118_spill] sm:$0xff] %v7520_v57  ;;  %v9028_v26 = vmax.f32 %v7520_v57, 0.0  ;;  %v1993_v49 = vadd.f32 %v7289_v51, %v1992_v12  ;;  %v5305_v53 = vpop.f32.mrb[141].mxu1 }
 0x2e7   : > { %v1995_v18 = vpop.f32.mrb[142].mxu1 }
 0x2e8   : > { %v1456_v50 = vpack.c.bf16 %v9028_v26, %v9029_v40  ;;  %v1996_v28 = vadd.f32 %v7289_v51, %v1995_v18  ;;  %v5306_v48 = vpop.f32.mrb[143].mxu1  ;;  %v2300_v25 = vmax.f32 %v1993_v49, 0.0 }
 0x2e9   : > { %v1251_v60 = vpop.f32.mrb[252].mxu0 }
 0x2ea   : > { %v2301_v54 = vmax.f32 %v1996_v28, 0.0  ;;  %v7531_v52 = vadd.f32 %v7357_v56, %v1251_v60  ;;  %v5153_v47 = vpop.f32.mrb[253].mxu0  ;;  %5412 = vmatmul.mubr.msk.bf16.gmra.mrb[248].mxu1 %vm1482_vm2, %v1456_v50 }
 0x2eb   : > { %v1254_v12 = vpop.f32.mrb[254].mxu0  ;;  %5415 = vmatprep.mubr.msk.bf16.mxu1 %vm5991_vm0, %v9081_v31 }
 0x2ec   : > { %v7536_v53 = vpack.c.bf16 %v2301_v54, %v2300_v25  ;;  %v7539_v26 = vadd.f32 %v7357_v56, %v1254_v12  ;;  %v5154_v18 = vpop.f32.mrb[255].mxu0  ;;  %v9033_v49 = vmax.f32 %v7531_v52, 0.0 }
 0x2ed   : > { %v2000_v48 = vpop.f32.mrb[144].mxu1 }
 0x2ee   : > { %9154 = vst [vmem:[#allocation119_spill] sm:$0xff] %v7536_v53  ;;  %9155 = vst [vmem:[#allocation120_spill] sm:$0xff] %v7539_v26  ;;  %v9032_v28 = vmax.f32 %v7539_v26, 0.0  ;;  %v2001_v60 = vadd.f32 %v7289_v51, %v2000_v48  ;;  %v5309_v47 = vpop.f32.mrb[145].mxu1 }
 0x2ef   : > { %v2003_v40 = vpop.f32.mrb[146].mxu1 }
 0x2f0   : > { %v1457_v50 = vpack.c.bf16 %v9032_v28, %v9033_v49  ;;  %v2004_v25 = vadd.f32 %v7289_v51, %v2003_v40  ;;  %v5310_v54 = vpop.f32.mrb[147].mxu1  ;;  %v2302_v57 = vmax.f32 %v2001_v60, 0.0 }
 0x2f1   : > { %v1259_v12 = vpop.f32.mrb[0].mxu0 }
 0x2f2   : > { %v2303_v18 = vmax.f32 %v2004_v25, 0.0  ;;  %v1260_v5 = vadd.f32 %v7357_v56, %v1259_v12  ;;  %v5157_v53 = vpop.f32.mrb[1].mxu0  ;;  %5416 = vmatmul.mubr.msk.bf16.gmra.mrb[252].mxu1 %vm1482_vm2, %v1457_v50 }
 0x2f3   : > { %v1262_v2 = vpop.f32.mrb[2].mxu0  ;;  %5419 = vmatprep.mubr.msk.bf16.mxu1 %vm5991_vm0, %v9081_v31 }
 0x2f4   : > { %v7553_v48 = vpack.c.bf16 %v2303_v18, %v2302_v57  ;;  %v7555_v47 = vmax.f32 %v1260_v5, 0.0  ;;  %v5158_v28 = vpop.f32.mrb[3].mxu0 }
 0x2f5   : > { %v2008_v49 = vpop.f32.mrb[148].mxu1 }
 0x2f6   : > { %9156 = vst [vmem:[#allocation121_spill] sm:$0xff] %v7555_v47  ;;  %v1458_v40 = vpack.c.bf16 %v7555_v47, %v7555_v47  ;;  %v2009_v60 = vadd.f32 %v7289_v51, %v2008_v49  ;;  %v5313_v25 = vpop.f32.mrb[149].mxu1 }
 0x2f7   : > { %v2011_v56 = vpop.f32.mrb[150].mxu1 }
 0x2f8   : > { %v2012_v53 = vadd.f32 %v7289_v51, %v2011_v56  ;;  %v5314_v50 = vpop.f32.mrb[151].mxu1  ;;  %v2304_v2 = vmax.f32 %v2009_v60, 0.0 }
 0x2fa   : > { %v2305_v54 = vmax.f32 %v2012_v53, 0.0  ;;  %5420 = vmatmul.mubr.msk.bf16.gmra.mrb[0].mxu1 %vm1482_vm2, %v1458_v40 }
 0x2fb   : > { %5431 = vmatprep.mubr.msk.bf16.mxu1 %vm5991_vm0, %v9081_v31 }
 0x2fc   : > { %v7564_v5 = vpack.c.bf16 %v2305_v54, %v2304_v2 }
 0x2fd   : > { %v2016_v57 = vpop.f32.mrb[152].mxu1 }
 0x2fe   : > { %v2017_v28 = vadd.f32 %v7289_v51, %v2016_v57  ;;  %v5317_v12 = vpop.f32.mrb[153].mxu1 }
 0x2ff   : > { %v2019_v18 = vpop.f32.mrb[154].mxu1 }
 0x300   : > { %v2020_v49 = vadd.f32 %v7289_v51, %v2019_v18  ;;  %v5318_v25 = vpop.f32.mrb[155].mxu1  ;;  %v2306_v47 = vmax.f32 %v2017_v28, 0.0 }
 0x302   : > { %v2307_v56 = vmax.f32 %v2020_v49, 0.0  ;;  %5432 = vmatmul.mubr.msk.bf16.vlgmr.msra.gmra.mrb[4].mxu1 %vm517_vm1, %v6806_v45 }
 0x303   : > { %5435 = vmatprep.mubr.msk.bf16.mxu1 %vm5991_vm0, %v9081_v31 }
 0x304   : > { %v7572_v40 = vpack.c.bf16 %v2307_v56, %v2306_v47 }
 0x305   : > { %v2024_v60 = vpop.f32.mrb[156].mxu1 }
 0x306   : > { %v2025_v53 = vadd.f32 %v7289_v51, %v2024_v60  ;;  %v5321_v50 = vpop.f32.mrb[157].mxu1 }
 0x307   : > { %v2027_v2 = vpop.f32.mrb[158].mxu1 }
 0x308   : > { %v2028_v54 = vadd.f32 %v7289_v51, %v2027_v2  ;;  %v5322_v57 = vpop.f32.mrb[159].mxu1  ;;  %v2308_v12 = vmax.f32 %v2025_v53, 0.0 }
 0x30a   : > { %v2309_v18 = vmax.f32 %v2028_v54, 0.0  ;;  %5436 = vmatmul.mubr.msk.bf16.gmra.mrb[8].mxu1 %vm517_vm1, %v6830_v13 }
 0x30b   : > { %5439 = vmatprep.mubr.msk.bf16.mxu1 %vm5991_vm0, %v9081_v31 }
 0x30c   : > { %v7580_v45 = vpack.c.bf16 %v2309_v18, %v2308_v12 }
 0x30d   : > { %v2032_v47 = vpop.f32.mrb[160].mxu1 }
 0x30e   : > { %v2033_v28 = vadd.f32 %v7289_v51, %v2032_v47  ;;  %v5325_v49 = vpop.f32.mrb[161].mxu1 }
 0x30f   : > { %v2035_v25 = vpop.f32.mrb[162].mxu1 }
 0x310   : > { %v2036_v56 = vadd.f32 %v7289_v51, %v2035_v25  ;;  %v5326_v60 = vpop.f32.mrb[163].mxu1  ;;  %v2310_v50 = vmax.f32 %v2033_v28, 0.0 }
 0x312   : > { %v2311_v2 = vmax.f32 %v2036_v56, 0.0  ;;  %5440 = vmatmul.mubr.msk.bf16.gmra.mrb[12].mxu1 %vm517_vm1, %v6859_v61 }
 0x313   : > { %5443 = vmatprep.mubr.msk.bf16.mxu1 %vm5991_vm0, %v9081_v31 }
 0x314   : > { %v7588_v13 = vpack.c.bf16 %v2311_v2, %v2310_v50 }
 0x315   : > { %v2040_v53 = vpop.f32.mrb[164].mxu1 }
 0x316   : > { %v2041_v54 = vadd.f32 %v7289_v51, %v2040_v53  ;;  %v5329_v57 = vpop.f32.mrb[165].mxu1 }
 0x317   : > { %v2043_v12 = vpop.f32.mrb[166].mxu1 }
 0x318   : > { %v2044_v18 = vadd.f32 %v7289_v51, %v2043_v12  ;;  %v5330_v47 = vpop.f32.mrb[167].mxu1  ;;  %v2312_v49 = vmax.f32 %v2041_v54, 0.0 }
 0x31a   : > { %v2313_v25 = vmax.f32 %v2044_v18, 0.0  ;;  %5444 = vmatmul.mubr.msk.bf16.gmra.mrb[16].mxu1 %vm517_vm1, %v6883_v36 }
 0x31b   : > { %5447 = vmatprep.mubr.msk.bf16.mxu1 %vm5991_vm0, %v9081_v31 }
 0x31c   : > { %v7596_v61 = vpack.c.bf16 %v2313_v25, %v2312_v49 }
 0x31d   : > { %v2048_v28 = vpop.f32.mrb[168].mxu1 }
 0x31e   : > { %v2049_v56 = vadd.f32 %v7289_v51, %v2048_v28  ;;  %v5333_v60 = vpop.f32.mrb[169].mxu1 }
 0x31f   : > { %v2051_v50 = vpop.f32.mrb[170].mxu1 }
 0x320   : > { %v2052_v2 = vadd.f32 %v7289_v51, %v2051_v50  ;;  %v5334_v53 = vpop.f32.mrb[171].mxu1  ;;  %v2314_v57 = vmax.f32 %v2049_v56, 0.0 }
 0x322   : > { %v2315_v12 = vmax.f32 %v2052_v2, 0.0  ;;  %5448 = vmatmul.mubr.msk.bf16.gmra.mrb[20].mxu1 %vm517_vm1, %v6907_v39 }
 0x323   : > { %5451 = vmatprep.mubr.msk.bf16.mxu1 %vm5991_vm0, %v9081_v31 }
 0x324   : > { %v7604_v36 = vpack.c.bf16 %v2315_v12, %v2314_v57 }
 0x325   : > { %v2056_v54 = vpop.f32.mrb[172].mxu1 }
 0x326   : > { %v2057_v18 = vadd.f32 %v7289_v51, %v2056_v54  ;;  %v5337_v47 = vpop.f32.mrb[173].mxu1 }
 0x327   : > { %v2059_v49 = vpop.f32.mrb[174].mxu1 }
 0x328   : > { %v2060_v25 = vadd.f32 %v7289_v51, %v2059_v49  ;;  %v5338_v28 = vpop.f32.mrb[175].mxu1  ;;  %v2316_v60 = vmax.f32 %v2057_v18, 0.0 }
 0x32a   : > { %v2317_v50 = vmax.f32 %v2060_v25, 0.0  ;;  %5452 = vmatmul.mubr.msk.bf16.gmra.mrb[24].mxu1 %vm517_vm1, %v6931_v35 }
 0x32b   : > { %5455 = vmatprep.mubr.msk.bf16.mxu1 %vm5991_vm0, %v9081_v31 }
 0x32c   : > { %v7612_v39 = vpack.c.bf16 %v2317_v50, %v2316_v60 }
 0x32d   : > { %v2064_v56 = vpop.f32.mrb[176].mxu1 }
 0x32e   : > { %v2065_v2 = vadd.f32 %v7289_v51, %v2064_v56  ;;  %v5341_v53 = vpop.f32.mrb[177].mxu1 }
 0x32f   : > { %v2067_v57 = vpop.f32.mrb[178].mxu1 }
 0x330   : > { %v2068_v12 = vadd.f32 %v7289_v51, %v2067_v57  ;;  %v5342_v54 = vpop.f32.mrb[179].mxu1  ;;  %v2318_v47 = vmax.f32 %v2065_v2, 0.0 }
 0x332   : > { %v2319_v49 = vmax.f32 %v2068_v12, 0.0  ;;  %5456 = vmatmul.mubr.msk.bf16.gmra.mrb[28].mxu1 %vm517_vm1, %v6955_v3 }
 0x333   : > { %5459 = vmatprep.mubr.msk.bf16.mxu1 %vm5991_vm0, %v9081_v31 }
 0x334   : > { %v7620_v35 = vpack.c.bf16 %v2319_v49, %v2318_v47 }
 0x335   : > { %v2072_v18 = vpop.f32.mrb[180].mxu1 }
 0x336   : > { %v2073_v25 = vadd.f32 %v7289_v51, %v2072_v18  ;;  %v5345_v28 = vpop.f32.mrb[181].mxu1 }
 0x337   : > { %v2075_v60 = vpop.f32.mrb[182].mxu1 }
 0x338   : > { %v2076_v50 = vadd.f32 %v7289_v51, %v2075_v60  ;;  %v5346_v56 = vpop.f32.mrb[183].mxu1  ;;  %v2320_v53 = vmax.f32 %v2073_v25, 0.0 }
 0x33a   : > { %v2321_v57 = vmax.f32 %v2076_v50, 0.0  ;;  %5460 = vmatmul.mubr.msk.bf16.gmra.mrb[32].mxu1 %vm517_vm1, %v6982_v22 }
 0x33b   : > { %5463 = vmatprep.mubr.msk.bf16.mxu1 %vm5991_vm0, %v9081_v31 }
 0x33c   : > { %v7628_v3 = vpack.c.bf16 %v2321_v57, %v2320_v53 }
 0x33d   : > { %v2080_v2 = vpop.f32.mrb[184].mxu1 }
 0x33e   : > { %v2081_v12 = vadd.f32 %v7289_v51, %v2080_v2  ;;  %v5349_v54 = vpop.f32.mrb[185].mxu1 }
 0x33f   : > { %v2083_v47 = vpop.f32.mrb[186].mxu1 }
 0x340   : > { %v2084_v49 = vadd.f32 %v7289_v51, %v2083_v47  ;;  %v5350_v18 = vpop.f32.mrb[187].mxu1  ;;  %v2322_v28 = vmax.f32 %v2081_v12, 0.0 }
 0x342   : > { %v2323_v60 = vmax.f32 %v2084_v49, 0.0  ;;  %5464 = vmatmul.mubr.msk.bf16.gmra.mrb[36].mxu1 %vm517_vm1, %v7006_v1 }
 0x343   : > { %5467 = vmatprep.mubr.msk.bf16.mxu1 %vm5991_vm0, %v9081_v31 }
 0x344   : > { %v7636_v22 = vpack.c.bf16 %v2323_v60, %v2322_v28 }
 0x345   : > { %v2088_v25 = vpop.f32.mrb[188].mxu1 }
 0x346   : > { %v2089_v50 = vadd.f32 %v7289_v51, %v2088_v25  ;;  %v5353_v56 = vpop.f32.mrb[189].mxu1 }
 0x347   : > { %v2091_v53 = vpop.f32.mrb[190].mxu1 }
 0x348   : > { %v2092_v57 = vadd.f32 %v7289_v51, %v2091_v53  ;;  %v5354_v2 = vpop.f32.mrb[191].mxu1  ;;  %v2324_v54 = vmax.f32 %v2089_v50, 0.0 }
 0x34a   : > { %v2325_v47 = vmax.f32 %v2092_v57, 0.0  ;;  %5468 = vmatmul.mubr.msk.bf16.gmra.mrb[40].mxu1 %vm517_vm1, %v7029_v10 }
 0x34b   : > { %5471 = vmatprep.mubr.msk.bf16.mxu1 %vm5991_vm0, %v9081_v31 }
 0x34c   : > { %v7644_v1 = vpack.c.bf16 %v2325_v47, %v2324_v54 }
 0x34d   : > { %v2096_v12 = vpop.f32.mrb[192].mxu1 }
 0x34e   : > { %v2097_v49 = vadd.f32 %v7289_v51, %v2096_v12  ;;  %v5357_v18 = vpop.f32.mrb[193].mxu1 }
 0x34f   : > { %v2099_v28 = vpop.f32.mrb[194].mxu1 }
 0x350   : > { %v2100_v60 = vadd.f32 %v7289_v51, %v2099_v28  ;;  %v5358_v25 = vpop.f32.mrb[195].mxu1  ;;  %v2326_v56 = vmax.f32 %v2097_v49, 0.0 }
 0x352   : > { %v2327_v53 = vmax.f32 %v2100_v60, 0.0  ;;  %5472 = vmatmul.mubr.msk.bf16.gmra.mrb[44].mxu1 %vm517_vm1, %v7051_v32 }
 0x353   : > { %5475 = vmatprep.mubr.msk.bf16.mxu1 %vm5991_vm0, %v9081_v31 }
 0x354   : > { %v7652_v10 = vpack.c.bf16 %v2327_v53, %v2326_v56 }
 0x355   : > { %v2104_v50 = vpop.f32.mrb[196].mxu1 }
 0x356   : > { %v2105_v57 = vadd.f32 %v7289_v51, %v2104_v50  ;;  %v5361_v2 = vpop.f32.mrb[197].mxu1 }
 0x357   : > { %v2107_v54 = vpop.f32.mrb[198].mxu1 }
 0x358   : > { %v2108_v47 = vadd.f32 %v7289_v51, %v2107_v54  ;;  %v5362_v12 = vpop.f32.mrb[199].mxu1  ;;  %v2328_v18 = vmax.f32 %v2105_v57, 0.0 }
 0x35a   : > { %v2329_v28 = vmax.f32 %v2108_v47, 0.0  ;;  %5476 = vmatmul.mubr.msk.bf16.gmra.mrb[48].mxu1 %vm517_vm1, %v7070_v23 }
 0x35b   : > { %5479 = vmatprep.mubr.msk.bf16.mxu1 %vm5991_vm0, %v9081_v31 }
 0x35c   : > { %v7660_v32 = vpack.c.bf16 %v2329_v28, %v2328_v18 }
 0x35d   : > { %v2112_v49 = vpop.f32.mrb[200].mxu1 }
 0x35e   : > { %v2113_v60 = vadd.f32 %v7289_v51, %v2112_v49  ;;  %v5365_v25 = vpop.f32.mrb[201].mxu1 }
 0x35f   : > { %v2115_v56 = vpop.f32.mrb[202].mxu1 }
 0x360   : > { %v2116_v53 = vadd.f32 %v7289_v51, %v2115_v56  ;;  %v5366_v50 = vpop.f32.mrb[203].mxu1  ;;  %v2330_v2 = vmax.f32 %v2113_v60, 0.0 }
 0x362   : > { %v2331_v54 = vmax.f32 %v2116_v53, 0.0  ;;  %5480 = vmatmul.mubr.msk.bf16.gmra.mrb[52].mxu1 %vm517_vm1, %v7089_v58 }
 0x363   : > { %5483 = vmatprep.mubr.msk.bf16.mxu1 %vm5991_vm0, %v9081_v31 }
 0x364   : > { %v7668_v23 = vpack.c.bf16 %v2331_v54, %v2330_v2 }
 0x365   : > { %v2120_v57 = vpop.f32.mrb[204].mxu1 }
 0x366   : > { %v2121_v47 = vadd.f32 %v7289_v51, %v2120_v57  ;;  %v5369_v12 = vpop.f32.mrb[205].mxu1 }
 0x367   : > { %v2123_v18 = vpop.f32.mrb[206].mxu1 }
 0x368   : > { %v2124_v28 = vadd.f32 %v7289_v51, %v2123_v18  ;;  %v5370_v49 = vpop.f32.mrb[207].mxu1  ;;  %v2332_v25 = vmax.f32 %v2121_v47, 0.0 }
 0x36a   : > { %v2333_v56 = vmax.f32 %v2124_v28, 0.0  ;;  %5484 = vmatmul.mubr.msk.bf16.gmra.mrb[56].mxu1 %vm517_vm1, %v7108_v24 }
 0x36b   : > { %5487 = vmatprep.mubr.msk.bf16.mxu1 %vm5991_vm0, %v9081_v31 }
 0x36c   : > { %v7676_v58 = vpack.c.bf16 %v2333_v56, %v2332_v25 }
 0x36d   : > { %v2128_v60 = vpop.f32.mrb[208].mxu1 }
 0x36e   : > { %v2129_v53 = vadd.f32 %v7289_v51, %v2128_v60  ;;  %v5373_v50 = vpop.f32.mrb[209].mxu1 }
 0x36f   : > { %v2131_v2 = vpop.f32.mrb[210].mxu1 }
 0x370   : > { %v2132_v54 = vadd.f32 %v7289_v51, %v2131_v2  ;;  %v5374_v57 = vpop.f32.mrb[211].mxu1  ;;  %v2334_v12 = vmax.f32 %v2129_v53, 0.0 }
 0x372   : > { %v2335_v18 = vmax.f32 %v2132_v54, 0.0  ;;  %5488 = vmatmul.mubr.msk.bf16.gmra.mrb[60].mxu1 %vm517_vm1, %v7127_v21 }
 0x373   : > { %5491 = vmatprep.mubr.msk.bf16.mxu1 %vm5991_vm0, %v9081_v31 }
 0x374   : > { %v7684_v24 = vpack.c.bf16 %v2335_v18, %v2334_v12 }
 0x375   : > { %v2136_v47 = vpop.f32.mrb[212].mxu1 }
 0x376   : > { %v2137_v28 = vadd.f32 %v7289_v51, %v2136_v47  ;;  %v5377_v49 = vpop.f32.mrb[213].mxu1 }
 0x377   : > { %v2139_v25 = vpop.f32.mrb[214].mxu1 }
 0x378   : > { %v2140_v56 = vadd.f32 %v7289_v51, %v2139_v25  ;;  %v5378_v60 = vpop.f32.mrb[215].mxu1  ;;  %v2336_v50 = vmax.f32 %v2137_v28, 0.0 }
 0x37a   : > { %v2337_v2 = vmax.f32 %v2140_v56, 0.0  ;;  %5492 = vmatmul.mubr.msk.bf16.gmra.mrb[64].mxu1 %vm517_vm1, %v7146_v43 }
 0x37b   : > { %5495 = vmatprep.mubr.msk.bf16.mxu1 %vm5991_vm0, %v9081_v31 }
 0x37c   : > { %v7692_v21 = vpack.c.bf16 %v2337_v2, %v2336_v50 }
 0x37d   : > { %v2144_v53 = vpop.f32.mrb[216].mxu1 }
 0x37e   : > { %v2145_v54 = vadd.f32 %v7289_v51, %v2144_v53  ;;  %v5381_v57 = vpop.f32.mrb[217].mxu1 }
 0x37f   : > { %v2147_v12 = vpop.f32.mrb[218].mxu1 }
 0x380   : > { %v2148_v18 = vadd.f32 %v7289_v51, %v2147_v12  ;;  %v5382_v47 = vpop.f32.mrb[219].mxu1  ;;  %v2338_v49 = vmax.f32 %v2145_v54, 0.0 }
 0x382   : > { %v2339_v25 = vmax.f32 %v2148_v18, 0.0  ;;  %5496 = vmatmul.mubr.msk.bf16.gmra.mrb[68].mxu1 %vm517_vm1, %v7165_v63 }
 0x383   : > { %5499 = vmatprep.mubr.msk.bf16.mxu1 %vm5991_vm0, %v9081_v31 }
 0x384   : > { %v7700_v43 = vpack.c.bf16 %v2339_v25, %v2338_v49 }
 0x385   : > { %v2152_v28 = vpop.f32.mrb[220].mxu1 }
 0x386   : > { %v2153_v56 = vadd.f32 %v7289_v51, %v2152_v28  ;;  %v5385_v60 = vpop.f32.mrb[221].mxu1 }
 0x387   : > { %v2155_v50 = vpop.f32.mrb[222].mxu1 }
 0x388   : > { %v2156_v2 = vadd.f32 %v7289_v51, %v2155_v50  ;;  %v5386_v53 = vpop.f32.mrb[223].mxu1  ;;  %v2340_v57 = vmax.f32 %v2153_v56, 0.0 }
 0x38a   : > { %v2341_v12 = vmax.f32 %v2156_v2, 0.0  ;;  %5500 = vmatmul.mubr.msk.bf16.gmra.mrb[72].mxu1 %vm517_vm1, %v7184_v0 }
 0x38b   : > { %5503 = vmatprep.mubr.msk.bf16.mxu1 %vm5991_vm0, %v9081_v31 }
 0x38c   : > { %v7708_v63 = vpack.c.bf16 %v2341_v12, %v2340_v57 }
 0x38d   : > { %v2160_v54 = vpop.f32.mrb[224].mxu1 }
 0x38e   : > { %v2161_v18 = vadd.f32 %v7289_v51, %v2160_v54  ;;  %v5389_v47 = vpop.f32.mrb[225].mxu1 }
 0x38f   : > { %v2163_v49 = vpop.f32.mrb[226].mxu1 }
 0x390   : > { %v2164_v25 = vadd.f32 %v7289_v51, %v2163_v49  ;;  %v5390_v28 = vpop.f32.mrb[227].mxu1  ;;  %v2342_v60 = vmax.f32 %v2161_v18, 0.0 }
 0x392   : > { %v2343_v50 = vmax.f32 %v2164_v25, 0.0  ;;  %5504 = vmatmul.mubr.msk.bf16.gmra.mrb[76].mxu1 %vm517_vm1, %v7203_v9 }
 0x393   : > { %5507 = vmatprep.mubr.msk.bf16.mxu1 %vm5991_vm0, %v9081_v31 }
 0x394   : > { %v7716_v0 = vpack.c.bf16 %v2343_v50, %v2342_v60  ;;  %v5979_v50 = vld [vmem:[%s8786_s4] ss:$0 sm:$0xff] }
 0x395   : > { %v2168_v56 = vpop.f32.mrb[228].mxu1 }
 0x396   : > { %v2169_v2 = vadd.f32 %v7289_v51, %v2168_v56  ;;  %v5393_v53 = vpop.f32.mrb[229].mxu1 }
 0x397   : > { %v2171_v57 = vpop.f32.mrb[230].mxu1 }
 0x398   : > { %v2172_v12 = vadd.f32 %v7289_v51, %v2171_v57  ;;  %v5394_v54 = vpop.f32.mrb[231].mxu1  ;;  %v2344_v47 = vmax.f32 %v2169_v2, 0.0 }
 0x39a   : > { %v2345_v49 = vmax.f32 %v2172_v12, 0.0  ;;  %5508 = vmatmul.mubr.msk.bf16.gmra.mrb[80].mxu1 %vm517_vm1, %v7222_v38 }
 0x39b   : > { %5511 = vmatprep.mubr.msk.bf16.mxu1 %vm5991_vm0, %v9081_v31 }
 0x39c   : > { %v7724_v9 = vpack.c.bf16 %v2345_v49, %v2344_v47 }
 0x39d   : > { %v2176_v18 = vpop.f32.mrb[232].mxu1 }
 0x39e   : > { %v2177_v25 = vadd.f32 %v7289_v51, %v2176_v18  ;;  %v5397_v28 = vpop.f32.mrb[233].mxu1 }
 0x39f   : > { %v2179_v60 = vpop.f32.mrb[234].mxu1 }
 0x3a0   : > { %v2180_v56 = vadd.f32 %v5979_v50, %v2179_v60  ;;  %v5398_v2 = vpop.f32.mrb[235].mxu1  ;;  %v2346_v53 = vmax.f32 %v2177_v25, 0.0 }
 0x3a2   : > { %v2347_v57 = vmax.f32 %v2180_v56, 0.0  ;;  %5512 = vmatmul.mubr.msk.bf16.gmra.mrb[84].mxu1 %vm517_vm1, %v7241_v14 }
 0x3a3   : > { %5515 = vmatprep.mubr.msk.bf16.mxu1 %vm5991_vm0, %v9081_v31 }
 0x3a4   : > { %v7734_v38 = vpack.c.bf16 %v2347_v57, %v2346_v53 }
 0x3a5   : > { %v2184_v12 = vpop.f32.mrb[236].mxu1 }
 0x3a6   : > { %v2185_v51 = vadd.f32 %v5979_v50, %v2184_v12  ;;  %v5401_v54 = vpop.f32.mrb[237].mxu1 }
 0x3a7   : > { %v2187_v47 = vpop.f32.mrb[238].mxu1 }
 0x3a8   : > { %v2188_v49 = vadd.f32 %v5979_v50, %v2187_v47  ;;  %v5402_v18 = vpop.f32.mrb[239].mxu1  ;;  %v2348_v28 = vmax.f32 %v2185_v51, 0.0 }
 0x3aa   : > { %v2349_v26 = vmax.f32 %v2188_v49, 0.0  ;;  %5516 = vmatmul.mubr.msk.bf16.gmra.mrb[88].mxu1 %vm517_vm1, %v7260_v34 }
 0x3ab   : > { %5519 = vmatprep.mubr.msk.bf16.mxu1 %vm5991_vm0, %v9081_v31 }
 0x3ac   : > { %v7740_v14 = vpack.c.bf16 %v2349_v26, %v2348_v28 }
 0x3ad   : > { %v2192_v25 = vpop.f32.mrb[240].mxu1 }
 0x3ae   : > { %v2193_v60 = vadd.f32 %v5979_v50, %v2192_v25  ;;  %v5405_v56 = vpop.f32.mrb[241].mxu1 }
 0x3af   : > { %v2195_v2 = vpop.f32.mrb[242].mxu1 }
 0x3b0   : > { %v2196_v53 = vadd.f32 %v5979_v50, %v2195_v2  ;;  %v5406_v57 = vpop.f32.mrb[243].mxu1  ;;  %v2350_v12 = vmax.f32 %v2193_v60, 0.0 }
 0x3b2   : > { %v2351_v54 = vmax.f32 %v2196_v53, 0.0  ;;  %5520 = vmatmul.mubr.msk.bf16.gmra.mrb[92].mxu1 %vm517_vm1, %v7279_v15 }
 0x3b3   : > { %5523 = vmatprep.mubr.msk.bf16.mxu1 %vm5991_vm0, %v9081_v31 }
 0x3b4   : > { %v7746_v34 = vpack.c.bf16 %v2351_v54, %v2350_v12 }
 0x3b5   : > { %v2200_v51 = vpop.f32.mrb[244].mxu1 }
 0x3b6   : > { %v2201_v47 = vadd.f32 %v5979_v50, %v2200_v51  ;;  %v5409_v26 = vpop.f32.mrb[245].mxu1 }
 0x3b7   : > { %v2203_v49 = vpop.f32.mrb[246].mxu1 }
 0x3b8   : > { %v2204_v18 = vadd.f32 %v5979_v50, %v2203_v49  ;;  %v5410_v28 = vpop.f32.mrb[247].mxu1  ;;  %v2352_v25 = vmax.f32 %v2201_v47, 0.0 }
 0x3ba   : > { %v2353_v56 = vmax.f32 %v2204_v18, 0.0  ;;  %5524 = vmatmul.mubr.msk.bf16.gmra.mrb[96].mxu1 %vm517_vm1, %v7303_v11 }
 0x3bb   : > { %5527 = vmatprep.mubr.msk.bf16.mxu1 %vm5991_vm0, %v9081_v31 }
 0x3bc   : > { %v7752_v15 = vpack.c.bf16 %v2353_v56, %v2352_v25 }
 0x3bd   : > { %v2208_v60 = vpop.f32.mrb[248].mxu1 }
 0x3be   : > { %v2209_v2 = vadd.f32 %v5979_v50, %v2208_v60  ;;  %v5413_v53 = vpop.f32.mrb[249].mxu1 }
 0x3bf   : > { %v2211_v57 = vpop.f32.mrb[250].mxu1 }
 0x3c0   : > { %v2212_v12 = vadd.f32 %v5979_v50, %v2211_v57  ;;  %v5414_v54 = vpop.f32.mrb[251].mxu1  ;;  %v2354_v51 = vmax.f32 %v2209_v2, 0.0 }
 0x3c2   : > { %v2355_v26 = vmax.f32 %v2212_v12, 0.0  ;;  %5528 = vmatmul.mubr.msk.bf16.gmra.mrb[100].mxu1 %vm517_vm1, %v7322_v41 }
 0x3c3   : > { %5531 = vmatprep.mubr.msk.bf16.mxu1 %vm5991_vm0, %v9081_v31 }
 0x3c4   : > { %v7758_v11 = vpack.c.bf16 %v2355_v26, %v2354_v51 }
 0x3c5   : > { %v2216_v47 = vpop.f32.mrb[252].mxu1 }
 0x3c6   : > { %v2217_v49 = vadd.f32 %v5979_v50, %v2216_v47  ;;  %v5417_v18 = vpop.f32.mrb[253].mxu1 }
 0x3c7   : > { %v2219_v28 = vpop.f32.mrb[254].mxu1 }
 0x3c8   : > { %v2220_v25 = vadd.f32 %v5979_v50, %v2219_v28  ;;  %v5418_v56 = vpop.f32.mrb[255].mxu1  ;;  %v2356_v60 = vmax.f32 %v2217_v49, 0.0  ;;  %v7773_v50 = vld [vmem:[%s8788_s6] ss:$0 sm:$0xff]  ;;  %v9157_v28 = vmax.f32 %v6224_v29, 0.0 }
 0x3ca   : > { %v2357_v53 = vmax.f32 %v2220_v25, 0.0  ;;  %5532 = vmatmul.mubr.msk.bf16.gmra.mrb[104].mxu1 %vm517_vm1, %v7341_v17 }
 0x3cb   : > { %5535 = vmatprep.mubr.msk.bf16.mxu1 %vm5991_vm0, %v9081_v31 }
 0x3cc   : > { %v7764_v41 = vpack.c.bf16 %v2357_v53, %v2356_v60 }
 0x3cd   : > { %v7766_v2 = vpop.f32.mrb[0].mxu1 }
 0x3ce   : > { %v5421_v57 = vpop.f32.mrb[1].mxu1 }
 0x3cf   : > { %v2227_v12 = vpop.f32.mrb[2].mxu1 }
 0x3d0   : > { %v5422_v54 = vpop.f32.mrb[3].mxu1 }
 0x3d2   : > { %5536 = vmatmul.mubr.msk.bf16.gmra.mrb[108].mxu1 %vm517_vm1, %v7365_v62  ;;  %v9158_v62 = vmax.f32 %v6227_v33, 0.0 }
 0x3d3   : > { %5539 = vmatprep.mubr.msk.bf16.mxu1 %vm5991_vm0, %v9081_v31 }
 0x3d5   : > { %v2692_v17 = vpop.f32.mrb[4].mxu1 }
 0x3d6   : > { %v2693_v51 = vadd.f32 %v7773_v50, %v2692_v17  ;;  %v5433_v26 = vpop.f32.mrb[5].mxu1  ;;  %v9159_v17 = vmax.f32 %v6244_v42, 0.0 }
 0x3d7   : > { %v2695_v47 = vpop.f32.mrb[6].mxu1 }
 0x3d8   : > { %v2696_v49 = vadd.f32 %v7773_v50, %v2695_v47  ;;  %v5434_v18 = vpop.f32.mrb[7].mxu1  ;;  %v3210_v25 = vmul.f32 %v2693_v51, %v9157_v28  ;;  %v9160_v51 = vmax.f32 %v6250_v46, 0.0 }
 0x3da   : > { %v3211_v56 = vmul.f32 %v2696_v49, %v9158_v62  ;;  %5540 = vmatmul.mubr.msk.bf16.gmra.mrb[112].mxu1 %vm517_vm1, %v7384_v6  ;;  %v9161_v62 = vmax.f32 %v6268_v55, 0.0 }
 0x3db   : > { %5543 = vmatprep.mubr.msk.bf16.mxu1 %vm5991_vm0, %v9081_v31 }
 0x3dc   : > { %v3339_v60 = vpack.c.bf16 %v3211_v56, %v3210_v25  ;;  %v9162_v56 = vmax.f32 %v6274_v59, 0.0 }
 0x3dd   : > { %v2700_v53 = vpop.f32.mrb[8].mxu1 }
 0x3de   : > { %v2701_v57 = vadd.f32 %v7773_v50, %v2700_v53  ;;  %v5437_v12 = vpop.f32.mrb[9].mxu1  ;;  %5696 = vmatmul.mubr.msk.bf16.vlgmr.msra.gmra.mrb[4].mxu0 %vm1482_vm2, %v3339_v60 }
 0x3df   : > { %v2703_v54 = vpop.f32.mrb[10].mxu1  ;;  %5699 = vmatprep.mubr.msk.bf16.mxu0 %vm5991_vm0, %v9081_v31 }
 0x3e0   : > { %v2704_v29 = vadd.f32 %v7773_v50, %v2703_v54  ;;  %v5438_v33 = vpop.f32.mrb[11].mxu1  ;;  %v3212_v6 = vmul.f32 %v2701_v57, %v9159_v17  ;;  %v9164_v17 = vmax.f32 %v6295_v8, 0.0 }
 0x3e1   : > { %v9163_v33 = vmax.f32 %v6289_v4, 0.0 }
 0x3e2   : > { %v3213_v26 = vmul.f32 %v2704_v29, %v9160_v51  ;;  %5544 = vmatmul.mubr.msk.bf16.gmra.mrb[116].mxu1 %vm517_vm1, %v7403_v44 }
 0x3e3   : > { %5547 = vmatprep.mubr.msk.bf16.mxu1 %vm5991_vm0, %v9081_v31 }
 0x3e4   : > { %v3340_v47 = vpack.c.bf16 %v3213_v26, %v3212_v6 }
 0x3e5   : > { %v2708_v49 = vpop.f32.mrb[12].mxu1 }
 0x3e6   : > { %v2709_v18 = vadd.f32 %v7773_v50, %v2708_v49  ;;  %v5441_v28 = vpop.f32.mrb[13].mxu1  ;;  %5700 = vmatmul.mubr.msk.bf16.gmra.mrb[8].mxu0 %vm1482_vm2, %v3340_v47 }
 0x3e7   : > { %v2711_v25 = vpop.f32.mrb[14].mxu1  ;;  %5703 = vmatprep.mubr.msk.bf16.mxu0 %vm5991_vm0, %v9081_v31  ;;  %v9165_v28 = vmax.f32 %v6309_v16, 0.0 }
 0x3e8   : > { %v2712_v42 = vadd.f32 %v7773_v50, %v2711_v25  ;;  %v5442_v46 = vpop.f32.mrb[15].mxu1  ;;  %v3214_v44 = vmul.f32 %v2709_v18, %v9161_v62  ;;  %v9166_v25 = vmax.f32 %v6315_v20, 0.0 }
 0x3ea   : > { %v3215_v60 = vmul.f32 %v2712_v42, %v9162_v56  ;;  %5548 = vmatmul.mubr.msk.bf16.gmra.mrb[120].mxu1 %vm517_vm1, %v7422_v27 }
 0x3eb   : > { %5551 = vmatprep.mubr.msk.bf16.mxu1 %vm5991_vm0, %v9081_v31 }
 0x3ec   : > { %v3341_v53 = vpack.c.bf16 %v3215_v60, %v3214_v44 }
 0x3ed   : > { %v2716_v57 = vpop.f32.mrb[16].mxu1 }
 0x3ee   : > { %v2717_v12 = vadd.f32 %v7773_v50, %v2716_v57  ;;  %v5445_v54 = vpop.f32.mrb[17].mxu1  ;;  %5704 = vmatmul.mubr.msk.bf16.gmra.mrb[12].mxu0 %vm1482_vm2, %v3341_v53  ;;  %v9167_v53 = vmax.f32 %v6329_v30, 0.0  ;;  %v9168_v57 = vmax.f32 %v6335_v37, 0.0 }
 0x3ef   : > { %v2719_v29 = vpop.f32.mrb[18].mxu1  ;;  %5707 = vmatprep.mubr.msk.bf16.mxu0 %vm5991_vm0, %v9081_v31  ;;  %v9169_v54 = vld [vmem:[#allocation111_spill] sm:$0xff] }
 0x3f0   : > { %v2720_v55 = vadd.f32 %v7773_v50, %v2719_v29  ;;  %v5446_v59 = vpop.f32.mrb[19].mxu1  ;;  %v3216_v27 = vmul.f32 %v2717_v12, %v9163_v33 }
 0x3f2   : > { %v3217_v6 = vmul.f32 %v2720_v55, %v9164_v17  ;;  %5552 = vmatmul.mubr.msk.bf16.gmra.mrb[124].mxu1 %vm517_vm1, %v7441_v19  ;;  %v9170_v17 = vld [vmem:[#allocation2_spill] sm:$0xff] }
 0x3f3   : > { %5555 = vmatprep.mubr.msk.bf16.mxu1 %vm5991_vm0, %v9081_v31 }
 0x3f4   : > { %v3342_v51 = vpack.c.bf16 %v3217_v6, %v3216_v27  ;;  %v9171_v6 = vmax.f32 %v9170_v17, 0.0 }
 0x3f5   : > { %v2724_v26 = vpop.f32.mrb[20].mxu1 }
 0x3f6   : > { %v2725_v47 = vadd.f32 %v7773_v50, %v2724_v26  ;;  %v5449_v49 = vpop.f32.mrb[21].mxu1  ;;  %5708 = vmatmul.mubr.msk.bf16.gmra.mrb[16].mxu0 %vm1482_vm2, %v3342_v51  ;;  %v9172_v26 = vld [vmem:[#allocation3_spill] sm:$0xff] }
 0x3f7   : > { %v2727_v18 = vpop.f32.mrb[22].mxu1  ;;  %5711 = vmatprep.mubr.msk.bf16.mxu0 %vm5991_vm0, %v9081_v31 }
 0x3f8   : > { %v2728_v4 = vadd.f32 %v7773_v50, %v2727_v18  ;;  %v5450_v8 = vpop.f32.mrb[23].mxu1  ;;  %v3218_v19 = vmul.f32 %v2725_v47, %v9165_v28  ;;  %v9173_v47 = vmax.f32 %v9172_v26, 0.0  ;;  %v9174_v18 = vld [vmem:[#allocation114_spill] sm:$0xff] }
 0x3fa   : > { %v3219_v42 = vmul.f32 %v2728_v4, %v9166_v25  ;;  %5556 = vmatmul.mubr.msk.bf16.gmra.mrb[128].mxu1 %vm517_vm1, %v7460_v7 }
 0x3fb   : > { %5559 = vmatprep.mubr.msk.bf16.mxu1 %vm5991_vm0, %v9081_v31 }
 0x3fc   : > { %v3343_v46 = vpack.c.bf16 %v3219_v42, %v3218_v19 }
 0x3fd   : > { %v2732_v62 = vpop.f32.mrb[24].mxu1 }
 0x3fe   : > { %v2733_v44 = vadd.f32 %v7773_v50, %v2732_v62  ;;  %v5453_v56 = vpop.f32.mrb[25].mxu1  ;;  %5712 = vmatmul.mubr.msk.bf16.gmra.mrb[20].mxu0 %vm1482_vm2, %v3343_v46  ;;  %v9175_v62 = vld [vmem:[#allocation4_spill] sm:$0xff] }
 0x3ff   : > { %v2735_v60 = vpop.f32.mrb[26].mxu1  ;;  %5715 = vmatprep.mubr.msk.bf16.mxu0 %vm5991_vm0, %v9081_v31 }
 0x400   : > { %v2736_v16 = vadd.f32 %v7773_v50, %v2735_v60  ;;  %v5454_v20 = vpop.f32.mrb[27].mxu1  ;;  %v3220_v7 = vmul.f32 %v2733_v44, %v9167_v53  ;;  %v9176_v44 = vmax.f32 %v9175_v62, 0.0  ;;  %v9177_v60 = vld [vmem:[#allocation5_spill] sm:$0xff] }
 0x401   : > { %v9179_v53 = vld [vmem:[#allocation117_spill] sm:$0xff] }
 0x402   : > { %v3221_v12 = vmul.f32 %v2736_v16, %v9168_v57  ;;  %5560 = vmatmul.mubr.msk.bf16.gmra.mrb[132].mxu1 %vm517_vm1, %v9169_v54  ;;  %v9178_v16 = vmax.f32 %v9177_v60, 0.0 }
 0x403   : > { %5563 = vmatprep.mubr.msk.bf16.mxu1 %vm5991_vm0, %v9081_v31 }
 0x404   : > { %v3344_v29 = vpack.c.bf16 %v3221_v12, %v3220_v7 }
 0x405   : > { %v2740_v55 = vpop.f32.mrb[28].mxu1 }
 0x406   : > { %v2741_v59 = vadd.f32 %v7773_v50, %v2740_v55  ;;  %v5457_v33 = vpop.f32.mrb[29].mxu1  ;;  %5716 = vmatmul.mubr.msk.bf16.gmra.mrb[24].mxu0 %vm1482_vm2, %v3344_v29 }
 0x407   : > { %v2743_v27 = vpop.f32.mrb[30].mxu1  ;;  %5719 = vmatprep.mubr.msk.bf16.mxu0 %vm5991_vm0, %v9081_v31  ;;  %v9180_v33 = vld [vmem:[#allocation6_spill] sm:$0xff] }
 0x408   : > { %v2744_v30 = vadd.f32 %v7773_v50, %v2743_v27  ;;  %v5458_v37 = vpop.f32.mrb[31].mxu1  ;;  %v3222_v51 = vmul.f32 %v2741_v59, %v9171_v6  ;;  %v9181_v27 = vmax.f32 %v9180_v33, 0.0 }
 0x409   : > { %v9182_v37 = vld [vmem:[#allocation7_spill] sm:$0xff] }
 0x40a   : > { %v3223_v49 = vmul.f32 %v2744_v30, %v9173_v47  ;;  %5564 = vmatmul.mubr.msk.bf16.gmra.mrb[136].mxu1 %vm517_vm1, %v9174_v18  ;;  %v9183_v17 = vmax.f32 %v9182_v37, 0.0 }
 0x40b   : > { %5567 = vmatprep.mubr.msk.bf16.mxu1 %vm5991_vm0, %v9081_v31 }
 0x40c   : > { %v3345_v4 = vpack.c.bf16 %v3223_v49, %v3222_v51  ;;  %v9184_v51 = vld [vmem:[#allocation119_spill] sm:$0xff] }
 0x40d   : > { %v2748_v8 = vpop.f32.mrb[32].mxu1 }
 0x40e   : > { %v2749_v28 = vadd.f32 %v7773_v50, %v2748_v8  ;;  %v5461_v19 = vpop.f32.mrb[33].mxu1  ;;  %5720 = vmatmul.mubr.msk.bf16.gmra.mrb[28].mxu0 %vm1482_vm2, %v3345_v4 }
 0x40f   : > { %v2751_v25 = vpop.f32.mrb[34].mxu1  ;;  %5723 = vmatprep.mubr.msk.bf16.mxu0 %vm5991_vm0, %v9081_v31  ;;  %v9185_v19 = vld [vmem:[#allocation8_spill] sm:$0xff] }
 0x410   : > { %v2752_v42 = vadd.f32 %v7773_v50, %v2751_v25  ;;  %v5462_v46 = vpop.f32.mrb[35].mxu1  ;;  %v3224_v56 = vmul.f32 %v2749_v28, %v9176_v44  ;;  %v9186_v25 = vmax.f32 %v9185_v19, 0.0 }
 0x411   : > { %v9187_v46 = vld [vmem:[#allocation9_spill] sm:$0xff] }
 0x412   : > { %v3225_v20 = vmul.f32 %v2752_v42, %v9178_v16  ;;  %5568 = vmatmul.mubr.msk.bf16.gmra.mrb[140].mxu1 %vm517_vm1, %v9179_v53  ;;  %v9188_v62 = vmax.f32 %v9187_v46, 0.0 }
 0x413   : > { %5571 = vmatprep.mubr.msk.bf16.mxu1 %vm5991_vm0, %v9081_v31 }
 0x414   : > { %v3346_v7 = vpack.c.bf16 %v3225_v20, %v3224_v56 }
 0x415   : > { %v2756_v57 = vpop.f32.mrb[36].mxu1 }
 0x416   : > { %v2757_v12 = vadd.f32 %v7773_v50, %v2756_v57  ;;  %v5465_v54 = vpop.f32.mrb[37].mxu1  ;;  %5724 = vmatmul.mubr.msk.bf16.gmra.mrb[32].mxu0 %vm1482_vm2, %v3346_v7 }
 0x417   : > { %v2759_v29 = vpop.f32.mrb[38].mxu1  ;;  %5727 = vmatprep.mubr.msk.bf16.mxu0 %vm5991_vm0, %v9081_v31 }
 0x418   : > { %v2760_v55 = vadd.f32 %v7773_v50, %v2759_v29  ;;  %v5466_v59 = vpop.f32.mrb[39].mxu1  ;;  %v3226_v30 = vmul.f32 %v2757_v12, %v9181_v27  ;;  %v9189_v12 = vld [vmem:[#allocation10_spill] sm:$0xff]  ;;  %v9191_v29 = vld [vmem:[#allocation11_spill] sm:$0xff] }
 0x419   : > { %v9190_v54 = vmax.f32 %v9189_v12, 0.0 }
 0x41a   : > { %v3227_v6 = vmul.f32 %v2760_v55, %v9183_v17  ;;  %5572 = vmatmul.mubr.msk.bf16.gmra.mrb[144].mxu1 %vm517_vm1, %v9184_v51  ;;  %v9192_v55 = vmax.f32 %v9191_v29, 0.0 }
 0x41b   : > { %5575 = vmatprep.mubr.msk.bf16.mxu1 %vm5991_vm0, %v9081_v31 }
 0x41c   : > { %v3347_v26 = vpack.c.bf16 %v3227_v6, %v3226_v30 }
 0x41d   : > { %v2764_v47 = vpop.f32.mrb[40].mxu1 }
 0x41e   : > { %v2765_v49 = vadd.f32 %v7773_v50, %v2764_v47  ;;  %v5469_v18 = vpop.f32.mrb[41].mxu1  ;;  %5728 = vmatmul.mubr.msk.bf16.gmra.mrb[36].mxu0 %vm1482_vm2, %v3347_v26  ;;  %v9193_v26 = vld [vmem:[#allocation12_spill] sm:$0xff] }
 0x41f   : > { %v2767_v4 = vpop.f32.mrb[42].mxu1  ;;  %5731 = vmatprep.mubr.msk.bf16.mxu0 %vm5991_vm0, %v9081_v31  ;;  %v9194_v47 = vmax.f32 %v9193_v26, 0.0 }
 0x420   : > { %v2768_v8 = vadd.f32 %v7773_v50, %v2767_v4  ;;  %v5470_v28 = vpop.f32.mrb[43].mxu1  ;;  %v3228_v42 = vmul.f32 %v2765_v49, %v9186_v25  ;;  %v9195_v49 = vld [vmem:[#allocation13_spill] sm:$0xff] }
 0x421   : > { %v9196_v18 = vmax.f32 %v9195_v49, 0.0  ;;  %v9205_v49 = vld [vmem:[#allocation18_spill] sm:$0xff] }
 0x422   : > { %v3229_v44 = vmul.f32 %v2768_v8, %v9188_v62  ;;  %5576 = vmatmul.mubr.msk.bf16.gmra.mrb[148].mxu1 %vm517_vm1, %v7553_v48 }
 0x423   : > { %5579 = vmatprep.mubr.msk.bf16.mxu1 %vm5991_vm0, %v9081_v31 }
 0x424   : > { %v3348_v56 = vpack.c.bf16 %v3229_v44, %v3228_v42  ;;  %v9197_v44 = vld [vmem:[#allocation14_spill] sm:$0xff] }
 0x425   : > { %v2772_v60 = vpop.f32.mrb[44].mxu1 }
 0x426   : > { %v2773_v16 = vadd.f32 %v7773_v50, %v2772_v60  ;;  %v5473_v20 = vpop.f32.mrb[45].mxu1  ;;  %5732 = vmatmul.mubr.msk.bf16.gmra.mrb[40].mxu0 %vm1482_vm2, %v3348_v56  ;;  %v9198_v56 = vmax.f32 %v9197_v44, 0.0  ;;  %v9199_v60 = vld [vmem:[#allocation15_spill] sm:$0xff] }
 0x427   : > { %v2775_v53 = vpop.f32.mrb[46].mxu1  ;;  %5735 = vmatprep.mubr.msk.bf16.mxu0 %vm5991_vm0, %v9081_v31 }
 0x428   : > { %v2776_v7 = vadd.f32 %v7773_v50, %v2775_v53  ;;  %v5474_v57 = vpop.f32.mrb[47].mxu1  ;;  %v3230_v48 = vmul.f32 %v2773_v16, %v9190_v54  ;;  %v9200_v16 = vmax.f32 %v9199_v60, 0.0 }
 0x42a   : > { %v3231_v59 = vmul.f32 %v2776_v7, %v9192_v55  ;;  %5580 = vmatmul.mubr.msk.bf16.gmra.mrb[152].mxu1 %vm517_vm1, %v7564_v5  ;;  %v9201_v55 = vld [vmem:[#allocation16_spill] sm:$0xff] }
 0x42b   : > { %5583 = vmatprep.mubr.msk.bf16.mxu1 %vm5991_vm0, %v9081_v31 }
 0x42c   : > { %v3349_v33 = vpack.c.bf16 %v3231_v59, %v3230_v48  ;;  %v9202_v59 = vmax.f32 %v9201_v55, 0.0 }
 0x42d   : > { %v2780_v27 = vpop.f32.mrb[48].mxu1 }
 0x42e   : > { %v2781_v30 = vadd.f32 %v7773_v50, %v2780_v27  ;;  %v5477_v37 = vpop.f32.mrb[49].mxu1  ;;  %5736 = vmatmul.mubr.msk.bf16.gmra.mrb[44].mxu0 %vm1482_vm2, %v3349_v33  ;;  %v9203_v33 = vld [vmem:[#allocation17_spill] sm:$0xff] }
 0x42f   : > { %v2783_v17 = vpop.f32.mrb[50].mxu1  ;;  %5739 = vmatprep.mubr.msk.bf16.mxu0 %vm5991_vm0, %v9081_v31  ;;  %v9204_v27 = vmax.f32 %v9203_v33, 0.0  ;;  %v9215_v33 = vld [vmem:[#allocation23_spill] sm:$0xff] }
 0x430   : > { %v2784_v6 = vadd.f32 %v7773_v50, %v2783_v17  ;;  %v5478_v51 = vpop.f32.mrb[51].mxu1  ;;  %v3232_v5 = vmul.f32 %v2781_v30, %v9194_v47 }
 0x432   : > { %v3233_v4 = vmul.f32 %v2784_v6, %v9196_v18  ;;  %5584 = vmatmul.mubr.msk.bf16.gmra.mrb[156].mxu1 %vm517_vm1, %v7572_v40  ;;  %v9206_v18 = vmax.f32 %v9205_v49, 0.0  ;;  %v9217_v49 = vld [vmem:[#allocation24_spill] sm:$0xff] }
 0x433   : > { %5587 = vmatprep.mubr.msk.bf16.mxu1 %vm5991_vm0, %v9081_v31 }
 0x434   : > { %v3350_v8 = vpack.c.bf16 %v3233_v4, %v3232_v5  ;;  %v9207_v4 = vld [vmem:[#allocation19_spill] sm:$0xff] }
 0x435   : > { %v2788_v28 = vpop.f32.mrb[52].mxu1 }
 0x436   : > { %v2789_v19 = vadd.f32 %v7773_v50, %v2788_v28  ;;  %v5481_v25 = vpop.f32.mrb[53].mxu1  ;;  %5740 = vmatmul.mubr.msk.bf16.gmra.mrb[48].mxu0 %vm1482_vm2, %v3350_v8  ;;  %v9208_v8 = vmax.f32 %v9207_v4, 0.0 }
 0x437   : > { %v2791_v42 = vpop.f32.mrb[54].mxu1  ;;  %5743 = vmatprep.mubr.msk.bf16.mxu0 %vm5991_vm0, %v9081_v31 }
 0x438   : > { %v2792_v46 = vadd.f32 %v7773_v50, %v2791_v42  ;;  %v5482_v62 = vpop.f32.mrb[55].mxu1  ;;  %v3234_v40 = vmul.f32 %v2789_v19, %v9198_v56 }
 0x43a   : > { %v3235_v20 = vmul.f32 %v2792_v46, %v9200_v16  ;;  %5588 = vmatmul.mubr.msk.bf16.gmra.mrb[160].mxu1 %vm517_vm1, %v7580_v45  ;;  %v9211_v16 = vld [vmem:[#allocation21_spill] sm:$0xff] }
 0x43b   : > { %5591 = vmatprep.mubr.msk.bf16.mxu1 %vm5991_vm0, %v9081_v31 }
 0x43c   : > { %v3351_v53 = vpack.c.bf16 %v3235_v20, %v3234_v40  ;;  %v9209_v40 = vld [vmem:[#allocation20_spill] sm:$0xff]  ;;  %v9212_v20 = vmax.f32 %v9211_v16, 0.0 }
 0x43d   : > { %v2796_v7 = vpop.f32.mrb[56].mxu1  ;;  %v9210_v60 = vmax.f32 %v9209_v40, 0.0 }
 0x43e   : > { %v2797_v57 = vadd.f32 %v7773_v50, %v2796_v7  ;;  %v5485_v12 = vpop.f32.mrb[57].mxu1  ;;  %5744 = vmatmul.mubr.msk.bf16.gmra.mrb[52].mxu0 %vm1482_vm2, %v3351_v53 }
 0x43f   : > { %v2799_v54 = vpop.f32.mrb[58].mxu1  ;;  %5747 = vmatprep.mubr.msk.bf16.mxu0 %vm5991_vm0, %v9081_v31 }
 0x440   : > { %v2800_v48 = vadd.f32 %v7773_v50, %v2799_v54  ;;  %v5486_v29 = vpop.f32.mrb[59].mxu1  ;;  %v3236_v45 = vmul.f32 %v2797_v57, %v9202_v59  ;;  %v9213_v59 = vld [vmem:[#allocation22_spill] sm:$0xff] }
 0x442   : > { %v3237_v30 = vmul.f32 %v2800_v48, %v9204_v27  ;;  %5592 = vmatmul.mubr.msk.bf16.gmra.mrb[164].mxu1 %vm517_vm1, %v7588_v13  ;;  %v9216_v27 = vmax.f32 %v9215_v33, 0.0 }
 0x443   : > { %5595 = vmatprep.mubr.msk.bf16.mxu1 %vm5991_vm0, %v9081_v31 }
 0x444   : > { %v3352_v37 = vpack.c.bf16 %v3237_v30, %v3236_v45  ;;  %v9214_v45 = vmax.f32 %v9213_v59, 0.0  ;;  %v9227_v59 = vld [vmem:[#allocation29_spill] sm:$0xff] }
 0x445   : > { %v2804_v17 = vpop.f32.mrb[60].mxu1 }
 0x446   : > { %v2805_v6 = vadd.f32 %v7773_v50, %v2804_v17  ;;  %v5489_v51 = vpop.f32.mrb[61].mxu1  ;;  %5748 = vmatmul.mubr.msk.bf16.gmra.mrb[56].mxu0 %vm1482_vm2, %v3352_v37 }
 0x447   : > { %v2807_v26 = vpop.f32.mrb[62].mxu1  ;;  %5751 = vmatprep.mubr.msk.bf16.mxu0 %vm5991_vm0, %v9081_v31 }
 0x448   : > { %v2808_v47 = vadd.f32 %v7773_v50, %v2807_v26  ;;  %v5490_v5 = vpop.f32.mrb[63].mxu1  ;;  %v3238_v13 = vmul.f32 %v2805_v6, %v9206_v18  ;;  %v9218_v18 = vmax.f32 %v9217_v49, 0.0 }
 0x44a   : > { %v3239_v28 = vmul.f32 %v2808_v47, %v9208_v8  ;;  %5596 = vmatmul.mubr.msk.bf16.gmra.mrb[168].mxu1 %vm517_vm1, %v7596_v61 }
 0x44b   : > { %5599 = vmatprep.mubr.msk.bf16.mxu1 %vm5991_vm0, %v9081_v31 }
 0x44c   : > { %v3353_v19 = vpack.c.bf16 %v3239_v28, %v3238_v13  ;;  %v9219_v13 = vld [vmem:[#allocation25_spill] sm:$0xff] }
 0x44d   : > { %v2812_v25 = vpop.f32.mrb[64].mxu1  ;;  %v9220_v4 = vmax.f32 %v9219_v13, 0.0 }
 0x44e   : > { %v2813_v42 = vadd.f32 %v7773_v50, %v2812_v25  ;;  %v5493_v46 = vpop.f32.mrb[65].mxu1  ;;  %5752 = vmatmul.mubr.msk.bf16.gmra.mrb[60].mxu0 %vm1482_vm2, %v3353_v19 }
 0x44f   : > { %v2815_v62 = vpop.f32.mrb[66].mxu1  ;;  %5755 = vmatprep.mubr.msk.bf16.mxu0 %vm5991_vm0, %v9081_v31 }
 0x450   : > { %v2816_v44 = vadd.f32 %v7773_v50, %v2815_v62  ;;  %v5494_v56 = vpop.f32.mrb[67].mxu1  ;;  %v3240_v61 = vmul.f32 %v2813_v42, %v9210_v60  ;;  %v9223_v60 = vld [vmem:[#allocation27_spill] sm:$0xff] }
 0x451   : > { %v9221_v56 = vld [vmem:[#allocation26_spill] sm:$0xff] }
 0x452   : > { %v3241_v53 = vmul.f32 %v2816_v44, %v9212_v20  ;;  %5600 = vmatmul.mubr.msk.bf16.gmra.mrb[172].mxu1 %vm517_vm1, %v7604_v36  ;;  %v9222_v40 = vmax.f32 %v9221_v56, 0.0 }
 0x453   : > { %5603 = vmatprep.mubr.msk.bf16.mxu1 %vm5991_vm0, %v9081_v31 }
 0x454   : > { %v3354_v7 = vpack.c.bf16 %v3241_v53, %v3240_v61  ;;  %v9224_v61 = vmax.f32 %v9223_v60, 0.0 }
 0x455   : > { %v2820_v57 = vpop.f32.mrb[68].mxu1 }
 0x456   : > { %v2821_v12 = vadd.f32 %v7773_v50, %v2820_v57  ;;  %v5497_v54 = vpop.f32.mrb[69].mxu1  ;;  %5756 = vmatmul.mubr.msk.bf16.gmra.mrb[64].mxu0 %vm1482_vm2, %v3354_v7 }
 0x457   : > { %v2823_v48 = vpop.f32.mrb[70].mxu1  ;;  %5759 = vmatprep.mubr.msk.bf16.mxu0 %vm5991_vm0, %v9081_v31 }
 0x458   : > { %v2824_v29 = vadd.f32 %v7773_v50, %v2823_v48  ;;  %v5498_v55 = vpop.f32.mrb[71].mxu1  ;;  %v3242_v36 = vmul.f32 %v2821_v12, %v9214_v45  ;;  %v9228_v45 = vmax.f32 %v9227_v59, 0.0 }
 0x45a   : > { %v3243_v30 = vmul.f32 %v2824_v29, %v9216_v27  ;;  %5604 = vmatmul.mubr.msk.bf16.gmra.mrb[176].mxu1 %vm517_vm1, %v7612_v39  ;;  %v9225_v29 = vld [vmem:[#allocation28_spill] sm:$0xff] }
 0x45b   : > { %5607 = vmatprep.mubr.msk.bf16.mxu1 %vm5991_vm0, %v9081_v31  ;;  %v9226_v55 = vmax.f32 %v9225_v29, 0.0 }
 0x45c   : > { %v3355_v37 = vpack.c.bf16 %v3243_v30, %v3242_v36 }
 0x45d   : > { %v2828_v17 = vpop.f32.mrb[72].mxu1 }
 0x45e   : > { %v2829_v6 = vadd.f32 %v7773_v50, %v2828_v17  ;;  %v5501_v51 = vpop.f32.mrb[73].mxu1  ;;  %5760 = vmatmul.mubr.msk.bf16.gmra.mrb[68].mxu0 %vm1482_vm2, %v3355_v37 }
 0x45f   : > { %v2831_v26 = vpop.f32.mrb[74].mxu1  ;;  %5763 = vmatprep.mubr.msk.bf16.mxu0 %vm5991_vm0, %v9081_v31 }
 0x460   : > { %v2832_v47 = vadd.f32 %v7773_v50, %v2831_v26  ;;  %v5502_v5 = vpop.f32.mrb[75].mxu1  ;;  %v3244_v39 = vmul.f32 %v2829_v6, %v9218_v18  ;;  %v9229_v26 = vld [vmem:[#allocation30_spill] sm:$0xff] }
 0x461   : > { %v9231_v5 = vld [vmem:[#allocation31_spill] sm:$0xff] }
 0x462   : > { %v3245_v8 = vmul.f32 %v2832_v47, %v9220_v4  ;;  %5608 = vmatmul.mubr.msk.bf16.gmra.mrb[180].mxu1 %vm517_vm1, %v7620_v35  ;;  %v9230_v47 = vmax.f32 %v9229_v26, 0.0  ;;  %v9232_v49 = vmax.f32 %v9231_v5, 0.0 }
 0x463   : > { %5611 = vmatprep.mubr.msk.bf16.mxu1 %vm5991_vm0, %v9081_v31 }
 0x464   : > { %v3356_v28 = vpack.c.bf16 %v3245_v8, %v3244_v39 }
 0x465   : > { %v2836_v19 = vpop.f32.mrb[76].mxu1 }
 0x466   : > { %v2837_v25 = vadd.f32 %v7773_v50, %v2836_v19  ;;  %v5505_v42 = vpop.f32.mrb[77].mxu1  ;;  %5764 = vmatmul.mubr.msk.bf16.gmra.mrb[72].mxu0 %vm1482_vm2, %v3356_v28 }
 0x467   : > { %v2839_v46 = vpop.f32.mrb[78].mxu1  ;;  %5767 = vmatprep.mubr.msk.bf16.mxu0 %vm5991_vm0, %v9081_v31  ;;  %v9233_v42 = vld [vmem:[#allocation32_spill] sm:$0xff] }
 0x468   : > { %v2840_v62 = vadd.f32 %v7773_v50, %v2839_v46  ;;  %v5506_v44 = vpop.f32.mrb[79].mxu1  ;;  %v3246_v35 = vmul.f32 %v2837_v25, %v9222_v40  ;;  %v9234_v46 = vmax.f32 %v9233_v42, 0.0 }
 0x46a   : > { %v3247_v16 = vmul.f32 %v2840_v62, %v9224_v61  ;;  %5612 = vmatmul.mubr.msk.bf16.gmra.mrb[184].mxu1 %vm517_vm1, %v7628_v3  ;;  %v9235_v62 = vld [vmem:[#allocation33_spill] sm:$0xff] }
 0x46b   : > { %5615 = vmatprep.mubr.msk.bf16.mxu1 %vm5991_vm0, %v9081_v31  ;;  %v9236_v44 = vmax.f32 %v9235_v62, 0.0 }
 0x46c   : > { %v3357_v20 = vpack.c.bf16 %v3247_v16, %v3246_v35 }
 0x46d   : > { %v2844_v53 = vpop.f32.mrb[80].mxu1 }
 0x46e   : > { %v2845_v7 = vadd.f32 %v7773_v50, %v2844_v53  ;;  %v5509_v57 = vpop.f32.mrb[81].mxu1  ;;  %5768 = vmatmul.mubr.msk.bf16.gmra.mrb[76].mxu0 %vm1482_vm2, %v3357_v20 }
 0x46f   : > { %v2847_v12 = vpop.f32.mrb[82].mxu1  ;;  %5771 = vmatprep.mubr.msk.bf16.mxu0 %vm5991_vm0, %v9081_v31 }
 0x470   : > { %v2848_v54 = vadd.f32 %v7773_v50, %v2847_v12  ;;  %v5510_v48 = vpop.f32.mrb[83].mxu1  ;;  %v3248_v3 = vmul.f32 %v2845_v7, %v9226_v55  ;;  %v9237_v7 = vld [vmem:[#allocation34_spill] sm:$0xff]  ;;  %v9239_v12 = vld [vmem:[#allocation35_spill] sm:$0xff] }
 0x471   : > { %v9238_v57 = vmax.f32 %v9237_v7, 0.0 }
 0x472   : > { %v3249_v36 = vmul.f32 %v2848_v54, %v9228_v45  ;;  %5616 = vmatmul.mubr.msk.bf16.gmra.mrb[188].mxu1 %vm517_vm1, %v7636_v22  ;;  %v9240_v54 = vmax.f32 %v9239_v12, 0.0 }
 0x473   : > { %5619 = vmatprep.mubr.msk.bf16.mxu1 %vm5991_vm0, %v9081_v31 }
 0x474   : > { %v3358_v33 = vpack.c.bf16 %v3249_v36, %v3248_v3 }
 0x475   : > { %v2852_v27 = vpop.f32.mrb[84].mxu1 }
 0x476   : > { %v2853_v30 = vadd.f32 %v7773_v50, %v2852_v27  ;;  %v5513_v37 = vpop.f32.mrb[85].mxu1  ;;  %5772 = vmatmul.mubr.msk.bf16.gmra.mrb[80].mxu0 %vm1482_vm2, %v3358_v33  ;;  %v9241_v27 = vld [vmem:[#allocation36_spill] sm:$0xff] }
 0x477   : > { %v2855_v17 = vpop.f32.mrb[86].mxu1  ;;  %5775 = vmatprep.mubr.msk.bf16.mxu0 %vm5991_vm0, %v9081_v31  ;;  %v9243_v37 = vld [vmem:[#allocation37_spill] sm:$0xff] }
 0x478   : > { %v2856_v6 = vadd.f32 %v7773_v50, %v2855_v17  ;;  %v5514_v51 = vpop.f32.mrb[87].mxu1  ;;  %v3250_v22 = vmul.f32 %v2853_v30, %v9230_v47  ;;  %v9242_v30 = vmax.f32 %v9241_v27, 0.0  ;;  %v9244_v17 = vmax.f32 %v9243_v37, 0.0  ;;  %v9257_v37 = vld [vmem:[#allocation44_spill] sm:$0xff] }
 0x47a   : > { %v3251_v18 = vmul.f32 %v2856_v6, %v9232_v49  ;;  %5620 = vmatmul.mubr.msk.bf16.gmra.mrb[192].mxu1 %vm517_vm1, %v7644_v1 }
 0x47b   : > { %5623 = vmatprep.mubr.msk.bf16.mxu1 %vm5991_vm0, %v9081_v31 }
 0x47c   : > { %v3359_v39 = vpack.c.bf16 %v3251_v18, %v3250_v22 }
 0x47d   : > { %v2860_v13 = vpop.f32.mrb[88].mxu1 }
 0x47e   : > { %v2861_v4 = vadd.f32 %v7773_v50, %v2860_v13  ;;  %v5517_v8 = vpop.f32.mrb[89].mxu1  ;;  %5776 = vmatmul.mubr.msk.bf16.gmra.mrb[84].mxu0 %vm1482_vm2, %v3359_v39  ;;  %v9245_v39 = vld [vmem:[#allocation38_spill] sm:$0xff] }
 0x47f   : > { %v2863_v28 = vpop.f32.mrb[90].mxu1  ;;  %5779 = vmatprep.mubr.msk.bf16.mxu0 %vm5991_vm0, %v9081_v31  ;;  %v9246_v13 = vmax.f32 %v9245_v39, 0.0 }
 0x480   : > { %v2864_v19 = vadd.f32 %v7773_v50, %v2863_v28  ;;  %v5518_v25 = vpop.f32.mrb[91].mxu1  ;;  %v3252_v1 = vmul.f32 %v2861_v4, %v9234_v46  ;;  %v9247_v4 = vld [vmem:[#allocation39_spill] sm:$0xff] }
 0x481   : > { %v9248_v8 = vmax.f32 %v9247_v4, 0.0 }
 0x482   : > { %v3253_v56 = vmul.f32 %v2864_v19, %v9236_v44  ;;  %5624 = vmatmul.mubr.msk.bf16.gmra.mrb[196].mxu1 %vm517_vm1, %v7652_v10 }
 0x483   : > { %5627 = vmatprep.mubr.msk.bf16.mxu1 %vm5991_vm0, %v9081_v31 }
 0x484   : > { %v3360_v40 = vpack.c.bf16 %v3253_v56, %v3252_v1  ;;  %v9249_v56 = vld [vmem:[#allocation40_spill] sm:$0xff] }
 0x485   : > { %v2868_v35 = vpop.f32.mrb[92].mxu1 }
 0x486   : > { %v2869_v60 = vadd.f32 %v7773_v50, %v2868_v35  ;;  %v5521_v61 = vpop.f32.mrb[93].mxu1  ;;  %5780 = vmatmul.mubr.msk.bf16.gmra.mrb[88].mxu0 %vm1482_vm2, %v3360_v40  ;;  %v9250_v40 = vmax.f32 %v9249_v56, 0.0  ;;  %v9251_v35 = vld [vmem:[#allocation41_spill] sm:$0xff] }
 0x487   : > { %v2871_v16 = vpop.f32.mrb[94].mxu1  ;;  %5783 = vmatprep.mubr.msk.bf16.mxu0 %vm5991_vm0, %v9081_v31 }
 0x488   : > { %v2872_v20 = vadd.f32 %v7773_v50, %v2871_v16  ;;  %v5522_v53 = vpop.f32.mrb[95].mxu1  ;;  %v3254_v10 = vmul.f32 %v2869_v60, %v9238_v57  ;;  %v9252_v60 = vmax.f32 %v9251_v35, 0.0 }
 0x48a   : > { %v3255_v48 = vmul.f32 %v2872_v20, %v9240_v54  ;;  %5628 = vmatmul.mubr.msk.bf16.gmra.mrb[200].mxu1 %vm517_vm1, %v7660_v32  ;;  %v9253_v54 = vld [vmem:[#allocation42_spill] sm:$0xff] }
 0x48b   : > { %5631 = vmatprep.mubr.msk.bf16.mxu1 %vm5991_vm0, %v9081_v31 }
 0x48c   : > { %v3361_v29 = vpack.c.bf16 %v3255_v48, %v3254_v10 }
 0x48d   : > { %v2876_v55 = vpop.f32.mrb[96].mxu1 }
 0x48e   : > { %v2877_v3 = vadd.f32 %v7773_v50, %v2876_v55  ;;  %v5525_v59 = vpop.f32.mrb[97].mxu1  ;;  %5784 = vmatmul.mubr.msk.bf16.gmra.mrb[92].mxu0 %vm1482_vm2, %v3361_v29  ;;  %v9255_v29 = vld [vmem:[#allocation43_spill] sm:$0xff] }
 0x48f   : > { %v2879_v45 = vpop.f32.mrb[98].mxu1  ;;  %5787 = vmatprep.mubr.msk.bf16.mxu0 %vm5991_vm0, %v9081_v31  ;;  %v9256_v55 = vmax.f32 %v9255_v29, 0.0 }
 0x490   : > { %v2880_v36 = vadd.f32 %v7773_v50, %v2879_v45  ;;  %v5526_v33 = vpop.f32.mrb[99].mxu1  ;;  %v3256_v32 = vmul.f32 %v2877_v3, %v9242_v30 }
 0x492   : > { %v3257_v6 = vmul.f32 %v2880_v36, %v9244_v17  ;;  %5632 = vmatmul.mubr.msk.bf16.gmra.mrb[204].mxu1 %vm517_vm1, %v7668_v23  ;;  %v9258_v17 = vmax.f32 %v9257_v37, 0.0 }
 0x493   : > { %5635 = vmatprep.mubr.msk.bf16.mxu1 %vm5991_vm0, %v9081_v31 }
 0x494   : > { %v3362_v51 = vpack.c.bf16 %v3257_v6, %v3256_v32 }
 0x495   : > { %v2884_v26 = vpop.f32.mrb[100].mxu1 }
 0x496   : > { %v2885_v47 = vadd.f32 %v7773_v50, %v2884_v26  ;;  %v5529_v22 = vpop.f32.mrb[101].mxu1  ;;  %5788 = vmatmul.mubr.msk.bf16.gmra.mrb[96].mxu0 %vm1482_vm2, %v3362_v51  ;;  %v9259_v51 = vld [vmem:[#allocation45_spill] sm:$0xff] }
 0x497   : > { %v2887_v5 = vpop.f32.mrb[102].mxu1  ;;  %5791 = vmatprep.mubr.msk.bf16.mxu0 %vm5991_vm0, %v9081_v31  ;;  %v9260_v26 = vmax.f32 %v9259_v51, 0.0 }
 0x498   : > { %v2888_v49 = vadd.f32 %v7773_v50, %v2887_v5  ;;  %v5530_v18 = vpop.f32.mrb[103].mxu1  ;;  %v3258_v23 = vmul.f32 %v2885_v47, %v9246_v13 }
 0x49a   : > { %v3259_v28 = vmul.f32 %v2888_v49, %v9248_v8  ;;  %5636 = vmatmul.mubr.msk.bf16.gmra.mrb[208].mxu1 %vm517_vm1, %v7676_v58 }
 0x49b   : > { %5639 = vmatprep.mubr.msk.bf16.mxu1 %vm5991_vm0, %v9081_v31 }
 0x49c   : > { %v3363_v19 = vpack.c.bf16 %v3259_v28, %v3258_v23 }
 0x49d   : > { %v2892_v25 = vpop.f32.mrb[104].mxu1 }
 0x49e   : > { %v2893_v42 = vadd.f32 %v7773_v50, %v2892_v25  ;;  %v5533_v46 = vpop.f32.mrb[105].mxu1  ;;  %5792 = vmatmul.mubr.msk.bf16.gmra.mrb[100].mxu0 %vm1482_vm2, %v3363_v19  ;;  %v9261_v19 = vld [vmem:[#allocation46_spill] sm:$0xff] }
 0x49f   : > { %v2895_v1 = vpop.f32.mrb[106].mxu1  ;;  %5795 = vmatprep.mubr.msk.bf16.mxu0 %vm5991_vm0, %v9081_v31  ;;  %v9262_v25 = vmax.f32 %v9261_v19, 0.0  ;;  %v9263_v46 = vld [vmem:[#allocation47_spill] sm:$0xff]  ;;  %v9275_v19 = vld [vmem:[#allocation53_spill] sm:$0xff] }
 0x4a0   : > { %v2896_v62 = vadd.f32 %v7773_v50, %v2895_v1  ;;  %v5534_v44 = vpop.f32.mrb[107].mxu1  ;;  %v3260_v58 = vmul.f32 %v2893_v42, %v9250_v40  ;;  %v9264_v1 = vmax.f32 %v9263_v46, 0.0 }
 0x4a2   : > { %v3261_v61 = vmul.f32 %v2896_v62, %v9252_v60  ;;  %5640 = vmatmul.mubr.msk.bf16.gmra.mrb[212].mxu1 %vm517_vm1, %v7684_v24  ;;  %v9254_v24 = vmax.f32 %v9253_v54, 0.0 }
 0x4a3   : > { %5643 = vmatprep.mubr.msk.bf16.mxu1 %vm5991_vm0, %v9081_v31 }
 0x4a4   : > { %v3364_v16 = vpack.c.bf16 %v3261_v61, %v3260_v58 }
 0x4a5   : > { %v2900_v20 = vpop.f32.mrb[108].mxu1 }
 0x4a6   : > { %v2901_v53 = vadd.f32 %v7773_v50, %v2900_v20  ;;  %v5537_v7 = vpop.f32.mrb[109].mxu1  ;;  %5796 = vmatmul.mubr.msk.bf16.gmra.mrb[104].mxu0 %vm1482_vm2, %v3364_v16 }
 0x4a7   : > { %v2903_v57 = vpop.f32.mrb[110].mxu1  ;;  %5799 = vmatprep.mubr.msk.bf16.mxu0 %vm5991_vm0, %v9081_v31  ;;  %v9265_v7 = vld [vmem:[#allocation48_spill] sm:$0xff] }
 0x4a8   : > { %v2904_v10 = vadd.f32 %v7773_v50, %v2903_v57  ;;  %v5538_v12 = vpop.f32.mrb[111].mxu1  ;;  %v3262_v48 = vmul.f32 %v2901_v53, %v9254_v24  ;;  %v9266_v57 = vmax.f32 %v9265_v7, 0.0 }
 0x4a9   : > { %v9267_v12 = vld [vmem:[#allocation49_spill] sm:$0xff] }
 0x4aa   : > { %v3263_v3 = vmul.f32 %v2904_v10, %v9256_v55  ;;  %5644 = vmatmul.mubr.msk.bf16.gmra.mrb[216].mxu1 %vm517_vm1, %v7692_v21  ;;  %v9268_v54 = vmax.f32 %v9267_v12, 0.0 }
 0x4ab   : > { %5647 = vmatprep.mubr.msk.bf16.mxu1 %vm5991_vm0, %v9081_v31 }
 0x4ac   : > { %v3365_v59 = vpack.c.bf16 %v3263_v3, %v3262_v48 }
 0x4ad   : > { %v2908_v45 = vpop.f32.mrb[112].mxu1 }
 0x4ae   : > { %v2909_v36 = vadd.f32 %v7773_v50, %v2908_v45  ;;  %v5541_v33 = vpop.f32.mrb[113].mxu1  ;;  %5800 = vmatmul.mubr.msk.bf16.gmra.mrb[108].mxu0 %vm1482_vm2, %v3365_v59 }
 0x4af   : > { %v2911_v27 = vpop.f32.mrb[114].mxu1  ;;  %5803 = vmatprep.mubr.msk.bf16.mxu0 %vm5991_vm0, %v9081_v31 }
 0x4b0   : > { %v2912_v21 = vadd.f32 %v7773_v50, %v2911_v27  ;;  %v5542_v30 = vpop.f32.mrb[115].mxu1  ;;  %v3264_v6 = vmul.f32 %v2909_v36, %v9258_v17  ;;  %v9271_v17 = vld [vmem:[#allocation51_spill] sm:$0xff] }
 0x4b1   : > { %v3633_v32 = vpop.f32.mrb[4].mxu0  ;;  %v9269_v30 = vld [vmem:[#allocation50_spill] sm:$0xff] }
 0x4b2   : > { %v3265_v47 = vmul.f32 %v2912_v21, %v9260_v26  ;;  %4152 = vst.msk [vmem:[%s8132_s25] sm:$0xff] %vm4151_vm3, %v3633_v32  ;;  %5648 = vmatmul.mubr.msk.bf16.gmra.mrb[220].mxu1 %vm517_vm1, %v7700_v43  ;;  %v5697_v22 = vpop.f32.mrb[5].mxu0  ;;  %v9270_v32 = vmax.f32 %v9269_v30, 0.0 }
 0x4b3   : > { %v3636_v5 = vpop.f32.mrb[6].mxu0  ;;  %5651 = vmatprep.mubr.msk.bf16.mxu1 %vm5991_vm0, %v9081_v31 }
 0x4b4   : > { %v3366_v49 = vpack.c.bf16 %v3265_v47, %v3264_v6  ;;  %4153 = vst.msk [vmem:[%s8132_s25 + $0x8] sm:$0xff] %vm4151_vm3, %v3636_v5  ;;  %v5698_v18 = vpop.f32.mrb[7].mxu0  ;;  %v9272_v6 = vmax.f32 %v9271_v17, 0.0 }
 0x4b5   : > { %v2916_v39 = vpop.f32.mrb[116].mxu1 }
 0x4b6   : > { %v2917_v13 = vadd.f32 %v7773_v50, %v2916_v39  ;;  %v5545_v23 = vpop.f32.mrb[117].mxu1  ;;  %5804 = vmatmul.mubr.msk.bf16.gmra.mrb[112].mxu0 %vm1482_vm2, %v3366_v49 }
 0x4b7   : > { %v2919_v4 = vpop.f32.mrb[118].mxu1  ;;  %5807 = vmatprep.mubr.msk.bf16.mxu0 %vm5991_vm0, %v9081_v31 }
 0x4b8   : > { %v2920_v43 = vadd.f32 %v7773_v50, %v2919_v4  ;;  %v5546_v8 = vpop.f32.mrb[119].mxu1  ;;  %v3266_v42 = vmul.f32 %v2917_v13, %v9262_v25  ;;  %v9276_v25 = vmax.f32 %v9275_v19, 0.0 }
 0x4b9   : > { %v3641_v28 = vpop.f32.mrb[8].mxu0 }
 0x4ba   : > { %v3267_v62 = vmul.f32 %v2920_v43, %v9264_v1  ;;  %4154 = vst.msk [vmem:[%s8132_s25 + $0x10] sm:$0xff] %vm4151_vm3, %v3641_v28  ;;  %5652 = vmatmul.mubr.msk.bf16.gmra.mrb[224].mxu1 %vm517_vm1, %v7708_v63  ;;  %v5701_v44 = vpop.f32.mrb[9].mxu0  ;;  %v9273_v43 = vld [vmem:[#allocation52_spill] sm:$0xff] }
 0x4bb   : > { %v3644_v56 = vpop.f32.mrb[10].mxu0  ;;  %5655 = vmatprep.mubr.msk.bf16.mxu1 %vm5991_vm0, %v9081_v31  ;;  %v9274_v8 = vmax.f32 %v9273_v43, 0.0 }
 0x4bc   : > { %v3367_v40 = vpack.c.bf16 %v3267_v62, %v3266_v42  ;;  %4155 = vst.msk [vmem:[%s8132_s25 + $0x18] sm:$0xff] %vm4151_vm3, %v3644_v56  ;;  %v5702_v58 = vpop.f32.mrb[11].mxu0 }
 0x4bd   : > { %v2924_v35 = vpop.f32.mrb[120].mxu1 }
 0x4be   : > { %v2925_v60 = vadd.f32 %v7773_v50, %v2924_v35  ;;  %v5549_v61 = vpop.f32.mrb[121].mxu1  ;;  %5808 = vmatmul.mubr.msk.bf16.gmra.mrb[116].mxu0 %vm1482_vm2, %v3367_v40 }
 0x4bf   : > { %v2927_v16 = vpop.f32.mrb[122].mxu1  ;;  %5811 = vmatprep.mubr.msk.bf16.mxu0 %vm5991_vm0, %v9081_v31 }
 0x4c0   : > { %v2928_v63 = vadd.f32 %v7773_v50, %v2927_v16  ;;  %v5550_v20 = vpop.f32.mrb[123].mxu1  ;;  %v3268_v10 = vmul.f32 %v2925_v60, %v9266_v57  ;;  %v9277_v16 = vld [vmem:[#allocation54_spill] sm:$0xff] }
 0x4c1   : > { %v3649_v53 = vpop.f32.mrb[12].mxu0 }
 0x4c2   : > { %v3269_v24 = vmul.f32 %v2928_v63, %v9268_v54  ;;  %4156 = vst.msk [vmem:[%s8132_s25 + $0x20] sm:$0xff] %vm4151_vm3, %v3649_v53  ;;  %5656 = vmatmul.mubr.msk.bf16.gmra.mrb[228].mxu1 %vm517_vm1, %v7716_v0  ;;  %v5705_v48 = vpop.f32.mrb[13].mxu0  ;;  %v9278_v63 = vmax.f32 %v9277_v16, 0.0  ;;  %v9279_v53 = vld [vmem:[#allocation55_spill] sm:$0xff] }
 0x4c3   : > { %v3652_v29 = vpop.f32.mrb[14].mxu0  ;;  %5659 = vmatprep.mubr.msk.bf16.mxu1 %vm5991_vm0, %v9081_v31  ;;  %v9280_v7 = vmax.f32 %v9279_v53, 0.0  ;;  %v8288_v53 = vld [vmem:[%s8788_s6] ss:$0 sm:$0xff] }
 0x4c4   : > { %v3368_v55 = vpack.c.bf16 %v3269_v24, %v3268_v10  ;;  %4157 = vst.msk [vmem:[%s8132_s25 + $0x28] sm:$0xff] %vm4151_vm3, %v3652_v29  ;;  %v5706_v3 = vpop.f32.mrb[15].mxu0 }
 0x4c5   : > { %v2932_v59 = vpop.f32.mrb[124].mxu1 }
 0x4c6   : > { %v2933_v45 = vadd.f32 %v7773_v50, %v2932_v59  ;;  %v5553_v36 = vpop.f32.mrb[125].mxu1  ;;  %5812 = vmatmul.mubr.msk.bf16.gmra.mrb[120].mxu0 %vm1482_vm2, %v3368_v55 }
 0x4c7   : > { %v2935_v33 = vpop.f32.mrb[126].mxu1  ;;  %5815 = vmatprep.mubr.msk.bf16.mxu0 %vm5991_vm0, %v9081_v31  ;;  %v9281_v36 = vld [vmem:[#allocation56_spill] sm:$0xff] }
 0x4c8   : > { %v2936_v0 = vadd.f32 %v7773_v50, %v2935_v33  ;;  %v5554_v27 = vpop.f32.mrb[127].mxu1  ;;  %v3270_v37 = vmul.f32 %v2933_v45, %v9270_v32  ;;  %v9282_v33 = vmax.f32 %v9281_v36, 0.0 }
 0x4c9   : > { %v3657_v21 = vpop.f32.mrb[16].mxu0  ;;  %v9283_v27 = vld [vmem:[#allocation57_spill] sm:$0xff] }
 0x4ca   : > { %v3271_v51 = vmul.f32 %v2936_v0, %v9272_v6  ;;  %4158 = vst.msk [vmem:[%s8132_s25 + $0x30] sm:$0xff] %vm4151_vm3, %v3657_v21  ;;  %5660 = vmatmul.mubr.msk.bf16.gmra.mrb[232].mxu1 %vm517_vm1, %v7724_v9  ;;  %v5709_v26 = vpop.f32.mrb[17].mxu0  ;;  %v9284_v21 = vmax.f32 %v9283_v27, 0.0 }
 0x4cb   : > { %v3660_v47 = vpop.f32.mrb[18].mxu0  ;;  %5663 = vmatprep.mubr.msk.bf16.mxu1 %vm5991_vm0, %v9081_v31 }
 0x4cc   : > { %v3369_v22 = vpack.c.bf16 %v3271_v51, %v3270_v37  ;;  %4159 = vst.msk [vmem:[%s8132_s25 + $0x38] sm:$0xff] %vm4151_vm3, %v3660_v47  ;;  %v5710_v5 = vpop.f32.mrb[19].mxu0 }
 0x4cd   : > { %v2940_v49 = vpop.f32.mrb[128].mxu1 }
 0x4ce   : > { %v2941_v18 = vadd.f32 %v7773_v50, %v2940_v49  ;;  %v5557_v39 = vpop.f32.mrb[129].mxu1  ;;  %5816 = vmatmul.mubr.msk.bf16.gmra.mrb[124].mxu0 %vm1482_vm2, %v3369_v22 }
 0x4cf   : > { %v2943_v13 = vpop.f32.mrb[130].mxu1  ;;  %5819 = vmatprep.mubr.msk.bf16.mxu0 %vm5991_vm0, %v9081_v31 }
 0x4d0   : > { %v2944_v9 = vadd.f32 %v7773_v50, %v2943_v13  ;;  %v5558_v23 = vpop.f32.mrb[131].mxu1  ;;  %v3272_v28 = vmul.f32 %v2941_v18, %v9274_v8  ;;  %v9285_v18 = vld [vmem:[#allocation58_spill] sm:$0xff] }
 0x4d1   : > { %v3665_v4 = vpop.f32.mrb[20].mxu0  ;;  %v9286_v39 = vmax.f32 %v9285_v18, 0.0 }
 0x4d2   : > { %v3273_v42 = vmul.f32 %v2944_v9, %v9276_v25  ;;  %4160 = vst.msk [vmem:[%s8132_s25 + $0x40] sm:$0xff] %vm4151_vm3, %v3665_v4  ;;  %5664 = vmatmul.mubr.msk.bf16.gmra.mrb[236].mxu1 %vm517_vm1, %v7734_v38  ;;  %v5713_v46 = vpop.f32.mrb[21].mxu0  ;;  %v9287_v9 = vld [vmem:[#allocation59_spill] sm:$0xff] }
 0x4d3   : > { %v3668_v1 = vpop.f32.mrb[22].mxu0  ;;  %5667 = vmatprep.mubr.msk.bf16.mxu1 %vm5991_vm0, %v9081_v31  ;;  %v9288_v23 = vmax.f32 %v9287_v9, 0.0 }
 0x4d4   : > { %v3370_v62 = vpack.c.bf16 %v3273_v42, %v3272_v28  ;;  %4161 = vst.msk [vmem:[%s8132_s25 + $0x48] sm:$0xff] %vm4151_vm3, %v3668_v1  ;;  %v5714_v44 = vpop.f32.mrb[23].mxu0 }
 0x4d5   : > { %v2948_v56 = vpop.f32.mrb[132].mxu1 }
 0x4d6   : > { %v2949_v40 = vadd.f32 %v7773_v50, %v2948_v56  ;;  %v5561_v58 = vpop.f32.mrb[133].mxu1  ;;  %5820 = vmatmul.mubr.msk.bf16.gmra.mrb[128].mxu0 %vm1482_vm2, %v3370_v62  ;;  %v9289_v56 = vld [vmem:[#allocation60_spill] sm:$0xff] }
 0x4d7   : > { %v2951_v35 = vpop.f32.mrb[134].mxu1  ;;  %5823 = vmatprep.mubr.msk.bf16.mxu0 %vm5991_vm0, %v9081_v31 }
 0x4d8   : > { %v2952_v38 = vadd.f32 %v7773_v50, %v2951_v35  ;;  %v5562_v60 = vpop.f32.mrb[135].mxu1  ;;  %v3274_v20 = vmul.f32 %v2949_v40, %v9278_v63  ;;  %v9290_v40 = vmax.f32 %v9289_v56, 0.0  ;;  %v9291_v35 = vld [vmem:[#allocation61_spill] sm:$0xff] }
 0x4d9   : > { %v3673_v61 = vpop.f32.mrb[24].mxu0 }
 0x4da   : > { %v3275_v57 = vmul.f32 %v2952_v38, %v9280_v7  ;;  %4162 = vst.msk [vmem:[%s8132_s25 + $0x50] sm:$0xff] %vm4151_vm3, %v3673_v61  ;;  %5668 = vmatmul.mubr.msk.bf16.gmra.mrb[240].mxu1 %vm517_vm1, %v7740_v14  ;;  %v5717_v10 = vpop.f32.mrb[25].mxu0  ;;  %v9292_v38 = vmax.f32 %v9291_v35, 0.0 }
 0x4db   : > { %v3676_v12 = vpop.f32.mrb[26].mxu0  ;;  %5671 = vmatprep.mubr.msk.bf16.mxu1 %vm5991_vm0, %v9081_v31  ;;  %v5981_v10 = vld [vmem:[%s8786_s4] ss:$0 sm:$0xff] }
 0x4dc   : > { %v3371_v54 = vpack.c.bf16 %v3275_v57, %v3274_v20  ;;  %4163 = vst.msk [vmem:[%s8132_s25 + $0x58] sm:$0xff] %vm4151_vm3, %v3676_v12  ;;  %v5718_v24 = vpop.f32.mrb[27].mxu0  ;;  %v2225_v12 = vadd.f32 %v5981_v10, %v7766_v2  ;;  %v9307_v10 = vld [vmem:[#allocation69_spill] sm:$0xff] }
 0x4dd   : > { %v2956_v48 = vpop.f32.mrb[136].mxu1 }
 0x4de   : > { %v2957_v29 = vadd.f32 %v7773_v50, %v2956_v48  ;;  %v5565_v55 = vpop.f32.mrb[137].mxu1  ;;  %5824 = vmatmul.mubr.msk.bf16.gmra.mrb[132].mxu0 %vm1482_vm2, %v3371_v54  ;;  %v2358_v2 = vmax.f32 %v2225_v12, 0.0  ;;  %v9308_v12 = vmax.f32 %v9307_v10, 0.0 }
 0x4df   : > { %v2959_v3 = vpop.f32.mrb[138].mxu1  ;;  %5827 = vmatprep.mubr.msk.bf16.mxu0 %vm5991_vm0, %v9081_v31 }
 0x4e0   : > { %v2960_v14 = vadd.f32 %v7773_v50, %v2959_v3  ;;  %v5566_v59 = vpop.f32.mrb[139].mxu1  ;;  %v3276_v0 = vmul.f32 %v2957_v29, %v9282_v33  ;;  %v9293_v29 = vld [vmem:[#allocation62_spill] sm:$0xff] }
 0x4e1   : > { %v3681_v45 = vpop.f32.mrb[28].mxu0  ;;  %v9294_v55 = vmax.f32 %v9293_v29, 0.0 }
 0x4e2   : > { %v3277_v30 = vmul.f32 %v2960_v14, %v9284_v21  ;;  %4164 = vst.msk [vmem:[%s8132_s25 + $0x60] sm:$0xff] %vm4151_vm3, %v3681_v45  ;;  %5672 = vmatmul.mubr.msk.bf16.gmra.mrb[244].mxu1 %vm517_vm1, %v7746_v34  ;;  %v5721_v32 = vpop.f32.mrb[29].mxu0  ;;  %v9295_v14 = vld [vmem:[#allocation63_spill] sm:$0xff] }
 0x4e3   : > { %v3684_v37 = vpop.f32.mrb[30].mxu0  ;;  %5675 = vmatprep.mubr.msk.bf16.mxu1 %vm5991_vm0, %v9081_v31  ;;  %v9296_v59 = vmax.f32 %v9295_v14, 0.0 }
 0x4e4   : > { %v3372_v17 = vpack.c.bf16 %v3277_v30, %v3276_v0  ;;  %4165 = vst.msk [vmem:[%s8132_s25 + $0x68] sm:$0xff] %vm4151_vm3, %v3684_v37  ;;  %v5722_v6 = vpop.f32.mrb[31].mxu0 }
 0x4e5   : > { %v2964_v51 = vpop.f32.mrb[140].mxu1 }
 0x4e6   : > { %v2965_v26 = vadd.f32 %v7773_v50, %v2964_v51  ;;  %v5569_v47 = vpop.f32.mrb[141].mxu1  ;;  %5828 = vmatmul.mubr.msk.bf16.gmra.mrb[136].mxu0 %vm1482_vm2, %v3372_v17 }
 0x4e7   : > { %v2967_v22 = vpop.f32.mrb[142].mxu1  ;;  %5831 = vmatprep.mubr.msk.bf16.mxu0 %vm5991_vm0, %v9081_v31 }
 0x4e8   : > { %v2968_v34 = vadd.f32 %v7773_v50, %v2967_v22  ;;  %v5570_v5 = vpop.f32.mrb[143].mxu1  ;;  %v3278_v13 = vmul.f32 %v2965_v26, %v9286_v39  ;;  %v9297_v26 = vld [vmem:[#allocation64_spill] sm:$0xff] }
 0x4e9   : > { %v3689_v49 = vpop.f32.mrb[32].mxu0  ;;  %v9298_v47 = vmax.f32 %v9297_v26, 0.0 }
 0x4ea   : > { %v3279_v4 = vmul.f32 %v2968_v34, %v9288_v23  ;;  %4166 = vst.msk [vmem:[%s8132_s25 + $0x70] sm:$0xff] %vm4151_vm3, %v3689_v49  ;;  %5676 = vmatmul.mubr.msk.bf16.gmra.mrb[248].mxu1 %vm517_vm1, %v7752_v15  ;;  %v5725_v43 = vpop.f32.mrb[33].mxu0  ;;  %v9299_v34 = vld [vmem:[#allocation65_spill] sm:$0xff] }
 0x4eb   : > { %v3692_v8 = vpop.f32.mrb[34].mxu0  ;;  %5679 = vmatprep.mubr.msk.bf16.mxu1 %vm5991_vm0, %v9081_v31  ;;  %v9300_v5 = vmax.f32 %v9299_v34, 0.0 }
 0x4ec   : > { %v3373_v28 = vpack.c.bf16 %v3279_v4, %v3278_v13  ;;  %4167 = vst.msk [vmem:[%s8132_s25 + $0x78] sm:$0xff] %vm4151_vm3, %v3692_v8  ;;  %v5726_v19 = vpop.f32.mrb[35].mxu0 }
 0x4ed   : > { %v2972_v25 = vpop.f32.mrb[144].mxu1 }
 0x4ee   : > { %v2973_v42 = vadd.f32 %v7773_v50, %v2972_v25  ;;  %v5573_v46 = vpop.f32.mrb[145].mxu1  ;;  %5832 = vmatmul.mubr.msk.bf16.gmra.mrb[140].mxu0 %vm1482_vm2, %v3373_v28 }
 0x4ef   : > { %v2975_v1 = vpop.f32.mrb[146].mxu1  ;;  %5835 = vmatprep.mubr.msk.bf16.mxu0 %vm5991_vm0, %v9081_v31 }
 0x4f0   : > { %v2976_v15 = vadd.f32 %v7773_v50, %v2975_v1  ;;  %v5574_v62 = vpop.f32.mrb[147].mxu1  ;;  %v3280_v58 = vmul.f32 %v2973_v42, %v9290_v40  ;;  %v9301_v42 = vld [vmem:[#allocation66_spill] sm:$0xff] }
 0x4f1   : > { %v3697_v44 = vpop.f32.mrb[36].mxu0  ;;  %v9302_v46 = vmax.f32 %v9301_v42, 0.0 }
 0x4f2   : > { %v3281_v60 = vmul.f32 %v2976_v15, %v9292_v38  ;;  %4168 = vst.msk [vmem:[%s8132_s25 + $0x80] sm:$0xff] %vm4151_vm3, %v3697_v44  ;;  %5680 = vmatmul.mubr.msk.bf16.gmra.mrb[252].mxu1 %vm517_vm1, %v7758_v11  ;;  %v5729_v61 = vpop.f32.mrb[37].mxu0  ;;  %v9303_v15 = vld [vmem:[#allocation67_spill] sm:$0xff] }
 0x4f3   : > { %v3700_v16 = vpop.f32.mrb[38].mxu0  ;;  %5683 = vmatprep.mubr.msk.bf16.mxu1 %vm5991_vm0, %v9081_v31  ;;  %v9304_v62 = vmax.f32 %v9303_v15, 0.0 }
 0x4f4   : > { %v3374_v63 = vpack.c.bf16 %v3281_v60, %v3280_v58  ;;  %4169 = vst.msk [vmem:[%s8132_s25 + $0x88] sm:$0xff] %vm4151_vm3, %v3700_v16  ;;  %v5730_v50 = vpop.f32.mrb[39].mxu0 }
 0x4f5   : > { %v2980_v20 = vpop.f32.mrb[148].mxu1 }
 0x4f6   : > { %v2981_v7 = vadd.f32 %v8288_v53, %v2980_v20  ;;  %v5577_v57 = vpop.f32.mrb[149].mxu1  ;;  %5836 = vmatmul.mubr.msk.bf16.gmra.mrb[144].mxu0 %vm1482_vm2, %v3374_v63 }
 0x4f7   : > { %v2983_v11 = vpop.f32.mrb[150].mxu1  ;;  %5839 = vmatprep.mubr.msk.bf16.mxu0 %vm5991_vm0, %v9081_v31 }
 0x4f8   : > { %v2984_v54 = vadd.f32 %v8288_v53, %v2983_v11  ;;  %v5578_v24 = vpop.f32.mrb[151].mxu1  ;;  %v3282_v3 = vmul.f32 %v2981_v7, %v9294_v55  ;;  %v9305_v7 = vld [vmem:[#allocation68_spill] sm:$0xff] }
 0x4f9   : > { %v3705_v48 = vpop.f32.mrb[40].mxu0  ;;  %v9306_v57 = vmax.f32 %v9305_v7, 0.0 }
 0x4fa   : > { %v3283_v45 = vmul.f32 %v2984_v54, %v9296_v59  ;;  %4170 = vst.msk [vmem:[%s8132_s25 + $0x90] sm:$0xff] %vm4151_vm3, %v3705_v48  ;;  %5684 = vmatmul.mubr.msk.bf16.gmra.mrb[0].mxu1 %vm517_vm1, %v7764_v41  ;;  %v5733_v36 = vpop.f32.mrb[41].mxu0  ;;  %v2423_v41 = vpack.c.bf16 %v2358_v2, %v2358_v2 }
 0x4fb   : > { %v3708_v33 = vpop.f32.mrb[42].mxu0  ;;  %5687 = vmatprep.mubr.msk.bf16.mxu1 %vm5991_vm0, %v9081_v31 }
 0x4fc   : > { %v3375_v0 = vpack.c.bf16 %v3283_v45, %v3282_v3  ;;  %4171 = vst.msk [vmem:[%s8132_s25 + $0x98] sm:$0xff] %vm4151_vm3, %v3708_v33  ;;  %v5734_v27 = vpop.f32.mrb[43].mxu0 }
 0x4fd   : > { %v2988_v21 = vpop.f32.mrb[152].mxu1 }
 0x4fe   : > { %v2989_v30 = vadd.f32 %v8288_v53, %v2988_v21  ;;  %v5581_v32 = vpop.f32.mrb[153].mxu1  ;;  %5840 = vmatmul.mubr.msk.bf16.gmra.mrb[148].mxu0 %vm1482_vm2, %v3375_v0  ;;  %v9309_v0 = vld [vmem:[#allocation70_spill] sm:$0xff] }
 0x4ff   : > { %v2991_v37 = vpop.f32.mrb[154].mxu1  ;;  %5843 = vmatprep.mubr.msk.bf16.mxu0 %vm5991_vm0, %v9081_v31  ;;  %v9310_v27 = vmax.f32 %v9309_v0, 0.0 }
 0x500   : > { %v2992_v17 = vadd.f32 %v8288_v53, %v2991_v37  ;;  %v5582_v6 = vpop.f32.mrb[155].mxu1  ;;  %v3284_v22 = vmul.f32 %v2989_v30, %v9298_v47  ;;  %v9311_v30 = vld [vmem:[#allocation71_spill] sm:$0xff] }
 0x501   : > { %v3713_v51 = vpop.f32.mrb[44].mxu0  ;;  %v9312_v32 = vmax.f32 %v9311_v30, 0.0 }
 0x502   : > { %v3285_v49 = vmul.f32 %v2992_v17, %v9300_v5  ;;  %4172 = vst.msk [vmem:[%s8132_s25 + $0xa0] sm:$0xff] %vm4151_vm3, %v3713_v51  ;;  %5688 = vmatmul.mubr.msk.bf16.gmra.mrb[4].mxu1 %vm517_vm1, %v2423_v41  ;;  %v5737_v18 = vpop.f32.mrb[45].mxu0 }
 0x503   : > { %v3716_v39 = vpop.f32.mrb[46].mxu0 }
 0x504   : > { %v3376_v13 = vpack.c.bf16 %v3285_v49, %v3284_v22  ;;  %4173 = vst.msk [vmem:[%s8132_s25 + $0xa8] sm:$0xff] %vm4151_vm3, %v3716_v39  ;;  %v5738_v9 = vpop.f32.mrb[47].mxu0  ;;  %v9313_v39 = vld [vmem:[#allocation72_spill] sm:$0xff] }
 0x505   : > { %v2996_v23 = vpop.f32.mrb[156].mxu1 }
 0x506   : > { %v2997_v4 = vadd.f32 %v8288_v53, %v2996_v23  ;;  %v5585_v43 = vpop.f32.mrb[157].mxu1  ;;  %5844 = vmatmul.mubr.msk.bf16.gmra.mrb[152].mxu0 %vm1482_vm2, %v3376_v13  ;;  %v9314_v13 = vmax.f32 %v9313_v39, 0.0  ;;  %v9315_v23 = vld [vmem:[#allocation73_spill] sm:$0xff] }
 0x507   : > { %v2999_v8 = vpop.f32.mrb[158].mxu1  ;;  %5847 = vmatprep.mubr.msk.bf16.mxu0 %vm5991_vm0, %v9081_v31 }
 0x508   : > { %v3000_v28 = vadd.f32 %v8288_v53, %v2999_v8  ;;  %v5586_v19 = vpop.f32.mrb[159].mxu1  ;;  %v3286_v1 = vmul.f32 %v2997_v4, %v9302_v46  ;;  %v9316_v4 = vmax.f32 %v9315_v23, 0.0 }
 0x509   : > { %v3721_v25 = vpop.f32.mrb[48].mxu0 }
 0x50a   : > { %v3287_v44 = vmul.f32 %v3000_v28, %v9304_v62  ;;  %4174 = vst.msk [vmem:[%s8132_s25 + $0xb0] sm:$0xff] %vm4151_vm3, %v3721_v25  ;;  %v5741_v56 = vpop.f32.mrb[49].mxu0 }
 0x50b   : > { %v3724_v40 = vpop.f32.mrb[50].mxu0 }
 0x50c   : > { %v3377_v58 = vpack.c.bf16 %v3287_v44, %v3286_v1  ;;  %4175 = vst.msk [vmem:[%s8132_s25 + $0xb8] sm:$0xff] %vm4151_vm3, %v3724_v40  ;;  %v5742_v35 = vpop.f32.mrb[51].mxu0  ;;  %v9317_v40 = vld [vmem:[#allocation74_spill] sm:$0xff] }
 0x50d   : > { %v3004_v38 = vpop.f32.mrb[160].mxu1 }
 0x50e   : > { %v3005_v60 = vadd.f32 %v8288_v53, %v3004_v38  ;;  %v5589_v61 = vpop.f32.mrb[161].mxu1  ;;  %5848 = vmatmul.mubr.msk.bf16.gmra.mrb[156].mxu0 %vm1482_vm2, %v3377_v58  ;;  %v9318_v58 = vmax.f32 %v9317_v40, 0.0  ;;  %v9319_v38 = vld [vmem:[#allocation75_spill] sm:$0xff] }
 0x50f   : > { %v3007_v16 = vpop.f32.mrb[162].mxu1  ;;  %5851 = vmatprep.mubr.msk.bf16.mxu0 %vm5991_vm0, %v9081_v31 }
 0x510   : > { %v3008_v63 = vadd.f32 %v8288_v53, %v3007_v16  ;;  %v5590_v50 = vpop.f32.mrb[163].mxu1  ;;  %v3288_v11 = vmul.f32 %v3005_v60, %v9306_v57  ;;  %v9320_v60 = vmax.f32 %v9319_v38, 0.0 }
 0x511   : > { %v3729_v20 = vpop.f32.mrb[52].mxu0 }
 0x512   : > { %v3289_v54 = vmul.f32 %v3008_v63, %v9308_v12  ;;  %4176 = vst.msk [vmem:[%s8132_s25 + $0xc0] sm:$0xff] %vm4151_vm3, %v3729_v20  ;;  %v5745_v24 = vpop.f32.mrb[53].mxu0 }
 0x513   : > { %v3732_v48 = vpop.f32.mrb[54].mxu0 }
 0x514   : > { %v3378_v29 = vpack.c.bf16 %v3289_v54, %v3288_v11  ;;  %4177 = vst.msk [vmem:[%s8132_s25 + $0xc8] sm:$0xff] %vm4151_vm3, %v3732_v48  ;;  %v5746_v55 = vpop.f32.mrb[55].mxu0  ;;  %v9321_v48 = vld [vmem:[#allocation76_spill] sm:$0xff] }
 0x515   : > { %v3012_v3 = vpop.f32.mrb[164].mxu1 }
 0x516   : > { %v3013_v14 = vadd.f32 %v8288_v53, %v3012_v3  ;;  %v5593_v59 = vpop.f32.mrb[165].mxu1  ;;  %5852 = vmatmul.mubr.msk.bf16.gmra.mrb[160].mxu0 %vm1482_vm2, %v3378_v29  ;;  %v9322_v29 = vmax.f32 %v9321_v48, 0.0  ;;  %v9323_v3 = vld [vmem:[#allocation77_spill] sm:$0xff] }
 0x517   : > { %v3015_v45 = vpop.f32.mrb[166].mxu1  ;;  %5855 = vmatprep.mubr.msk.bf16.mxu0 %vm5991_vm0, %v9081_v31 }
 0x518   : > { %v3016_v36 = vadd.f32 %v8288_v53, %v3015_v45  ;;  %v5594_v33 = vpop.f32.mrb[167].mxu1  ;;  %v3290_v21 = vmul.f32 %v3013_v14, %v9310_v27  ;;  %v9324_v14 = vmax.f32 %v9323_v3, 0.0 }
 0x519   : > { %v3737_v2 = vpop.f32.mrb[56].mxu0 }
 0x51a   : > { %v3291_v37 = vmul.f32 %v3016_v36, %v9312_v32  ;;  %4178 = vst.msk [vmem:[%s8132_s25 + $0xd0] sm:$0xff] %vm4151_vm3, %v3737_v2  ;;  %v5749_v41 = vpop.f32.mrb[57].mxu0 }
 0x51b   : > { %v3740_v17 = vpop.f32.mrb[58].mxu0 }
 0x51c   : > { %v3379_v6 = vpack.c.bf16 %v3291_v37, %v3290_v21  ;;  %4179 = vst.msk [vmem:[%s8132_s25 + $0xd8] sm:$0xff] %vm4151_vm3, %v3740_v17  ;;  %v5750_v51 = vpop.f32.mrb[59].mxu0  ;;  %v9325_v17 = vld [vmem:[#allocation78_spill] sm:$0xff] }
 0x51d   : > { %v3020_v26 = vpop.f32.mrb[168].mxu1 }
 0x51e   : > { %v3021_v47 = vadd.f32 %v8288_v53, %v3020_v26  ;;  %v5597_v22 = vpop.f32.mrb[169].mxu1  ;;  %5856 = vmatmul.mubr.msk.bf16.gmra.mrb[164].mxu0 %vm1482_vm2, %v3379_v6  ;;  %v9326_v6 = vmax.f32 %v9325_v17, 0.0  ;;  %v9327_v26 = vld [vmem:[#allocation79_spill] sm:$0xff] }
 0x51f   : > { %v3023_v34 = vpop.f32.mrb[170].mxu1  ;;  %5859 = vmatprep.mubr.msk.bf16.mxu0 %vm5991_vm0, %v9081_v31 }
 0x520   : > { %v3024_v5 = vadd.f32 %v8288_v53, %v3023_v34  ;;  %v5598_v49 = vpop.f32.mrb[171].mxu1  ;;  %v3292_v9 = vmul.f32 %v3021_v47, %v9314_v13  ;;  %v9328_v47 = vmax.f32 %v9327_v26, 0.0 }
 0x521   : > { %v3745_v18 = vpop.f32.mrb[60].mxu0 }
 0x522   : > { %v3293_v43 = vmul.f32 %v3024_v5, %v9316_v4  ;;  %4180 = vst.msk [vmem:[%s8132_s25 + $0xe0] sm:$0xff] %vm4151_vm3, %v3745_v18  ;;  %v5753_v8 = vpop.f32.mrb[61].mxu0 }
 0x523   : > { %v3748_v28 = vpop.f32.mrb[62].mxu0 }
 0x524   : > { %v3380_v19 = vpack.c.bf16 %v3293_v43, %v3292_v9  ;;  %4181 = vst.msk [vmem:[%s8132_s25 + $0xe8] sm:$0xff] %vm4151_vm3, %v3748_v28  ;;  %v5754_v25 = vpop.f32.mrb[63].mxu0  ;;  %v9329_v28 = vld [vmem:[#allocation80_spill] sm:$0xff] }
 0x525   : > { %v3028_v42 = vpop.f32.mrb[172].mxu1 }
 0x526   : > { %v3029_v46 = vadd.f32 %v8288_v53, %v3028_v42  ;;  %v5601_v1 = vpop.f32.mrb[173].mxu1  ;;  %5860 = vmatmul.mubr.msk.bf16.gmra.mrb[168].mxu0 %vm1482_vm2, %v3380_v19  ;;  %v9330_v19 = vmax.f32 %v9329_v28, 0.0  ;;  %v9331_v42 = vld [vmem:[#allocation81_spill] sm:$0xff] }
 0x527   : > { %v3031_v15 = vpop.f32.mrb[174].mxu1  ;;  %5863 = vmatprep.mubr.msk.bf16.mxu0 %vm5991_vm0, %v9081_v31 }
 0x528   : > { %v3032_v62 = vadd.f32 %v8288_v53, %v3031_v15  ;;  %v5602_v44 = vpop.f32.mrb[175].mxu1  ;;  %v3294_v35 = vmul.f32 %v3029_v46, %v9318_v58  ;;  %v9332_v46 = vmax.f32 %v9331_v42, 0.0 }
 0x529   : > { %v3753_v56 = vpop.f32.mrb[64].mxu0 }
 0x52a   : > { %v3295_v61 = vmul.f32 %v3032_v62, %v9320_v60  ;;  %4182 = vst.msk [vmem:[%s8132_s25 + $0xf0] sm:$0xff] %vm4151_vm3, %v3753_v56  ;;  %v5757_v16 = vpop.f32.mrb[65].mxu0 }
 0x52b   : > { %v3756_v63 = vpop.f32.mrb[66].mxu0 }
 0x52c   : > { %v3381_v50 = vpack.c.bf16 %v3295_v61, %v3294_v35  ;;  %4183 = vst.msk [vmem:[%s8132_s25 + $0xf8] sm:$0xff] %vm4151_vm3, %v3756_v63  ;;  %v5758_v20 = vpop.f32.mrb[67].mxu0  ;;  %v9333_v63 = vld [vmem:[#allocation82_spill] sm:$0xff] }
 0x52d   : > { %v3036_v7 = vpop.f32.mrb[176].mxu1 }
 0x52e   : > { %v3037_v57 = vadd.f32 %v8288_v53, %v3036_v7  ;;  %v5605_v11 = vpop.f32.mrb[177].mxu1  ;;  %5864 = vmatmul.mubr.msk.bf16.gmra.mrb[172].mxu0 %vm1482_vm2, %v3381_v50  ;;  %v9334_v50 = vmax.f32 %v9333_v63, 0.0  ;;  %v9335_v7 = vld [vmem:[#allocation83_spill] sm:$0xff] }
 0x52f   : > { %v3039_v10 = vpop.f32.mrb[178].mxu1  ;;  %5867 = vmatprep.mubr.msk.bf16.mxu0 %vm5991_vm0, %v9081_v31 }
 0x530   : > { %v3040_v12 = vadd.f32 %v8288_v53, %v3039_v10  ;;  %v5606_v54 = vpop.f32.mrb[179].mxu1  ;;  %v3296_v55 = vmul.f32 %v3037_v57, %v9322_v29  ;;  %v9336_v57 = vmax.f32 %v9335_v7, 0.0 }
 0x531   : > { %v3761_v24 = vpop.f32.mrb[68].mxu0 }
 0x532   : > { %v3297_v59 = vmul.f32 %v3040_v12, %v9324_v14  ;;  %4184 = vst.msk [vmem:[%s8132_s25 + $0x100] sm:$0xff] %vm4151_vm3, %v3761_v24  ;;  %v5761_v45 = vpop.f32.mrb[69].mxu0 }
 0x533   : > { %v3764_v36 = vpop.f32.mrb[70].mxu0 }
 0x534   : > { %v3382_v33 = vpack.c.bf16 %v3297_v59, %v3296_v55  ;;  %4185 = vst.msk [vmem:[%s8132_s25 + $0x108] sm:$0xff] %vm4151_vm3, %v3764_v36  ;;  %v5762_v2 = vpop.f32.mrb[71].mxu0  ;;  %v9337_v36 = vld [vmem:[#allocation84_spill] sm:$0xff] }
 0x535   : > { %v3044_v0 = vpop.f32.mrb[180].mxu1 }
 0x536   : > { %v3045_v27 = vadd.f32 %v8288_v53, %v3044_v0  ;;  %v5609_v21 = vpop.f32.mrb[181].mxu1  ;;  %5868 = vmatmul.mubr.msk.bf16.gmra.mrb[176].mxu0 %vm1482_vm2, %v3382_v33  ;;  %v9338_v33 = vmax.f32 %v9337_v36, 0.0  ;;  %v9339_v0 = vld [vmem:[#allocation85_spill] sm:$0xff] }
 0x537   : > { %v3047_v30 = vpop.f32.mrb[182].mxu1  ;;  %5871 = vmatprep.mubr.msk.bf16.mxu0 %vm5991_vm0, %v9081_v31 }
 0x538   : > { %v3048_v32 = vadd.f32 %v8288_v53, %v3047_v30  ;;  %v5610_v37 = vpop.f32.mrb[183].mxu1  ;;  %v3298_v51 = vmul.f32 %v3045_v27, %v9326_v6  ;;  %v9340_v27 = vmax.f32 %v9339_v0, 0.0 }
 0x539   : > { %v3769_v41 = vpop.f32.mrb[72].mxu0 }
 0x53a   : > { %v3299_v22 = vmul.f32 %v3048_v32, %v9328_v47  ;;  %4186 = vst.msk [vmem:[%s8132_s25 + $0x110] sm:$0xff] %vm4151_vm3, %v3769_v41  ;;  %v5765_v34 = vpop.f32.mrb[73].mxu0 }
 0x53b   : > { %v3772_v5 = vpop.f32.mrb[74].mxu0 }
 0x53c   : > { %v3383_v49 = vpack.c.bf16 %v3299_v22, %v3298_v51  ;;  %4187 = vst.msk [vmem:[%s8132_s25 + $0x118] sm:$0xff] %vm4151_vm3, %v3772_v5  ;;  %v5766_v18 = vpop.f32.mrb[75].mxu0  ;;  %v9341_v5 = vld [vmem:[#allocation86_spill] sm:$0xff] }
 0x53d   : > { %v3052_v39 = vpop.f32.mrb[184].mxu1 }
 0x53e   : > { %v3053_v13 = vadd.f32 %v8288_v53, %v3052_v39  ;;  %v5613_v9 = vpop.f32.mrb[185].mxu1  ;;  %5872 = vmatmul.mubr.msk.bf16.gmra.mrb[180].mxu0 %vm1482_vm2, %v3383_v49  ;;  %v9342_v49 = vmax.f32 %v9341_v5, 0.0  ;;  %v9343_v39 = vld [vmem:[#allocation87_spill] sm:$0xff] }
 0x53f   : > { %v3055_v23 = vpop.f32.mrb[186].mxu1  ;;  %5875 = vmatprep.mubr.msk.bf16.mxu0 %vm5991_vm0, %v9081_v31 }
 0x540   : > { %v3056_v4 = vadd.f32 %v8288_v53, %v3055_v23  ;;  %v5614_v43 = vpop.f32.mrb[187].mxu1  ;;  %v3300_v25 = vmul.f32 %v3053_v13, %v9330_v19  ;;  %v9344_v13 = vmax.f32 %v9343_v39, 0.0 }
 0x541   : > { %v3777_v8 = vpop.f32.mrb[76].mxu0 }
 0x542   : > { %v3301_v1 = vmul.f32 %v3056_v4, %v9332_v46  ;;  %4188 = vst.msk [vmem:[%s8132_s25 + $0x120] sm:$0xff] %vm4151_vm3, %v3777_v8  ;;  %v5769_v15 = vpop.f32.mrb[77].mxu0 }
 0x543   : > { %v3780_v62 = vpop.f32.mrb[78].mxu0 }
 0x544   : > { %v3384_v44 = vpack.c.bf16 %v3301_v1, %v3300_v25  ;;  %4189 = vst.msk [vmem:[%s8132_s25 + $0x128] sm:$0xff] %vm4151_vm3, %v3780_v62  ;;  %v5770_v56 = vpop.f32.mrb[79].mxu0  ;;  %v9345_v62 = vld [vmem:[#allocation88_spill] sm:$0xff] }
 0x545   : > { %v3060_v40 = vpop.f32.mrb[188].mxu1 }
 0x546   : > { %v3061_v58 = vadd.f32 %v8288_v53, %v3060_v40  ;;  %v5617_v35 = vpop.f32.mrb[189].mxu1  ;;  %5876 = vmatmul.mubr.msk.bf16.gmra.mrb[184].mxu0 %vm1482_vm2, %v3384_v44  ;;  %v9346_v44 = vmax.f32 %v9345_v62, 0.0  ;;  %v9347_v40 = vld [vmem:[#allocation89_spill] sm:$0xff] }
 0x547   : > { %v3063_v38 = vpop.f32.mrb[190].mxu1  ;;  %5879 = vmatprep.mubr.msk.bf16.mxu0 %vm5991_vm0, %v9081_v31 }
 0x548   : > { %v3064_v60 = vadd.f32 %v8288_v53, %v3063_v38  ;;  %v5618_v61 = vpop.f32.mrb[191].mxu1  ;;  %v3302_v20 = vmul.f32 %v3061_v58, %v9334_v50  ;;  %v9348_v58 = vmax.f32 %v9347_v40, 0.0 }
 0x549   : > { %v3785_v16 = vpop.f32.mrb[80].mxu0 }
 0x54a   : > { %v3303_v11 = vmul.f32 %v3064_v60, %v9336_v57  ;;  %4190 = vst.msk [vmem:[%s8132_s25 + $0x130] sm:$0xff] %vm4151_vm3, %v3785_v16  ;;  %v5773_v10 = vpop.f32.mrb[81].mxu0 }
 0x54b   : > { %v3788_v12 = vpop.f32.mrb[82].mxu0 }
 0x54c   : > { %v3385_v54 = vpack.c.bf16 %v3303_v11, %v3302_v20  ;;  %4191 = vst.msk [vmem:[%s8132_s25 + $0x138] sm:$0xff] %vm4151_vm3, %v3788_v12  ;;  %v5774_v24 = vpop.f32.mrb[83].mxu0  ;;  %v9349_v12 = vld [vmem:[#allocation90_spill] sm:$0xff] }
 0x54d   : > { %v3068_v48 = vpop.f32.mrb[192].mxu1 }
 0x54e   : > { %v3069_v29 = vadd.f32 %v8288_v53, %v3068_v48  ;;  %v5621_v55 = vpop.f32.mrb[193].mxu1  ;;  %5880 = vmatmul.mubr.msk.bf16.gmra.mrb[188].mxu0 %vm1482_vm2, %v3385_v54  ;;  %v9350_v54 = vmax.f32 %v9349_v12, 0.0  ;;  %v9351_v48 = vld [vmem:[#allocation91_spill] sm:$0xff] }
 0x54f   : > { %v3071_v3 = vpop.f32.mrb[194].mxu1  ;;  %5883 = vmatprep.mubr.msk.bf16.mxu0 %vm5991_vm0, %v9081_v31 }
 0x550   : > { %v3072_v14 = vadd.f32 %v8288_v53, %v3071_v3  ;;  %v5622_v59 = vpop.f32.mrb[195].mxu1  ;;  %v3304_v2 = vmul.f32 %v3069_v29, %v9338_v33  ;;  %v9352_v29 = vmax.f32 %v9351_v48, 0.0 }
 0x551   : > { %v3793_v45 = vpop.f32.mrb[84].mxu0 }
 0x552   : > { %v3305_v21 = vmul.f32 %v3072_v14, %v9340_v27  ;;  %4192 = vst.msk [vmem:[%s8132_s25 + $0x140] sm:$0xff] %vm4151_vm3, %v3793_v45  ;;  %v5777_v30 = vpop.f32.mrb[85].mxu0 }
 0x553   : > { %v3796_v32 = vpop.f32.mrb[86].mxu0 }
 0x554   : > { %v3386_v37 = vpack.c.bf16 %v3305_v21, %v3304_v2  ;;  %4193 = vst.msk [vmem:[%s8132_s25 + $0x148] sm:$0xff] %vm4151_vm3, %v3796_v32  ;;  %v5778_v41 = vpop.f32.mrb[87].mxu0  ;;  %v9353_v32 = vld [vmem:[#allocation92_spill] sm:$0xff] }
 0x555   : > { %v3076_v17 = vpop.f32.mrb[196].mxu1 }
 0x556   : > { %v3077_v6 = vadd.f32 %v8288_v53, %v3076_v17  ;;  %v5625_v51 = vpop.f32.mrb[197].mxu1  ;;  %5884 = vmatmul.mubr.msk.bf16.gmra.mrb[192].mxu0 %vm1482_vm2, %v3386_v37  ;;  %v9354_v37 = vmax.f32 %v9353_v32, 0.0  ;;  %v9355_v17 = vld [vmem:[#allocation93_spill] sm:$0xff] }
 0x557   : > { %v3079_v26 = vpop.f32.mrb[198].mxu1  ;;  %5887 = vmatprep.mubr.msk.bf16.mxu0 %vm5991_vm0, %v9081_v31 }
 0x558   : > { %v3080_v47 = vadd.f32 %v8288_v53, %v3079_v26  ;;  %v5626_v22 = vpop.f32.mrb[199].mxu1  ;;  %v3306_v18 = vmul.f32 %v3077_v6, %v9342_v49  ;;  %v9356_v6 = vmax.f32 %v9355_v17, 0.0 }
 0x559   : > { %v3801_v34 = vpop.f32.mrb[88].mxu0 }
 0x55a   : > { %v3307_v9 = vmul.f32 %v3080_v47, %v9344_v13  ;;  %4194 = vst.msk [vmem:[%s8132_s25 + $0x150] sm:$0xff] %vm4151_vm3, %v3801_v34  ;;  %v5781_v23 = vpop.f32.mrb[89].mxu0 }
 0x55b   : > { %v3804_v4 = vpop.f32.mrb[90].mxu0 }
 0x55c   : > { %v3387_v43 = vpack.c.bf16 %v3307_v9, %v3306_v18  ;;  %4195 = vst.msk [vmem:[%s8132_s25 + $0x158] sm:$0xff] %vm4151_vm3, %v3804_v4  ;;  %v5782_v8 = vpop.f32.mrb[91].mxu0  ;;  %v9357_v4 = vld [vmem:[#allocation94_spill] sm:$0xff] }
 0x55d   : > { %v3084_v28 = vpop.f32.mrb[200].mxu1 }
 0x55e   : > { %v3085_v19 = vadd.f32 %v8288_v53, %v3084_v28  ;;  %v5629_v25 = vpop.f32.mrb[201].mxu1  ;;  %5888 = vmatmul.mubr.msk.bf16.gmra.mrb[196].mxu0 %vm1482_vm2, %v3387_v43  ;;  %v9358_v43 = vmax.f32 %v9357_v4, 0.0  ;;  %v9359_v28 = vld [vmem:[#allocation95_spill] sm:$0xff] }
 0x55f   : > { %v3087_v42 = vpop.f32.mrb[202].mxu1  ;;  %5891 = vmatprep.mubr.msk.bf16.mxu0 %vm5991_vm0, %v9081_v31 }
 0x560   : > { %v3088_v46 = vadd.f32 %v8288_v53, %v3087_v42  ;;  %v5630_v1 = vpop.f32.mrb[203].mxu1  ;;  %v3308_v56 = vmul.f32 %v3085_v19, %v9346_v44  ;;  %v9360_v19 = vmax.f32 %v9359_v28, 0.0 }
 0x561   : > { %v3809_v15 = vpop.f32.mrb[92].mxu0 }
 0x562   : > { %v3309_v35 = vmul.f32 %v3088_v46, %v9348_v58  ;;  %4196 = vst.msk [vmem:[%s8132_s25 + $0x160] sm:$0xff] %vm4151_vm3, %v3809_v15  ;;  %v5785_v38 = vpop.f32.mrb[93].mxu0 }
 0x563   : > { %v3812_v60 = vpop.f32.mrb[94].mxu0 }
 0x564   : > { %v3388_v61 = vpack.c.bf16 %v3309_v35, %v3308_v56  ;;  %4197 = vst.msk [vmem:[%s8132_s25 + $0x168] sm:$0xff] %vm4151_vm3, %v3812_v60  ;;  %v5786_v16 = vpop.f32.mrb[95].mxu0  ;;  %v9361_v60 = vld [vmem:[#allocation96_spill] sm:$0xff] }
 0x565   : > { %v3092_v63 = vpop.f32.mrb[204].mxu1 }
 0x566   : > { %v3093_v50 = vadd.f32 %v8288_v53, %v3092_v63  ;;  %v5633_v20 = vpop.f32.mrb[205].mxu1  ;;  %5892 = vmatmul.mubr.msk.bf16.gmra.mrb[200].mxu0 %vm1482_vm2, %v3388_v61  ;;  %v9362_v61 = vmax.f32 %v9361_v60, 0.0  ;;  %v9363_v63 = vld [vmem:[#allocation97_spill] sm:$0xff] }
 0x567   : > { %v3095_v7 = vpop.f32.mrb[206].mxu1  ;;  %5895 = vmatprep.mubr.msk.bf16.mxu0 %vm5991_vm0, %v9081_v31 }
 0x568   : > { %v3096_v57 = vadd.f32 %v8288_v53, %v3095_v7  ;;  %v5634_v11 = vpop.f32.mrb[207].mxu1  ;;  %v3310_v24 = vmul.f32 %v3093_v50, %v9350_v54  ;;  %v9364_v50 = vmax.f32 %v9363_v63, 0.0 }
 0x569   : > { %v3817_v10 = vpop.f32.mrb[96].mxu0 }
 0x56a   : > { %v3311_v55 = vmul.f32 %v3096_v57, %v9352_v29  ;;  %4198 = vst.msk [vmem:[%s8132_s25 + $0x170] sm:$0xff] %vm4151_vm3, %v3817_v10  ;;  %v5789_v3 = vpop.f32.mrb[97].mxu0 }
 0x56b   : > { %v3820_v14 = vpop.f32.mrb[98].mxu0 }
 0x56c   : > { %v3389_v59 = vpack.c.bf16 %v3311_v55, %v3310_v24  ;;  %4199 = vst.msk [vmem:[%s8132_s25 + $0x178] sm:$0xff] %vm4151_vm3, %v3820_v14  ;;  %v5790_v45 = vpop.f32.mrb[99].mxu0  ;;  %v9365_v14 = vld [vmem:[#allocation98_spill] sm:$0xff] }
 0x56d   : > { %v3100_v36 = vpop.f32.mrb[208].mxu1 }
 0x56e   : > { %v3101_v33 = vadd.f32 %v8288_v53, %v3100_v36  ;;  %v5637_v2 = vpop.f32.mrb[209].mxu1  ;;  %5896 = vmatmul.mubr.msk.bf16.gmra.mrb[204].mxu0 %vm1482_vm2, %v3389_v59  ;;  %v9366_v59 = vmax.f32 %v9365_v14, 0.0  ;;  %v9367_v36 = vld [vmem:[#allocation99_spill] sm:$0xff] }
 0x56f   : > { %v3103_v0 = vpop.f32.mrb[210].mxu1  ;;  %5899 = vmatprep.mubr.msk.bf16.mxu0 %vm5991_vm0, %v9081_v31 }
 0x570   : > { %v3104_v27 = vadd.f32 %v8288_v53, %v3103_v0  ;;  %v5638_v21 = vpop.f32.mrb[211].mxu1  ;;  %v3312_v41 = vmul.f32 %v3101_v33, %v9354_v37  ;;  %v9368_v33 = vmax.f32 %v9367_v36, 0.0 }
 0x571   : > { %v3825_v30 = vpop.f32.mrb[100].mxu0 }
 0x572   : > { %v3313_v51 = vmul.f32 %v3104_v27, %v9356_v6  ;;  %4200 = vst.msk [vmem:[%s8132_s25 + $0x180] sm:$0xff] %vm4151_vm3, %v3825_v30  ;;  %v5793_v26 = vpop.f32.mrb[101].mxu0 }
 0x573   : > { %v3828_v47 = vpop.f32.mrb[102].mxu0 }
 0x574   : > { %v3390_v22 = vpack.c.bf16 %v3313_v51, %v3312_v41  ;;  %4201 = vst.msk [vmem:[%s8132_s25 + $0x188] sm:$0xff] %vm4151_vm3, %v3828_v47  ;;  %v5794_v34 = vpop.f32.mrb[103].mxu0  ;;  %v9369_v47 = vld [vmem:[#allocation100_spill] sm:$0xff] }
 0x575   : > { %v3108_v5 = vpop.f32.mrb[212].mxu1 }
 0x576   : > { %v3109_v49 = vadd.f32 %v8288_v53, %v3108_v5  ;;  %v5641_v18 = vpop.f32.mrb[213].mxu1  ;;  %5900 = vmatmul.mubr.msk.bf16.gmra.mrb[208].mxu0 %vm1482_vm2, %v3390_v22  ;;  %v9370_v22 = vmax.f32 %v9369_v47, 0.0  ;;  %v9371_v5 = vld [vmem:[#allocation101_spill] sm:$0xff] }
 0x577   : > { %v3111_v39 = vpop.f32.mrb[214].mxu1  ;;  %5903 = vmatprep.mubr.msk.bf16.mxu0 %vm5991_vm0, %v9081_v31 }
 0x578   : > { %v3112_v13 = vadd.f32 %v8288_v53, %v3111_v39  ;;  %v5642_v9 = vpop.f32.mrb[215].mxu1  ;;  %v3314_v8 = vmul.f32 %v3109_v49, %v9358_v43  ;;  %v9372_v49 = vmax.f32 %v9371_v5, 0.0 }
 0x579   : > { %v3833_v23 = vpop.f32.mrb[104].mxu0 }
 0x57a   : > { %v3315_v25 = vmul.f32 %v3112_v13, %v9360_v19  ;;  %4202 = vst.msk [vmem:[%s8132_s25 + $0x190] sm:$0xff] %vm4151_vm3, %v3833_v23  ;;  %v5797_v42 = vpop.f32.mrb[105].mxu0 }
 0x57b   : > { %v3836_v46 = vpop.f32.mrb[106].mxu0 }
 0x57c   : > { %v3391_v1 = vpack.c.bf16 %v3315_v25, %v3314_v8  ;;  %4203 = vst.msk [vmem:[%s8132_s25 + $0x198] sm:$0xff] %vm4151_vm3, %v3836_v46  ;;  %v5798_v15 = vpop.f32.mrb[107].mxu0  ;;  %v9373_v46 = vld [vmem:[#allocation102_spill] sm:$0xff] }
 0x57d   : > { %v3116_v62 = vpop.f32.mrb[216].mxu1 }
 0x57e   : > { %v3117_v44 = vadd.f32 %v8288_v53, %v3116_v62  ;;  %v5645_v56 = vpop.f32.mrb[217].mxu1  ;;  %5904 = vmatmul.mubr.msk.bf16.gmra.mrb[212].mxu0 %vm1482_vm2, %v3391_v1  ;;  %v9374_v1 = vmax.f32 %v9373_v46, 0.0  ;;  %v9375_v62 = vld [vmem:[#allocation103_spill] sm:$0xff] }
 0x57f   : > { %v3119_v40 = vpop.f32.mrb[218].mxu1  ;;  %5907 = vmatprep.mubr.msk.bf16.mxu0 %vm5991_vm0, %v9081_v31 }
 0x580   : > { %v3120_v58 = vadd.f32 %v8288_v53, %v3119_v40  ;;  %v5646_v35 = vpop.f32.mrb[219].mxu1  ;;  %v3316_v16 = vmul.f32 %v3117_v44, %v9362_v61  ;;  %v9376_v44 = vmax.f32 %v9375_v62, 0.0 }
 0x581   : > { %v3841_v38 = vpop.f32.mrb[108].mxu0 }
 0x582   : > { %v3317_v20 = vmul.f32 %v3120_v58, %v9364_v50  ;;  %4204 = vst.msk [vmem:[%s8132_s25 + $0x1a0] sm:$0xff] %vm4151_vm3, %v3841_v38  ;;  %v5801_v7 = vpop.f32.mrb[109].mxu0 }
 0x583   : > { %v3844_v57 = vpop.f32.mrb[110].mxu0 }
 0x584   : > { %v3392_v11 = vpack.c.bf16 %v3317_v20, %v3316_v16  ;;  %4205 = vst.msk [vmem:[%s8132_s25 + $0x1a8] sm:$0xff] %vm4151_vm3, %v3844_v57  ;;  %v5802_v10 = vpop.f32.mrb[111].mxu0  ;;  %v9377_v57 = vld [vmem:[#allocation104_spill] sm:$0xff] }
 0x585   : > { %v3124_v12 = vpop.f32.mrb[220].mxu1 }
 0x586   : > { %v3125_v54 = vadd.f32 %v8288_v53, %v3124_v12  ;;  %v5649_v24 = vpop.f32.mrb[221].mxu1  ;;  %5908 = vmatmul.mubr.msk.bf16.gmra.mrb[216].mxu0 %vm1482_vm2, %v3392_v11  ;;  %v9378_v11 = vmax.f32 %v9377_v57, 0.0  ;;  %v9379_v12 = vld [vmem:[#allocation105_spill] sm:$0xff] }
 0x587   : > { %v3127_v48 = vpop.f32.mrb[222].mxu1  ;;  %5911 = vmatprep.mubr.msk.bf16.mxu0 %vm5991_vm0, %v9081_v31 }
 0x588   : > { %v3128_v29 = vadd.f32 %v8288_v53, %v3127_v48  ;;  %v5650_v55 = vpop.f32.mrb[223].mxu1  ;;  %v3318_v45 = vmul.f32 %v3125_v54, %v9366_v59  ;;  %v9380_v54 = vmax.f32 %v9379_v12, 0.0 }
 0x589   : > { %v3849_v3 = vpop.f32.mrb[112].mxu0 }
 0x58a   : > { %v3319_v2 = vmul.f32 %v3128_v29, %v9368_v33  ;;  %4206 = vst.msk [vmem:[%s8132_s25 + $0x1b0] sm:$0xff] %vm4151_vm3, %v3849_v3  ;;  %v5805_v0 = vpop.f32.mrb[113].mxu0 }
 0x58b   : > { %v3852_v27 = vpop.f32.mrb[114].mxu0 }
 0x58c   : > { %v3393_v21 = vpack.c.bf16 %v3319_v2, %v3318_v45  ;;  %4207 = vst.msk [vmem:[%s8132_s25 + $0x1b8] sm:$0xff] %vm4151_vm3, %v3852_v27  ;;  %v5806_v30 = vpop.f32.mrb[115].mxu0  ;;  %v9381_v27 = vld [vmem:[#allocation106_spill] sm:$0xff] }
 0x58d   : > { %v3132_v32 = vpop.f32.mrb[224].mxu1 }
 0x58e   : > { %v3133_v37 = vadd.f32 %v8288_v53, %v3132_v32  ;;  %v5653_v41 = vpop.f32.mrb[225].mxu1  ;;  %5912 = vmatmul.mubr.msk.bf16.gmra.mrb[220].mxu0 %vm1482_vm2, %v3393_v21  ;;  %v9382_v21 = vmax.f32 %v9381_v27, 0.0  ;;  %v9383_v32 = vld [vmem:[#allocation107_spill] sm:$0xff] }
 0x58f   : > { %v3135_v17 = vpop.f32.mrb[226].mxu1  ;;  %5915 = vmatprep.mubr.msk.bf16.mxu0 %vm5991_vm0, %v9081_v31 }
 0x590   : > { %v3136_v6 = vadd.f32 %v8288_v53, %v3135_v17  ;;  %v5654_v51 = vpop.f32.mrb[227].mxu1  ;;  %v3320_v34 = vmul.f32 %v3133_v37, %v9370_v22  ;;  %v9384_v37 = vmax.f32 %v9383_v32, 0.0 }
 0x591   : > { %v3857_v26 = vpop.f32.mrb[116].mxu0 }
 0x592   : > { %v3321_v18 = vmul.f32 %v3136_v6, %v9372_v49  ;;  %4208 = vst.msk [vmem:[%s8132_s25 + $0x1c0] sm:$0xff] %vm4151_vm3, %v3857_v26  ;;  %v5809_v39 = vpop.f32.mrb[117].mxu0 }
 0x593   : > { %v3860_v13 = vpop.f32.mrb[118].mxu0 }
 0x594   : > { %v3394_v9 = vpack.c.bf16 %v3321_v18, %v3320_v34  ;;  %4209 = vst.msk [vmem:[%s8132_s25 + $0x1c8] sm:$0xff] %vm4151_vm3, %v3860_v13  ;;  %v5810_v23 = vpop.f32.mrb[119].mxu0  ;;  %v9385_v13 = vld [vmem:[#allocation108_spill] sm:$0xff] }
 0x595   : > { %v3140_v4 = vpop.f32.mrb[228].mxu1 }
 0x596   : > { %v3141_v43 = vadd.f32 %v8288_v53, %v3140_v4  ;;  %v5657_v8 = vpop.f32.mrb[229].mxu1  ;;  %5916 = vmatmul.mubr.msk.bf16.gmra.mrb[224].mxu0 %vm1482_vm2, %v3394_v9  ;;  %v9386_v9 = vmax.f32 %v9385_v13, 0.0  ;;  %v9387_v4 = vld [vmem:[#allocation109_spill] sm:$0xff] }
 0x597   : > { %v3143_v28 = vpop.f32.mrb[230].mxu1  ;;  %5919 = vmatprep.mubr.msk.bf16.mxu0 %vm5991_vm0, %v9081_v31 }
 0x598   : > { %v3144_v19 = vadd.f32 %v8288_v53, %v3143_v28  ;;  %v5658_v25 = vpop.f32.mrb[231].mxu1  ;;  %v3322_v15 = vmul.f32 %v3141_v43, %v9374_v1  ;;  %v9388_v43 = vmax.f32 %v9387_v4, 0.0 }
 0x599   : > { %v3865_v42 = vpop.f32.mrb[120].mxu0 }
 0x59a   : > { %v3323_v56 = vmul.f32 %v3144_v19, %v9376_v44  ;;  %4210 = vst.msk [vmem:[%s8132_s25 + $0x1d0] sm:$0xff] %vm4151_vm3, %v3865_v42  ;;  %v5813_v40 = vpop.f32.mrb[121].mxu0 }
 0x59b   : > { %v3868_v58 = vpop.f32.mrb[122].mxu0 }
 0x59c   : > { %v3395_v35 = vpack.c.bf16 %v3323_v56, %v3322_v15  ;;  %4211 = vst.msk [vmem:[%s8132_s25 + $0x1d8] sm:$0xff] %vm4151_vm3, %v3868_v58  ;;  %v5814_v38 = vpop.f32.mrb[123].mxu0  ;;  %v9389_v58 = vld [vmem:[#allocation110_spill] sm:$0xff] }
 0x59d   : > { %v3148_v60 = vpop.f32.mrb[232].mxu1 }
 0x59e   : > { %v3149_v61 = vadd.f32 %v8288_v53, %v3148_v60  ;;  %v5661_v16 = vpop.f32.mrb[233].mxu1  ;;  %5920 = vmatmul.mubr.msk.bf16.gmra.mrb[228].mxu0 %vm1482_vm2, %v3395_v35  ;;  %v9390_v35 = vmax.f32 %v9389_v58, 0.0  ;;  %v9391_v60 = vld [vmem:[#allocation112_spill] sm:$0xff] }
 0x59f   : > { %v3151_v63 = vpop.f32.mrb[234].mxu1  ;;  %5923 = vmatprep.mubr.msk.bf16.mxu0 %vm5991_vm0, %v9081_v31 }
 0x5a0   : > { %v3152_v50 = vadd.f32 %v8288_v53, %v3151_v63  ;;  %v5662_v20 = vpop.f32.mrb[235].mxu1  ;;  %v3324_v10 = vmul.f32 %v3149_v61, %v9378_v11  ;;  %v9392_v61 = vmax.f32 %v9391_v60, 0.0 }
 0x5a1   : > { %v3873_v7 = vpop.f32.mrb[124].mxu0 }
 0x5a2   : > { %v3325_v24 = vmul.f32 %v3152_v50, %v9380_v54  ;;  %4212 = vst.msk [vmem:[%s8132_s25 + $0x1e0] sm:$0xff] %vm4151_vm3, %v3873_v7  ;;  %v5817_v48 = vpop.f32.mrb[125].mxu0 }
 0x5a3   : > { %v3876_v29 = vpop.f32.mrb[126].mxu0 }
 0x5a4   : > { %v3396_v55 = vpack.c.bf16 %v3325_v24, %v3324_v10  ;;  %4213 = vst.msk [vmem:[%s8132_s25 + $0x1e8] sm:$0xff] %vm4151_vm3, %v3876_v29  ;;  %v5818_v3 = vpop.f32.mrb[127].mxu0  ;;  %v9393_v29 = vld [vmem:[#allocation113_spill] sm:$0xff] }
 0x5a5   : > { %v3156_v14 = vpop.f32.mrb[236].mxu1 }
 0x5a6   : > { %v3157_v59 = vadd.f32 %v8288_v53, %v3156_v14  ;;  %v5665_v45 = vpop.f32.mrb[237].mxu1  ;;  %5924 = vmatmul.mubr.msk.bf16.gmra.mrb[232].mxu0 %vm1482_vm2, %v3396_v55  ;;  %v9394_v55 = vmax.f32 %v9393_v29, 0.0  ;;  %v9395_v14 = vld [vmem:[#allocation115_spill] sm:$0xff] }
 0x5a7   : > { %v3159_v36 = vpop.f32.mrb[238].mxu1  ;;  %5927 = vmatprep.mubr.msk.bf16.mxu0 %vm5991_vm0, %v9081_v31 }
 0x5a8   : > { %v3160_v33 = vadd.f32 %v8288_v53, %v3159_v36  ;;  %v5666_v2 = vpop.f32.mrb[239].mxu1  ;;  %v3326_v30 = vmul.f32 %v3157_v59, %v9382_v21  ;;  %v9396_v59 = vmax.f32 %v9395_v14, 0.0 }
 0x5a9   : > { %v3881_v0 = vpop.f32.mrb[128].mxu0 }
 0x5aa   : > { %v3327_v41 = vmul.f32 %v3160_v33, %v9384_v37  ;;  %4214 = vst.msk [vmem:[%s8132_s25 + $0x1f0] sm:$0xff] %vm4151_vm3, %v3881_v0  ;;  %v5821_v17 = vpop.f32.mrb[129].mxu0 }
 0x5ab   : > { %v3884_v6 = vpop.f32.mrb[130].mxu0 }
 0x5ac   : > { %v3397_v51 = vpack.c.bf16 %v3327_v41, %v3326_v30  ;;  %4215 = vst.msk [vmem:[%s8132_s25 + $0x1f8] sm:$0xff] %vm4151_vm3, %v3884_v6  ;;  %v5822_v26 = vpop.f32.mrb[131].mxu0  ;;  %v9397_v6 = vld [vmem:[#allocation116_spill] sm:$0xff] }
 0x5ad   : > { %v3164_v47 = vpop.f32.mrb[240].mxu1 }
 0x5ae   : > { %v3165_v22 = vadd.f32 %v8288_v53, %v3164_v47  ;;  %v5669_v34 = vpop.f32.mrb[241].mxu1  ;;  %5928 = vmatmul.mubr.msk.bf16.gmra.mrb[236].mxu0 %vm1482_vm2, %v3397_v51  ;;  %v9398_v51 = vmax.f32 %v9397_v6, 0.0  ;;  %v9399_v47 = vld [vmem:[#allocation118_spill] sm:$0xff] }
 0x5af   : > { %v3167_v5 = vpop.f32.mrb[242].mxu1  ;;  %5931 = vmatprep.mubr.msk.bf16.mxu0 %vm5991_vm0, %v9081_v31 }
 0x5b0   : > { %v3168_v49 = vadd.f32 %v8288_v53, %v3167_v5  ;;  %v5670_v18 = vpop.f32.mrb[243].mxu1  ;;  %v3328_v23 = vmul.f32 %v3165_v22, %v9386_v9  ;;  %v9400_v22 = vmax.f32 %v9399_v47, 0.0 }
 0x5b1   : > { %v3889_v39 = vpop.f32.mrb[132].mxu0 }
 0x5b2   : > { %v3329_v8 = vmul.f32 %v3168_v49, %v9388_v43  ;;  %4216 = vst.msk [vmem:[%s8132_s25 + $0x200] sm:$0xff] %vm4151_vm3, %v3889_v39  ;;  %v5825_v28 = vpop.f32.mrb[133].mxu0 }
 0x5b3   : > { %v3892_v19 = vpop.f32.mrb[134].mxu0 }
 0x5b4   : > { %v3398_v25 = vpack.c.bf16 %v3329_v8, %v3328_v23  ;;  %4217 = vst.msk [vmem:[%s8132_s25 + $0x208] sm:$0xff] %vm4151_vm3, %v3892_v19  ;;  %v5826_v42 = vpop.f32.mrb[135].mxu0  ;;  %v9401_v19 = vmax.f32 %v7531_v52, 0.0 }
 0x5b5   : > { %v3172_v46 = vpop.f32.mrb[244].mxu1  ;;  %v9402_v42 = vld [vmem:[#allocation120_spill] sm:$0xff] }
 0x5b6   : > { %v3173_v1 = vadd.f32 %v8288_v53, %v3172_v46  ;;  %v5673_v15 = vpop.f32.mrb[245].mxu1  ;;  %5932 = vmatmul.mubr.msk.bf16.gmra.mrb[240].mxu0 %vm1482_vm2, %v3398_v25  ;;  %v9403_v46 = vmax.f32 %v9402_v42, 0.0 }
 0x5b7   : > { %v3175_v62 = vpop.f32.mrb[246].mxu1  ;;  %5935 = vmatprep.mubr.msk.bf16.mxu0 %vm5991_vm0, %v9081_v31 }
 0x5b8   : > { %v3176_v44 = vadd.f32 %v8288_v53, %v3175_v62  ;;  %v5674_v56 = vpop.f32.mrb[247].mxu1  ;;  %v3330_v38 = vmul.f32 %v3173_v1, %v9390_v35 }
 0x5b9   : > { %v3897_v40 = vpop.f32.mrb[136].mxu0 }
 0x5ba   : > { %v3331_v16 = vmul.f32 %v3176_v44, %v9392_v61  ;;  %4218 = vst.msk [vmem:[%s8132_s25 + $0x210] sm:$0xff] %vm4151_vm3, %v3897_v40  ;;  %v5829_v63 = vpop.f32.mrb[137].mxu0 }
 0x5bb   : > { %v3900_v50 = vpop.f32.mrb[138].mxu0 }
 0x5bc   : > { %v3399_v20 = vpack.c.bf16 %v3331_v16, %v3330_v38  ;;  %4219 = vst.msk [vmem:[%s8132_s25 + $0x218] sm:$0xff] %vm4151_vm3, %v3900_v50  ;;  %v5830_v7 = vpop.f32.mrb[139].mxu0  ;;  %v9404_v38 = vld [vmem:[#allocation121_spill] sm:$0xff] }
 0x5bd   : > { %v3180_v57 = vpop.f32.mrb[248].mxu1 }
 0x5be   : > { %v3181_v11 = vadd.f32 %v8288_v53, %v3180_v57  ;;  %v5677_v10 = vpop.f32.mrb[249].mxu1  ;;  %5936 = vmatmul.mubr.msk.bf16.gmra.mrb[244].mxu0 %vm1482_vm2, %v3399_v20 }
 0x5bf   : > { %v3183_v12 = vpop.f32.mrb[250].mxu1  ;;  %5939 = vmatprep.mubr.msk.bf16.mxu0 %vm5991_vm0, %v9081_v31 }
 0x5c0   : > { %v3184_v54 = vadd.f32 %v8288_v53, %v3183_v12  ;;  %v5678_v24 = vpop.f32.mrb[251].mxu1  ;;  %v3332_v3 = vmul.f32 %v3181_v11, %v9394_v55 }
 0x5c1   : > { %v3905_v48 = vpop.f32.mrb[140].mxu0 }
 0x5c2   : > { %v3333_v45 = vmul.f32 %v3184_v54, %v9396_v59  ;;  %4220 = vst.msk [vmem:[%s8132_s25 + $0x220] sm:$0xff] %vm4151_vm3, %v3905_v48  ;;  %v5833_v36 = vpop.f32.mrb[141].mxu0 }
 0x5c3   : > { %v3908_v33 = vpop.f32.mrb[142].mxu0 }
 0x5c4   : > { %v3400_v2 = vpack.c.bf16 %v3333_v45, %v3332_v3  ;;  %4221 = vst.msk [vmem:[%s8132_s25 + $0x228] sm:$0xff] %vm4151_vm3, %v3908_v33  ;;  %v5834_v0 = vpop.f32.mrb[143].mxu0 }
 0x5c5   : > { %v3188_v27 = vpop.f32.mrb[252].mxu1 }
 0x5c6   : > { %v3189_v21 = vadd.f32 %v8288_v53, %v3188_v27  ;;  %v5681_v30 = vpop.f32.mrb[253].mxu1  ;;  %5940 = vmatmul.mubr.msk.bf16.gmra.mrb[248].mxu0 %vm1482_vm2, %v3400_v2 }
 0x5c7   : > { %v3191_v32 = vpop.f32.mrb[254].mxu1  ;;  %5943 = vmatprep.mubr.msk.bf16.mxu0 %vm5991_vm0, %v9081_v31 }
 0x5c8   : > { %v3192_v37 = vadd.f32 %v8288_v53, %v3191_v32  ;;  %v5682_v41 = vpop.f32.mrb[255].mxu1  ;;  %v3334_v26 = vmul.f32 %v3189_v21, %v9398_v51 }
 0x5c9   : > { %v3913_v17 = vpop.f32.mrb[144].mxu0 }
 0x5ca   : > { %v3335_v34 = vmul.f32 %v3192_v37, %v9400_v22  ;;  %4222 = vst.msk [vmem:[%s8132_s25 + $0x230] sm:$0xff] %vm4151_vm3, %v3913_v17  ;;  %v5837_v5 = vpop.f32.mrb[145].mxu0 }
 0x5cb   : > { %v3916_v49 = vpop.f32.mrb[146].mxu0 }
 0x5cc   : > { %v3401_v18 = vpack.c.bf16 %v3335_v34, %v3334_v26  ;;  %4223 = vst.msk [vmem:[%s8132_s25 + $0x238] sm:$0xff] %vm4151_vm3, %v3916_v49  ;;  %v5838_v39 = vpop.f32.mrb[147].mxu0 }
 0x5cd   : > { %v3196_v13 = vpop.f32.mrb[0].mxu1 }
 0x5ce   : > { %v3197_v9 = vadd.f32 %v8288_v53, %v3196_v13  ;;  %v5685_v23 = vpop.f32.mrb[1].mxu1  ;;  %5944 = vmatmul.mubr.msk.bf16.gmra.mrb[252].mxu0 %vm1482_vm2, %v3401_v18 }
 0x5cf   : > { %v3199_v4 = vpop.f32.mrb[2].mxu1  ;;  %5947 = vmatprep.mubr.msk.bf16.mxu0 %vm5991_vm0, %v9081_v31 }
 0x5d0   : > { %v3200_v43 = vadd.f32 %v8288_v53, %v3199_v4  ;;  %v5686_v8 = vpop.f32.mrb[3].mxu1  ;;  %v3336_v25 = vmul.f32 %v3197_v9, %v9401_v19 }
 0x5d1   : > { %v3921_v28 = vpop.f32.mrb[148].mxu0 }
 0x5d2   : > { %v3337_v1 = vmul.f32 %v3200_v43, %v9403_v46  ;;  %4224 = vst.msk [vmem:[%s8132_s25 + $0x240] sm:$0xff] %vm4151_vm3, %v3921_v28  ;;  %v5841_v15 = vpop.f32.mrb[149].mxu0 }
 0x5d3   : > { %v3924_v62 = vpop.f32.mrb[150].mxu0 }
 0x5d4   : > { %v3402_v44 = vpack.c.bf16 %v3337_v1, %v3336_v25  ;;  %4225 = vst.msk [vmem:[%s8132_s25 + $0x248] sm:$0xff] %vm4151_vm3, %v3924_v62  ;;  %v5842_v56 = vpop.f32.mrb[151].mxu0 }
 0x5d5   : > { %v3204_v40 = vpop.f32.mrb[4].mxu1 }
 0x5d6   : > { %v3205_v58 = vadd.f32 %v8288_v53, %v3204_v40  ;;  %v5689_v35 = vpop.f32.mrb[5].mxu1  ;;  %5948 = vmatmul.mubr.msk.bf16.gmra.mrb[0].mxu0 %vm1482_vm2, %v3402_v44 }
 0x5d7   : > { %v3207_v52 = vpop.f32.mrb[6].mxu1  ;;  %5951 = vmatprep.mubr.msk.bf16.mxu0 %vm5991_vm0, %v9081_v31 }
 0x5d8   : > { %v3338_v60 = vmul.f32 %v3205_v58, %v9404_v38  ;;  %v5690_v61 = vpop.f32.mrb[7].mxu1 }
 0x5d9   : > { %v3929_v16 = vpop.f32.mrb[152].mxu0 }
 0x5da   : > { %4226 = vst.msk [vmem:[%s8132_s25 + $0x250] sm:$0xff] %vm4151_vm3, %v3929_v16  ;;  %v5845_v63 = vpop.f32.mrb[153].mxu0  ;;  %v3403_v53 = vpack.c.bf16 %v3338_v60, %v3338_v60 }
 0x5db   : > { %v3932_v50 = vpop.f32.mrb[154].mxu0 }
 0x5dc   : > { %4227 = vst.msk [vmem:[%s8132_s25 + $0x258] sm:$0xff] %vm4151_vm3, %v3932_v50  ;;  %v5846_v20 = vpop.f32.mrb[155].mxu0 }
 0x5de   : > { %5952 = vmatmul.mubr.msk.bf16.gmra.mrb[4].mxu0 %vm1482_vm2, %v3403_v53 }
 0x5e1   : > { %v3937_v7 = vpop.f32.mrb[156].mxu0 }
 0x5e2   : > { %4228 = vst.msk [vmem:[%s8132_s25 + $0x260] sm:$0xff] %vm4151_vm3, %v3937_v7  ;;  %v5849_v31 = vpop.f32.mrb[157].mxu0 }
 0x5e3   : > { %v3940_v57 = vpop.f32.mrb[158].mxu0 }
 0x5e4   : > { %4229 = vst.msk [vmem:[%s8132_s25 + $0x268] sm:$0xff] %vm4151_vm3, %v3940_v57  ;;  %v5850_v11 = vpop.f32.mrb[159].mxu0 }
 0x5e9   : > { %v3945_v10 = vpop.f32.mrb[160].mxu0 }
 0x5ea   : > { %4230 = vst.msk [vmem:[%s8132_s25 + $0x270] sm:$0xff] %vm4151_vm3, %v3945_v10  ;;  %v5853_v12 = vpop.f32.mrb[161].mxu0 }
 0x5eb   : > { %v3948_v54 = vpop.f32.mrb[162].mxu0 }
 0x5ec   : > { %4231 = vst.msk [vmem:[%s8132_s25 + $0x278] sm:$0xff] %vm4151_vm3, %v3948_v54  ;;  %v5854_v24 = vpop.f32.mrb[163].mxu0 }
 0x5f1   : > { %v3953_v48 = vpop.f32.mrb[164].mxu0 }
 0x5f2   : > { %4232 = vst.msk [vmem:[%s8132_s25 + $0x280] sm:$0xff] %vm4151_vm3, %v3953_v48  ;;  %v5857_v29 = vpop.f32.mrb[165].mxu0 }
 0x5f3   : > { %v3956_v55 = vpop.f32.mrb[166].mxu0 }
 0x5f4   : > { %4233 = vst.msk [vmem:[%s8132_s25 + $0x288] sm:$0xff] %vm4151_vm3, %v3956_v55  ;;  %v5858_v3 = vpop.f32.mrb[167].mxu0 }
 0x5f9   : > { %v3961_v14 = vpop.f32.mrb[168].mxu0 }
 0x5fa   : > { %4234 = vst.msk [vmem:[%s8132_s25 + $0x290] sm:$0xff] %vm4151_vm3, %v3961_v14  ;;  %v5861_v59 = vpop.f32.mrb[169].mxu0 }
 0x5fb   : > { %v3964_v45 = vpop.f32.mrb[170].mxu0 }
 0x5fc   : > { %4235 = vst.msk [vmem:[%s8132_s25 + $0x298] sm:$0xff] %vm4151_vm3, %v3964_v45  ;;  %v5862_v36 = vpop.f32.mrb[171].mxu0 }
 0x601   : > { %v3969_v33 = vpop.f32.mrb[172].mxu0 }
 0x602   : > { %4236 = vst.msk [vmem:[%s8132_s25 + $0x2a0] sm:$0xff] %vm4151_vm3, %v3969_v33  ;;  %v5865_v2 = vpop.f32.mrb[173].mxu0 }
 0x603   : > { %v3972_v0 = vpop.f32.mrb[174].mxu0 }
 0x604   : > { %4237 = vst.msk [vmem:[%s8132_s25 + $0x2a8] sm:$0xff] %vm4151_vm3, %v3972_v0  ;;  %v5866_v27 = vpop.f32.mrb[175].mxu0 }
 0x609   : > { %v3977_v21 = vpop.f32.mrb[176].mxu0 }
 0x60a   : > { %4238 = vst.msk [vmem:[%s8132_s25 + $0x2b0] sm:$0xff] %vm4151_vm3, %v3977_v21  ;;  %v5869_v30 = vpop.f32.mrb[177].mxu0 }
 0x60b   : > { %v3980_v32 = vpop.f32.mrb[178].mxu0 }
 0x60c   : > { %4239 = vst.msk [vmem:[%s8132_s25 + $0x2b8] sm:$0xff] %vm4151_vm3, %v3980_v32  ;;  %v5870_v37 = vpop.f32.mrb[179].mxu0 }
 0x611   : > { %v3985_v41 = vpop.f32.mrb[180].mxu0 }
 0x612   : > { %4240 = vst.msk [vmem:[%s8132_s25 + $0x2c0] sm:$0xff] %vm4151_vm3, %v3985_v41  ;;  %v5873_v17 = vpop.f32.mrb[181].mxu0 }
 0x613   : > { %v3988_v6 = vpop.f32.mrb[182].mxu0 }
 0x614   : > { %4241 = vst.msk [vmem:[%s8132_s25 + $0x2c8] sm:$0xff] %vm4151_vm3, %v3988_v6  ;;  %v5874_v51 = vpop.f32.mrb[183].mxu0 }
 0x619   : > { %v3993_v26 = vpop.f32.mrb[184].mxu0 }
 0x61a   : > { %4242 = vst.msk [vmem:[%s8132_s25 + $0x2d0] sm:$0xff] %vm4151_vm3, %v3993_v26  ;;  %v5877_v47 = vpop.f32.mrb[185].mxu0 }
 0x61b   : > { %v3996_v22 = vpop.f32.mrb[186].mxu0 }
 0x61c   : > { %4243 = vst.msk [vmem:[%s8132_s25 + $0x2d8] sm:$0xff] %vm4151_vm3, %v3996_v22  ;;  %v5878_v34 = vpop.f32.mrb[187].mxu0 }
 0x621   : > { %v4001_v5 = vpop.f32.mrb[188].mxu0 }
 0x622   : > { %4244 = vst.msk [vmem:[%s8132_s25 + $0x2e0] sm:$0xff] %vm4151_vm3, %v4001_v5  ;;  %v5881_v49 = vpop.f32.mrb[189].mxu0 }
 0x623   : > { %v4004_v18 = vpop.f32.mrb[190].mxu0 }
 0x624   : > { %4245 = vst.msk [vmem:[%s8132_s25 + $0x2e8] sm:$0xff] %vm4151_vm3, %v4004_v18  ;;  %v5882_v39 = vpop.f32.mrb[191].mxu0 }
 0x629   : > { %v4009_v13 = vpop.f32.mrb[192].mxu0 }
 0x62a   : > { %4246 = vst.msk [vmem:[%s8132_s25 + $0x2f0] sm:$0xff] %vm4151_vm3, %v4009_v13  ;;  %v5885_v9 = vpop.f32.mrb[193].mxu0 }
 0x62b   : > { %v4012_v23 = vpop.f32.mrb[194].mxu0 }
 0x62c   : > { %4247 = vst.msk [vmem:[%s8132_s25 + $0x2f8] sm:$0xff] %vm4151_vm3, %v4012_v23  ;;  %v5886_v4 = vpop.f32.mrb[195].mxu0 }
 0x631   : > { %v4017_v43 = vpop.f32.mrb[196].mxu0 }
 0x632   : > { %4248 = vst.msk [vmem:[%s8132_s25 + $0x300] sm:$0xff] %vm4151_vm3, %v4017_v43  ;;  %v5889_v8 = vpop.f32.mrb[197].mxu0 }
 0x633   : > { %v4020_v28 = vpop.f32.mrb[198].mxu0 }
 0x634   : > { %4249 = vst.msk [vmem:[%s8132_s25 + $0x308] sm:$0xff] %vm4151_vm3, %v4020_v28  ;;  %v5890_v19 = vpop.f32.mrb[199].mxu0 }
 0x639   : > { %v4025_v25 = vpop.f32.mrb[200].mxu0 }
 0x63a   : > { %4250 = vst.msk [vmem:[%s8132_s25 + $0x310] sm:$0xff] %vm4151_vm3, %v4025_v25  ;;  %v5893_v42 = vpop.f32.mrb[201].mxu0 }
 0x63b   : > { %v4028_v46 = vpop.f32.mrb[202].mxu0 }
 0x63c   : > { %4251 = vst.msk [vmem:[%s8132_s25 + $0x318] sm:$0xff] %vm4151_vm3, %v4028_v46  ;;  %v5894_v1 = vpop.f32.mrb[203].mxu0 }
 0x641   : > { %v4033_v15 = vpop.f32.mrb[204].mxu0 }
 0x642   : > { %4252 = vst.msk [vmem:[%s8132_s25 + $0x320] sm:$0xff] %vm4151_vm3, %v4033_v15  ;;  %v5897_v62 = vpop.f32.mrb[205].mxu0 }
 0x643   : > { %v4036_v44 = vpop.f32.mrb[206].mxu0 }
 0x644   : > { %4253 = vst.msk [vmem:[%s8132_s25 + $0x328] sm:$0xff] %vm4151_vm3, %v4036_v44  ;;  %v5898_v56 = vpop.f32.mrb[207].mxu0 }
 0x649   : > { %v4041_v40 = vpop.f32.mrb[208].mxu0 }
 0x64a   : > { %4254 = vst.msk [vmem:[%s8132_s25 + $0x330] sm:$0xff] %vm4151_vm3, %v4041_v40  ;;  %v5901_v58 = vpop.f32.mrb[209].mxu0 }
 0x64b   : > { %v4044_v35 = vpop.f32.mrb[210].mxu0 }
 0x64c   : > { %4255 = vst.msk [vmem:[%s8132_s25 + $0x338] sm:$0xff] %vm4151_vm3, %v4044_v35  ;;  %v5902_v52 = vpop.f32.mrb[211].mxu0 }
 0x651   : > { %v4049_v38 = vpop.f32.mrb[212].mxu0 }
 0x652   : > { %4256 = vst.msk [vmem:[%s8132_s25 + $0x340] sm:$0xff] %vm4151_vm3, %v4049_v38  ;;  %v5905_v60 = vpop.f32.mrb[213].mxu0 }
 0x653   : > { %v4052_v61 = vpop.f32.mrb[214].mxu0 }
 0x654   : > { %4257 = vst.msk [vmem:[%s8132_s25 + $0x348] sm:$0xff] %vm4151_vm3, %v4052_v61  ;;  %v5906_v16 = vpop.f32.mrb[215].mxu0 }
 0x659   : > { %v4057_v63 = vpop.f32.mrb[216].mxu0 }
 0x65a   : > { %4258 = vst.msk [vmem:[%s8132_s25 + $0x350] sm:$0xff] %vm4151_vm3, %v4057_v63  ;;  %v5909_v50 = vpop.f32.mrb[217].mxu0 }
 0x65b   : > { %v4060_v53 = vpop.f32.mrb[218].mxu0 }
 0x65c   : > { %4259 = vst.msk [vmem:[%s8132_s25 + $0x358] sm:$0xff] %vm4151_vm3, %v4060_v53  ;;  %v5910_v20 = vpop.f32.mrb[219].mxu0 }
 0x661   : > { %v4065_v7 = vpop.f32.mrb[220].mxu0 }
 0x662   : > { %4260 = vst.msk [vmem:[%s8132_s25 + $0x360] sm:$0xff] %vm4151_vm3, %v4065_v7  ;;  %v5913_v31 = vpop.f32.mrb[221].mxu0 }
 0x663   : > { %v4068_v57 = vpop.f32.mrb[222].mxu0 }
 0x664   : > { %4261 = vst.msk [vmem:[%s8132_s25 + $0x368] sm:$0xff] %vm4151_vm3, %v4068_v57  ;;  %v5914_v11 = vpop.f32.mrb[223].mxu0 }
 0x669   : > { %v4073_v10 = vpop.f32.mrb[224].mxu0 }
 0x66a   : > { %4262 = vst.msk [vmem:[%s8132_s25 + $0x370] sm:$0xff] %vm4151_vm3, %v4073_v10  ;;  %v5917_v12 = vpop.f32.mrb[225].mxu0 }
 0x66b   : > { %v4076_v54 = vpop.f32.mrb[226].mxu0 }
 0x66c   : > { %4263 = vst.msk [vmem:[%s8132_s25 + $0x378] sm:$0xff] %vm4151_vm3, %v4076_v54  ;;  %v5918_v24 = vpop.f32.mrb[227].mxu0 }
 0x671   : > { %v4081_v48 = vpop.f32.mrb[228].mxu0 }
 0x672   : > { %4264 = vst.msk [vmem:[%s8132_s25 + $0x380] sm:$0xff] %vm4151_vm3, %v4081_v48  ;;  %v5921_v29 = vpop.f32.mrb[229].mxu0 }
 0x673   : > { %v4084_v55 = vpop.f32.mrb[230].mxu0 }
 0x674   : > { %4265 = vst.msk [vmem:[%s8132_s25 + $0x388] sm:$0xff] %vm4151_vm3, %v4084_v55  ;;  %v5922_v3 = vpop.f32.mrb[231].mxu0 }
 0x679   : > { %v4089_v14 = vpop.f32.mrb[232].mxu0 }
 0x67a   : > { %4266 = vst.msk [vmem:[%s8132_s25 + $0x390] sm:$0xff] %vm4151_vm3, %v4089_v14  ;;  %v5925_v59 = vpop.f32.mrb[233].mxu0 }
 0x67b   : > { %v4092_v45 = vpop.f32.mrb[234].mxu0 }
 0x67c   : > { %4267 = vst.msk [vmem:[%s8132_s25 + $0x398] sm:$0xff] %vm4151_vm3, %v4092_v45  ;;  %v5926_v36 = vpop.f32.mrb[235].mxu0 }
 0x681   : > { %v4097_v33 = vpop.f32.mrb[236].mxu0 }
 0x682   : > { %4268 = vst.msk [vmem:[%s8132_s25 + $0x3a0] sm:$0xff] %vm4151_vm3, %v4097_v33  ;;  %v5929_v2 = vpop.f32.mrb[237].mxu0 }
 0x683   : > { %v4100_v0 = vpop.f32.mrb[238].mxu0 }
 0x684   : > { %4269 = vst.msk [vmem:[%s8132_s25 + $0x3a8] sm:$0xff] %vm4151_vm3, %v4100_v0  ;;  %v5930_v27 = vpop.f32.mrb[239].mxu0 }
 0x689   : > { %v4105_v21 = vpop.f32.mrb[240].mxu0 }
 0x68a   : > { %4270 = vst.msk [vmem:[%s8132_s25 + $0x3b0] sm:$0xff] %vm4151_vm3, %v4105_v21  ;;  %v5933_v30 = vpop.f32.mrb[241].mxu0 }
 0x68b   : > { %v4108_v32 = vpop.f32.mrb[242].mxu0 }
 0x68c   : > { %4271 = vst.msk [vmem:[%s8132_s25 + $0x3b8] sm:$0xff] %vm4151_vm3, %v4108_v32  ;;  %v5934_v37 = vpop.f32.mrb[243].mxu0 }
 0x691   : > { %v4113_v41 = vpop.f32.mrb[244].mxu0 }
 0x692   : > { %4272 = vst.msk [vmem:[%s8132_s25 + $0x3c0] sm:$0xff] %vm4151_vm3, %v4113_v41  ;;  %v5937_v17 = vpop.f32.mrb[245].mxu0 }
 0x693   : > { %v4116_v6 = vpop.f32.mrb[246].mxu0 }
 0x694   : > { %4273 = vst.msk [vmem:[%s8132_s25 + $0x3c8] sm:$0xff] %vm4151_vm3, %v4116_v6  ;;  %v5938_v51 = vpop.f32.mrb[247].mxu0 }
 0x699   : > { %v4121_v26 = vpop.f32.mrb[248].mxu0 }
 0x69a   : > { %4274 = vst.msk [vmem:[%s8132_s25 + $0x3d0] sm:$0xff] %vm4151_vm3, %v4121_v26  ;;  %v5941_v47 = vpop.f32.mrb[249].mxu0 }
 0x69b   : > { %v4124_v22 = vpop.f32.mrb[250].mxu0 }
 0x69c   : > { %4275 = vst.msk [vmem:[%s8132_s25 + $0x3d8] sm:$0xff] %vm4151_vm3, %v4124_v22  ;;  %v5942_v34 = vpop.f32.mrb[251].mxu0 }
 0x6a1   : > { %v4129_v5 = vpop.f32.mrb[252].mxu0 }
 0x6a2   : > { %4276 = vst.msk [vmem:[%s8132_s25 + $0x3e0] sm:$0xff] %vm4151_vm3, %v4129_v5  ;;  %v5945_v49 = vpop.f32.mrb[253].mxu0 }
 0x6a3   : > { %v4132_v18 = vpop.f32.mrb[254].mxu0 }
 0x6a4   : > { %4277 = vst.msk [vmem:[%s8132_s25 + $0x3e8] sm:$0xff] %vm4151_vm3, %v4132_v18  ;;  %v5946_v39 = vpop.f32.mrb[255].mxu0 }
 0x6a9   : > { %v4137_v13 = vpop.f32.mrb[0].mxu0 }
 0x6aa   : > { %4278 = vst.msk [vmem:[%s8132_s25 + $0x3f0] sm:$0xff] %vm4151_vm3, %v4137_v13  ;;  %v5949_v9 = vpop.f32.mrb[1].mxu0 }
 0x6ab   : > { %v4140_v23 = vpop.f32.mrb[2].mxu0 }
 0x6ac   : > { %4279 = vst.msk [vmem:[%s8132_s25 + $0x3f8] sm:$0xff] %vm4151_vm3, %v4140_v23  ;;  %v5950_v4 = vpop.f32.mrb[3].mxu0 }
 0x6b1   : > { %v4145_v43 = vpop.f32.mrb[4].mxu0 }
 0x6b2   : > { %4280 = vst.msk [vmem:[%s8132_s25 + $0x400] sm:$0xff] %vm4151_vm3, %v4145_v43  ;;  %v5953_v8 = vpop.f32.mrb[5].mxu0 }
 0x6b3   : > { %v4148_v28 = vpop.f32.mrb[6].mxu0 }
 0x6b4   : > { %v5954_v19 = vpop.f32.mrb[7].mxu0 }
 0x6b5 PF: > { %s17_s24 = sadd.s32 1, %s5988_s24  }
 0x6b6   : > { %p14_p4 = scmp.ge.s32.totalorder %s17_s24, 6  }
 0x6b8   :  { %16 = sbr.rel (!%p14_p4) target bundleno = 1 (0x1), region = 78 }

</bundles_post_ra>
